<compile_context>
chip_gen: v7x
topology: tpu7x:2x2x1
jax: 0.10.0
libtpu: 0.0.40
codegen_flags: <defaults>
</compile_context>

<pallas_src>
import numpy as np
import jax
import jax.numpy as jnp
from jax import lax
from jax.experimental import pallas as pl
from jax.experimental.pallas import tpu as pltpu

# ---- problem sizes (small, consistent with the module defaults) -------------
N_NODES = 8
N_EDGES = 16
INPUT_DIM = 16
HIDDEN_DIM = 32
OUTPUT_DIM = 2
NUM_LAYERS = 2
MAX_RECURSION = 10
TAU_THRESHOLD = 0.005

# ---- misc f32 slab layout: (MSLAB_ROWS, 32), all offsets multiples of 8 -----
MROW_WP, MROW_BP = 0, 16          # (16,32) / (1,32)
MROW_WD0, MROW_BD0 = 24, 88       # (64,32) / (1,32)
MROW_WD1, MROW_BD1 = 96, 160      # (64,32) / (1,32)
MROW_WT, MROW_BT = 168, 200       # (32,1)  / (1,1)
MROW_WO, MROW_BO = 208, 240       # (32,2)  / (1,2)
MSLAB_ROWS = 248

# ---- GRU bf16 slab layout: (GSLAB_ROWS, 192), offsets multiples of 16 -------
GROW_W2, GROW_B2 = 0, 32          # gru_d2 fused weight (32,192) / bias (1,192)
GROW_W3, GROW_B3 = 48, 80         # gru_d3 fused weight (32,192) / bias (1,192)
GSLAB_ROWS = 96


# ---- kernel-side math helpers ------------------------------------------------
def _dot_hi(a, b):
    # High-precision f32 matmul for the handful of non-chain matmuls
    # (gather/scatter one-hots, input/diff/tau/output linears).
    return jnp.dot(a, b, precision=lax.Precision.HIGHEST,
                   preferred_element_type=jnp.float32)


def _dot_bf16(a_f32, w_bf16):
    # Hot path (40-cell GRU chain): single bf16 MXU pass, f32 accumulation.
    return jnp.dot(a_f32.astype(jnp.bfloat16), w_bf16,
                   preferred_element_type=jnp.float32)


def _softplus(x):
    # numerically-stable softplus built from exp/log only (Pallas-friendly)
    return jnp.maximum(x, 0.0) + jnp.log(1.0 + jnp.exp(-jnp.abs(x)))


# ---- Pallas kernel -----------------------------------------------------------
def _utd_kernel(islab_ref, x_ref, gslab_ref, mslab_ref, out_ref):
    H = HIDDEN_DIM
    N = N_NODES
    E = N_EDGES

    # ---- unpack parameter slabs (static, aligned ref slices; loaded once) ----
    wp = mslab_ref[MROW_WP:MROW_WP + INPUT_DIM, :]          # (16, 32)
    bp = mslab_ref[MROW_BP:MROW_BP + 1, :]                  # (1, 32)
    wt = mslab_ref[MROW_WT:MROW_WT + H, 0:1]                # (32, 1)
    bt = mslab_ref[MROW_BT:MROW_BT + 1, 0:1]                # (1, 1)
    wo = mslab_ref[MROW_WO:MROW_WO + H, 0:OUTPUT_DIM]       # (32, 2)
    bo = mslab_ref[MROW_BO:MROW_BO + 1, 0:OUTPUT_DIM]       # (1, 2)

    w2 = gslab_ref[GROW_W2:GROW_W2 + H, :]                  # (H, 6H) bf16
    w3 = gslab_ref[GROW_W3:GROW_W3 + H, :]                  # (H, 6H) bf16
    # GRU biases broadcast to (N, 6H) f32 once (not per cell / per iteration).
    b2 = jnp.broadcast_to(gslab_ref[GROW_B2:GROW_B2 + 1, :],
                          (N, 6 * H)).astype(jnp.float32)
    b3 = jnp.broadcast_to(gslab_ref[GROW_B3:GROW_B3 + 1, :],
                          (N, 6 * H)).astype(jnp.float32)

    # ---- one-hot gather / scatter matrices from the packed edge slab --------
    rowcol_s = islab_ref[0:2 * E, 0:1]                      # (2E,1) [row;col]
    row_l = islab_ref[2 * E:2 * E + 1, :]                   # (1,E)  row ids
    ids_2e_n = lax.broadcasted_iota(jnp.int32, (2 * E, N), 1)
    G = (rowcol_s == ids_2e_n).astype(jnp.float32)          # (2E,N) gather
    ids_n_e = lax.broadcasted_iota(jnp.int32, (N, E), 0)
    RT = (row_l == ids_n_e).astype(jnp.float32)             # (N,E) scatter^T

    # h = relu(input_proj(x))
    h = jnp.maximum(_dot_hi(x_ref[...], wp) + bp, 0.0)      # (N, H)

    def gru(hh, w, b):
        # PyTorch nn.GRUCell with input == hidden == hh.
        # One fused dot per cell; gate columns are packed host-side as
        # [Wi_r|Wi_z|Wh_r|Wh_z|Wi_n|Wh_n] so:
        #   - r and z come from ONE merged sigmoid over 2H lanes,
        #   - no gate slice crosses a 128-lane tile boundary.
        g = _dot_bf16(hh, w) + b                            # (N, 6H) f32
        rz_pre = g[:, 0:2 * H] + g[:, 2 * H:4 * H]          # gi_rz + gh_rz
        rz = 1.0 / (1.0 + jnp.exp(-rz_pre))                 # exact sigmoid
        r = rz[:, 0:H]
        z = rz[:, H:2 * H]
        n = jnp.tanh(g[:, 4 * H:5 * H] + r * g[:, 5 * H:6 * H])
        return (1.0 - z) * n + z * hh

    def rec_body(_, hh):
        hh = gru(hh, w2, b2)        # gru_d2
        return gru(hh, w3, b3)      # level > 2 -> also gru_d3

    for wd_row, bd_row in ((MROW_WD0, MROW_BD0), (MROW_WD1, MROW_BD1)):
        # compute_d1: gather both edge endpoints with a single one-hot matmul.
        hg = _dot_hi(G, h)                                  # (2E, H)
        diff = jnp.abs(hg[0:E, :] - hg[E:2 * E, :])         # (E, H)
        # scatter_add over `row`:  diff_agg = R^T @ diff
        diff_agg = _dot_hi(RT, diff)                        # (N, H)

        # h = relu(Linear(cat([h, diff_agg]))) as two split dots (no concat).
        wd_h = mslab_ref[wd_row:wd_row + H, :]              # (H, H)
        wd_d = mslab_ref[wd_row + H:wd_row + 2 * H, :]      # (H, H)
        bd = mslab_ref[bd_row:bd_row + 1, :]                # (1, H)
        h = jnp.maximum(_dot_hi(h, wd_h) + _dot_hi(diff_agg, wd_d) + bd, 0.0)

        # tau = softplus(tau_layer(h)); recursion is active iff tau < threshold
        # (n_updates = min(floor(1/tau), 10) > 0 is implied since softplus > 0).
        tau = _softplus(_dot_hi(h, wt) + bt)                # (N, 1)
        active = tau < TAU_THRESHOLD                        # (N, 1)

        # recursive_update(h, tau, level=3): fixed MAX_RECURSION iterations of
        # (gru_d2, gru_d3) applied to every node, masked with `active` after —
        # identical to the original module since tau is loop-invariant.
        h_rec = lax.fori_loop(0, MAX_RECURSION, rec_body, h, unroll=True)
        h = jnp.where(active, h_rec, h)

    out_ref[...] = _dot_hi(h, wo) + bo


# ---- host-side parameter packing ---------------------------------------------
def _pack_gru_slab(p):
    """Fused bf16 GRU weight/bias slab for gru_d2 and gru_d3."""
    H = HIDDEN_DIM

    def fuse(wi, wh, bi, bh):
        # column order [Wi_r|Wi_z|Wh_r|Wh_z|Wi_n|Wh_n] (and matching bias order)
        w = jnp.concatenate([wi[0], wi[1], wh[0], wh[1], wi[2], wh[2]], axis=1)
        b = jnp.concatenate([bi[0], bi[1], bh[0], bh[1], bi[2], bh[2]], axis=1)
        return w, b

    w2, b2 = fuse(p['wi2'], p['wh2'], p['bi2'], p['bh2'])
    w3, b3 = fuse(p['wi3'], p['wh3'], p['bi3'], p['bh3'])
    slab = jnp.zeros((GSLAB_ROWS, 6 * H), jnp.float32)
    slab = slab.at[GROW_W2:GROW_W2 + H, :].set(w2)
    slab = slab.at[GROW_B2:GROW_B2 + 1, :].set(b2)
    slab = slab.at[GROW_W3:GROW_W3 + H, :].set(w3)
    slab = slab.at[GROW_B3:GROW_B3 + 1, :].set(b3)
    return slab.astype(jnp.bfloat16)


def _pack_misc_slab(p):
    """All remaining (f32) weights/biases at 8-row-aligned offsets, 32 lanes."""
    slab = jnp.zeros((MSLAB_ROWS, HIDDEN_DIM), jnp.float32)

    def put(s, r, a):
        rr, cc = a.shape
        return s.at[r:r + rr, 0:cc].set(a)

    slab = put(slab, MROW_WP, p['wp'])
    slab = put(slab, MROW_BP, p['bp'])
    slab = put(slab, MROW_WD0, p['wd0'])
    slab = put(slab, MROW_BD0, p['bd0'])
    slab = put(slab, MROW_WD1, p['wd1'])
    slab = put(slab, MROW_BD1, p['bd1'])
    slab = put(slab, MROW_WT, p['wt'])
    slab = put(slab, MROW_BT, p['bt'])
    slab = put(slab, MROW_WO, p['wo'])
    slab = put(slab, MROW_BO, p['bo'])
    return slab


def pack_params(params):
    return {'gru_slab': _pack_gru_slab(params),
            'misc_slab': _pack_misc_slab(params)}


# ---- wrapper -----------------------------------------------------------------
@jax.jit
def utd_graphnet_forward(packed, x, edge_index):
    E = N_EDGES
    row = edge_index[0].astype(jnp.int32)
    col = edge_index[1].astype(jnp.int32)
    # Edge slab: [row; col] down column 0, and `row` along lanes in row 2E.
    islab = jnp.zeros((2 * E + 8, E), jnp.int32)
    islab = islab.at[0:2 * E, 0].set(jnp.concatenate([row, col], axis=0))
    islab = islab.at[2 * E, :].set(row)

    vmem = lambda: pl.BlockSpec(memory_space=pltpu.MemorySpace.VMEM)
    return pl.pallas_call(
        _utd_kernel,
        out_shape=jax.ShapeDtypeStruct((N_NODES, OUTPUT_DIM), jnp.float32),
        in_specs=[vmem(), vmem(), vmem(), vmem()],
        out_specs=vmem(),
    )(islab, x, packed['gru_slab'], packed['misc_slab'])


# ---- deterministic parameter init (synthetic; mimics PyTorch uniform ranges) -
def init_params(key):
    ks = jax.random.split(key, 17)
    H = HIDDEN_DIM

    def unif(k, shape, fan_in):
        b = 1.0 / np.sqrt(fan_in)
        return jax.random.uniform(k, shape, jnp.float32, -b, b)

    params = {
        'wp': unif(ks[0], (INPUT_DIM, H), INPUT_DIM),
        'bp': unif(ks[1], (1, H), INPUT_DIM),
        'wd0': unif(ks[2], (2 * H, H), 2 * H),
        'bd0': unif(ks[3], (1, H), 2 * H),
        'wd1': unif(ks[4], (2 * H, H), 2 * H),
        'bd1': unif(ks[5], (1, H), 2 * H),
        # small tau weights + strongly negative bias so tau < tau_threshold and
        # the recursive GRU branch is actually exercised
        'wt': 0.01 * unif(ks[6], (H, 1), H),
        'bt': jnp.full((1, 1), -6.0, jnp.float32),
        'wi2': unif(ks[7], (3, H, H), H),
        'wh2': unif(ks[8], (3, H, H), H),
        'bi2': unif(ks[9], (3, 1, H), H),
        'bh2': unif(ks[10], (3, 1, H), H),
        'wi3': unif(ks[11], (3, H, H), H),
        'wh3': unif(ks[12], (3, H, H), H),
        'bi3': unif(ks[13], (3, 1, H), H),
        'bh3': unif(ks[14], (3, 1, H), H),
        'wo': unif(ks[15], (H, OUTPUT_DIM), H),
        'bo': unif(ks[16], (1, OUTPUT_DIM), H),
    }
    return params


# ---- pure-JAX reference (real gather / scatter_add, full f32 precision) ------
def _sigmoid_ref(x):
    return 1.0 / (1.0 + jnp.exp(-x))


def _gru_cell_ref(h, wi, wh, bi, bh):
    gi_r = _dot_hi(h, wi[0]) + bi[0]
    gi_z = _dot_hi(h, wi[1]) + bi[1]
    gi_n = _dot_hi(h, wi[2]) + bi[2]
    gh_r = _dot_hi(h, wh[0]) + bh[0]
    gh_z = _dot_hi(h, wh[1]) + bh[1]
    gh_n = _dot_hi(h, wh[2]) + bh[2]
    r = _sigmoid_ref(gi_r + gh_r)
    z = _sigmoid_ref(gi_z + gh_z)
    n = jnp.tanh(gi_n + r * gh_n)
    return (1.0 - z) * n + z * h


def reference_forward(params, x, edge_index):
    row, col = edge_index[0], edge_index[1]
    h = jnp.maximum(_dot_hi(x, params['wp']) + params['bp'], 0.0)
    for wd, bd in ((params['wd0'], params['bd0']), (params['wd1'], params['bd1'])):
        diff = jnp.abs(h[row] - h[col])
        diff_agg = jnp.zeros_like(h).at[row].add(diff)
        hcat = jnp.concatenate([h, diff_agg], axis=-1)
        h = jnp.maximum(_dot_hi(hcat, wd) + bd, 0.0)
        tau = _softplus(_dot_hi(h, params['wt']) + params['bt'])
        n_updates = jnp.minimum(jnp.floor(1.0 / tau), float(MAX_RECURSION))
        active = jnp.logical_and(n_updates > 0.0, tau < TAU_THRESHOLD)
        hh = h
        for _ in range(MAX_RECURSION):
            hh = _gru_cell_ref(hh, params['wi2'], params['wh2'],
                               params['bi2'], params['bh2'])
            hh = _gru_cell_ref(hh, params['wi3'], params['wh3'],
                               params['bi3'], params['bh3'])
        h = jnp.where(active, hh, h)
    return _dot_hi(h, params['wo']) + params['bo']


if __name__ == "__main__":
    key = jax.random.PRNGKey(0)
    kp, kx, ke = jax.random.split(key, 3)

    params = init_params(kp)
    x = jax.random.normal(kx, (N_NODES, INPUT_DIM), jnp.float32)
    edge_index = jax.random.randint(ke, (2, N_EDGES), 0, N_NODES, dtype=jnp.int32)

    packed = pack_params(params)
    out = jax.block_until_ready(utd_graphnet_forward(packed, x, edge_index))
    ref = jax.block_until_ready(reference_forward(params, x, edge_index))

    if out.shape != (N_NODES, OUTPUT_DIM):
        raise AssertionError(f"bad output shape {out.shape}")
    out_np, ref_np = np.asarray(out), np.asarray(ref)
    # Tolerance reflects the deliberate single-pass bf16 MXU precision in the
    # 40-cell serial GRU chain (reference stays full f32); all non-chain
    # matmuls and gate nonlinearities in the kernel are exact f32.
    if not np.allclose(out_np, ref_np, rtol=5e-2, atol=5e-2):
        raise AssertionError(
            "Pallas kernel output does not match JAX reference; "
            f"max abs err = {np.max(np.abs(out_np - ref_np)):.4e}")

    print("KERNEL_OK")
</pallas_src>

<mosaic_0001>
module attributes {stable_mosaic.version = 11 : i64} {
  func.func @_utd_kernel(%arg0: memref<40x16xi32, #tpu.memory_space<vmem>>, %arg1: memref<8x16xf32, #tpu.memory_space<vmem>>, %arg2: memref<96x192xbf16, #tpu.memory_space<vmem>>, %arg3: memref<248x32xf32, #tpu.memory_space<vmem>>, %arg4: memref<8x2xf32, #tpu.memory_space<vmem>>) attributes {dimension_semantics = [], scalar_prefetch = 0 : i64, scratch_operands = 0 : i64, tpu.core_type = #tpu.core_type<tc>} {
    %c0 = arith.constant 0 : index
    %c0_0 = arith.constant 0 : index
    %0 = vector.load %arg3[%c0, %c0_0] : memref<248x32xf32, #tpu.memory_space<vmem>>, vector<16x32xf32>
    %c16 = arith.constant 16 : index
    %c0_1 = arith.constant 0 : index
    %1 = vector.load %arg3[%c16, %c0_1] : memref<248x32xf32, #tpu.memory_space<vmem>>, vector<1x32xf32>
    %c168 = arith.constant 168 : index
    %c0_2 = arith.constant 0 : index
    %2 = vector.load %arg3[%c168, %c0_2] : memref<248x32xf32, #tpu.memory_space<vmem>>, vector<32x1xf32>
    %c200 = arith.constant 200 : index
    %c0_3 = arith.constant 0 : index
    %3 = vector.load %arg3[%c200, %c0_3] : memref<248x32xf32, #tpu.memory_space<vmem>>, vector<1x1xf32>
    %c208 = arith.constant 208 : index
    %c0_4 = arith.constant 0 : index
    %4 = vector.load %arg3[%c208, %c0_4] : memref<248x32xf32, #tpu.memory_space<vmem>>, vector<32x2xf32>
    %c240 = arith.constant 240 : index
    %c0_5 = arith.constant 0 : index
    %5 = vector.load %arg3[%c240, %c0_5] : memref<248x32xf32, #tpu.memory_space<vmem>>, vector<1x2xf32>
    %c0_6 = arith.constant 0 : index
    %c0_7 = arith.constant 0 : index
    %6 = vector.load %arg2[%c0_6, %c0_7] : memref<96x192xbf16, #tpu.memory_space<vmem>>, vector<32x192xbf16>
    %c48 = arith.constant 48 : index
    %c0_8 = arith.constant 0 : index
    %7 = vector.load %arg2[%c48, %c0_8] : memref<96x192xbf16, #tpu.memory_space<vmem>>, vector<32x192xbf16>
    %c32 = arith.constant 32 : index
    %c0_9 = arith.constant 0 : index
    %8 = vector.load %arg2[%c32, %c0_9] : memref<96x192xbf16, #tpu.memory_space<vmem>>, vector<1x192xbf16>
    %9 = vector.shape_cast %8 : vector<1x192xbf16> to vector<1x192xbf16>
    %10 = vector.broadcast %9 : vector<1x192xbf16> to vector<8x192xbf16>
    %11 = arith.extf %10 : vector<8x192xbf16> to vector<8x192xf32>
    %c80 = arith.constant 80 : index
    %c0_10 = arith.constant 0 : index
    %12 = vector.load %arg2[%c80, %c0_10] : memref<96x192xbf16, #tpu.memory_space<vmem>>, vector<1x192xbf16>
    %13 = vector.shape_cast %12 : vector<1x192xbf16> to vector<1x192xbf16>
    %14 = vector.broadcast %13 : vector<1x192xbf16> to vector<8x192xbf16>
    %15 = arith.extf %14 : vector<8x192xbf16> to vector<8x192xf32>
    %c0_11 = arith.constant 0 : index
    %c0_12 = arith.constant 0 : index
    %16 = vector.load %arg0[%c0_11, %c0_12] : memref<40x16xi32, #tpu.memory_space<vmem>>, vector<32x1xi32>
    %c32_13 = arith.constant 32 : index
    %c0_14 = arith.constant 0 : index
    %17 = vector.load %arg0[%c32_13, %c0_14] : memref<40x16xi32, #tpu.memory_space<vmem>>, vector<1x16xi32>
    %18 = tpu.iota {dimensions = array<i32: 1>} : vector<32x8xi32>
    %19 = vector.broadcast %16 : vector<32x1xi32> to vector<32x8xi32>
    %20 = arith.cmpi eq, %19, %18 : vector<32x8xi32>
    %21 = arith.extui %20 : vector<32x8xi1> to vector<32x8xi32>
    %22 = arith.sitofp %21 : vector<32x8xi32> to vector<32x8xf32>
    %23 = tpu.iota {dimensions = array<i32: 0>} : vector<8x16xi32>
    %24 = vector.broadcast %17 : vector<1x16xi32> to vector<8x16xi32>
    %25 = arith.cmpi eq, %24, %23 : vector<8x16xi32>
    %26 = arith.extui %25 : vector<8x16xi1> to vector<8x16xi32>
    %27 = arith.sitofp %26 : vector<8x16xi32> to vector<8x16xf32>
    %c0_15 = arith.constant 0 : index
    %c0_16 = arith.constant 0 : index
    %28 = vector.load %arg1[%c0_15, %c0_16] : memref<8x16xf32, #tpu.memory_space<vmem>>, vector<8x16xf32>
    %cst = arith.constant dense<0.000000e+00> : vector<8x32xf32>
    %29 = tpu.matmul %28, %0, %cst {dimension_numbers = #tpu.dot_dimension_numbers<[1], [0], [0], [1], [0, 0, 1, 1], [], []>, precision = #tpu.contract_precision<fp32>} : vector<8x16xf32>, vector<16x32xf32>, vector<8x32xf32> -> vector<8x32xf32>
    %30 = vector.broadcast %1 : vector<1x32xf32> to vector<8x32xf32>
    %31 = arith.addf %29, %30 : vector<8x32xf32>
    %cst_17 = arith.constant 0.000000e+00 : f32
    %32 = vector.broadcast %cst_17 : f32 to vector<8x32xf32>
    %33 = arith.maximumf %31, %32 : vector<8x32xf32>
    %cst_18 = arith.constant dense<0.000000e+00> : vector<32x32xf32>
    %34 = tpu.matmul %22, %33, %cst_18 {dimension_numbers = #tpu.dot_dimension_numbers<[1], [0], [0], [1], [0, 0, 1, 1], [], []>, precision = #tpu.contract_precision<fp32>} : vector<32x8xf32>, vector<8x32xf32>, vector<32x32xf32> -> vector<32x32xf32>
    %35 = vector.extract_strided_slice %34 {offsets = [0, 0], sizes = [16, 32], strides = [1, 1]} : vector<32x32xf32> to vector<16x32xf32>
    %36 = vector.extract_strided_slice %34 {offsets = [16, 0], sizes = [16, 32], strides = [1, 1]} : vector<32x32xf32> to vector<16x32xf32>
    %37 = arith.subf %35, %36 : vector<16x32xf32>
    %38 = math.absf %37 : vector<16x32xf32>
    %cst_19 = arith.constant dense<0.000000e+00> : vector<8x32xf32>
    %39 = tpu.matmul %27, %38, %cst_19 {dimension_numbers = #tpu.dot_dimension_numbers<[1], [0], [0], [1], [0, 0, 1, 1], [], []>, precision = #tpu.contract_precision<fp32>} : vector<8x16xf32>, vector<16x32xf32>, vector<8x32xf32> -> vector<8x32xf32>
    %c24 = arith.constant 24 : index
    %c0_20 = arith.constant 0 : index
    %40 = vector.load %arg3[%c24, %c0_20] : memref<248x32xf32, #tpu.memory_space<vmem>>, vector<32x32xf32>
    %c56 = arith.constant 56 : index
    %c0_21 = arith.constant 0 : index
    %41 = vector.load %arg3[%c56, %c0_21] : memref<248x32xf32, #tpu.memory_space<vmem>>, vector<32x32xf32>
    %c88 = arith.constant 88 : index
    %c0_22 = arith.constant 0 : index
    %42 = vector.load %arg3[%c88, %c0_22] : memref<248x32xf32, #tpu.memory_space<vmem>>, vector<1x32xf32>
    %cst_23 = arith.constant dense<0.000000e+00> : vector<8x32xf32>
    %43 = tpu.matmul %33, %40, %cst_23 {dimension_numbers = #tpu.dot_dimension_numbers<[1], [0], [0], [1], [0, 0, 1, 1], [], []>, precision = #tpu.contract_precision<fp32>} : vector<8x32xf32>, vector<32x32xf32>, vector<8x32xf32> -> vector<8x32xf32>
    %cst_24 = arith.constant dense<0.000000e+00> : vector<8x32xf32>
    %44 = tpu.matmul %39, %41, %cst_24 {dimension_numbers = #tpu.dot_dimension_numbers<[1], [0], [0], [1], [0, 0, 1, 1], [], []>, precision = #tpu.contract_precision<fp32>} : vector<8x32xf32>, vector<32x32xf32>, vector<8x32xf32> -> vector<8x32xf32>
    %45 = arith.addf %43, %44 : vector<8x32xf32>
    %46 = vector.broadcast %42 : vector<1x32xf32> to vector<8x32xf32>
    %47 = arith.addf %45, %46 : vector<8x32xf32>
    %cst_25 = arith.constant 0.000000e+00 : f32
    %48 = vector.broadcast %cst_25 : f32 to vector<8x32xf32>
    %49 = arith.maximumf %47, %48 : vector<8x32xf32>
    %cst_26 = arith.constant dense<0.000000e+00> : vector<8x1xf32>
    %50 = tpu.matmul %49, %2, %cst_26 {dimension_numbers = #tpu.dot_dimension_numbers<[1], [0], [0], [1], [0, 0, 1, 1], [], []>, precision = #tpu.contract_precision<fp32>} : vector<8x32xf32>, vector<32x1xf32>, vector<8x1xf32> -> vector<8x1xf32>
    %51 = vector.broadcast %3 : vector<1x1xf32> to vector<8x1xf32>
    %52 = arith.addf %50, %51 : vector<8x1xf32>
    %cst_27 = arith.constant 0.000000e+00 : f32
    %53 = vector.broadcast %cst_27 : f32 to vector<8x1xf32>
    %54 = arith.maximumf %52, %53 : vector<8x1xf32>
    %55 = math.absf %52 : vector<8x1xf32>
    %cst_28 = arith.constant 0.000000e+00 : f32
    %56 = vector.broadcast %cst_28 : f32 to vector<8x1xf32>
    %57 = arith.subf %56, %55 : vector<8x1xf32>
    %58 = math.exp %57 : vector<8x1xf32>
    %cst_29 = arith.constant 1.000000e+00 : f32
    %59 = vector.broadcast %cst_29 : f32 to vector<8x1xf32>
    %60 = arith.addf %59, %58 : vector<8x1xf32>
    %61 = math.log %60 : vector<8x1xf32>
    %62 = arith.addf %54, %61 : vector<8x1xf32>
    %cst_30 = arith.constant 5.000000e-03 : f32
    %63 = vector.broadcast %cst_30 : f32 to vector<8x1xf32>
    %64 = arith.cmpf olt, %62, %63 : vector<8x1xf32>
    %c0_i32 = arith.constant 0 : i32
    %65 = arith.truncf %49 : vector<8x32xf32> to vector<8x32xbf16>
    %cst_31 = arith.constant dense<0.000000e+00> : vector<8x192xf32>
    %66 = tpu.matmul %65, %6, %cst_31 {dimension_numbers = #tpu.dot_dimension_numbers<[1], [0], [0], [1], [0, 0, 1, 1], [], []>} : vector<8x32xbf16>, vector<32x192xbf16>, vector<8x192xf32> -> vector<8x192xf32>
    %67 = arith.addf %66, %11 : vector<8x192xf32>
    %68 = vector.extract_strided_slice %67 {offsets = [0, 0], sizes = [8, 64], strides = [1, 1]} : vector<8x192xf32> to vector<8x64xf32>
    %69 = vector.extract_strided_slice %67 {offsets = [0, 64], sizes = [8, 64], strides = [1, 1]} : vector<8x192xf32> to vector<8x64xf32>
    %70 = arith.addf %68, %69 : vector<8x64xf32>
    %cst_32 = arith.constant 0.000000e+00 : f32
    %71 = vector.broadcast %cst_32 : f32 to vector<8x64xf32>
    %72 = arith.subf %71, %70 : vector<8x64xf32>
    %73 = math.exp %72 : vector<8x64xf32>
    %cst_33 = arith.constant 1.000000e+00 : f32
    %74 = vector.broadcast %cst_33 : f32 to vector<8x64xf32>
    %75 = arith.addf %74, %73 : vector<8x64xf32>
    %cst_34 = arith.constant 1.000000e+00 : f32
    %76 = vector.broadcast %cst_34 : f32 to vector<8x64xf32>
    %77 = arith.divf %76, %75 : vector<8x64xf32>
    %78 = vector.extract_strided_slice %77 {offsets = [0, 0], sizes = [8, 32], strides = [1, 1]} : vector<8x64xf32> to vector<8x32xf32>
    %79 = vector.extract_strided_slice %77 {offsets = [0, 32], sizes = [8, 32], strides = [1, 1]} : vector<8x64xf32> to vector<8x32xf32>
    %80 = vector.extract_strided_slice %67 {offsets = [0, 128], sizes = [8, 32], strides = [1, 1]} : vector<8x192xf32> to vector<8x32xf32>
    %81 = vector.extract_strided_slice %67 {offsets = [0, 160], sizes = [8, 32], strides = [1, 1]} : vector<8x192xf32> to vector<8x32xf32>
    %82 = arith.mulf %78, %81 : vector<8x32xf32>
    %83 = arith.addf %80, %82 : vector<8x32xf32>
    %84 = math.tanh %83 : vector<8x32xf32>
    %cst_35 = arith.constant 1.000000e+00 : f32
    %85 = vector.broadcast %cst_35 : f32 to vector<8x32xf32>
    %86 = arith.subf %85, %79 : vector<8x32xf32>
    %87 = arith.mulf %86, %84 : vector<8x32xf32>
    %88 = arith.mulf %79, %49 : vector<8x32xf32>
    %89 = arith.addf %87, %88 : vector<8x32xf32>
    %90 = arith.truncf %89 : vector<8x32xf32> to vector<8x32xbf16>
    %cst_36 = arith.constant dense<0.000000e+00> : vector<8x192xf32>
    %91 = tpu.matmul %90, %7, %cst_36 {dimension_numbers = #tpu.dot_dimension_numbers<[1], [0], [0], [1], [0, 0, 1, 1], [], []>} : vector<8x32xbf16>, vector<32x192xbf16>, vector<8x192xf32> -> vector<8x192xf32>
    %92 = arith.addf %91, %15 : vector<8x192xf32>
    %93 = vector.extract_strided_slice %92 {offsets = [0, 0], sizes = [8, 64], strides = [1, 1]} : vector<8x192xf32> to vector<8x64xf32>
    %94 = vector.extract_strided_slice %92 {offsets = [0, 64], sizes = [8, 64], strides = [1, 1]} : vector<8x192xf32> to vector<8x64xf32>
    %95 = arith.addf %93, %94 : vector<8x64xf32>
    %cst_37 = arith.constant 0.000000e+00 : f32
    %96 = vector.broadcast %cst_37 : f32 to vector<8x64xf32>
    %97 = arith.subf %96, %95 : vector<8x64xf32>
    %98 = math.exp %97 : vector<8x64xf32>
    %cst_38 = arith.constant 1.000000e+00 : f32
    %99 = vector.broadcast %cst_38 : f32 to vector<8x64xf32>
    %100 = arith.addf %99, %98 : vector<8x64xf32>
    %cst_39 = arith.constant 1.000000e+00 : f32
    %101 = vector.broadcast %cst_39 : f32 to vector<8x64xf32>
    %102 = arith.divf %101, %100 : vector<8x64xf32>
    %103 = vector.extract_strided_slice %102 {offsets = [0, 0], sizes = [8, 32], strides = [1, 1]} : vector<8x64xf32> to vector<8x32xf32>
    %104 = vector.extract_strided_slice %102 {offsets = [0, 32], sizes = [8, 32], strides = [1, 1]} : vector<8x64xf32> to vector<8x32xf32>
    %105 = vector.extract_strided_slice %92 {offsets = [0, 128], sizes = [8, 32], strides = [1, 1]} : vector<8x192xf32> to vector<8x32xf32>
    %106 = vector.extract_strided_slice %92 {offsets = [0, 160], sizes = [8, 32], strides = [1, 1]} : vector<8x192xf32> to vector<8x32xf32>
    %107 = arith.mulf %103, %106 : vector<8x32xf32>
    %108 = arith.addf %105, %107 : vector<8x32xf32>
    %109 = math.tanh %108 : vector<8x32xf32>
    %cst_40 = arith.constant 1.000000e+00 : f32
    %110 = vector.broadcast %cst_40 : f32 to vector<8x32xf32>
    %111 = arith.subf %110, %104 : vector<8x32xf32>
    %112 = arith.mulf %111, %109 : vector<8x32xf32>
    %113 = arith.mulf %104, %89 : vector<8x32xf32>
    %114 = arith.addf %112, %113 : vector<8x32xf32>
    %c1_i32 = arith.constant 1 : i32
    %115 = arith.truncf %114 : vector<8x32xf32> to vector<8x32xbf16>
    %cst_41 = arith.constant dense<0.000000e+00> : vector<8x192xf32>
    %116 = tpu.matmul %115, %6, %cst_41 {dimension_numbers = #tpu.dot_dimension_numbers<[1], [0], [0], [1], [0, 0, 1, 1], [], []>} : vector<8x32xbf16>, vector<32x192xbf16>, vector<8x192xf32> -> vector<8x192xf32>
    %117 = arith.addf %116, %11 : vector<8x192xf32>
    %118 = vector.extract_strided_slice %117 {offsets = [0, 0], sizes = [8, 64], strides = [1, 1]} : vector<8x192xf32> to vector<8x64xf32>
    %119 = vector.extract_strided_slice %117 {offsets = [0, 64], sizes = [8, 64], strides = [1, 1]} : vector<8x192xf32> to vector<8x64xf32>
    %120 = arith.addf %118, %119 : vector<8x64xf32>
    %cst_42 = arith.constant 0.000000e+00 : f32
    %121 = vector.broadcast %cst_42 : f32 to vector<8x64xf32>
    %122 = arith.subf %121, %120 : vector<8x64xf32>
    %123 = math.exp %122 : vector<8x64xf32>
    %cst_43 = arith.constant 1.000000e+00 : f32
    %124 = vector.broadcast %cst_43 : f32 to vector<8x64xf32>
    %125 = arith.addf %124, %123 : vector<8x64xf32>
    %cst_44 = arith.constant 1.000000e+00 : f32
    %126 = vector.broadcast %cst_44 : f32 to vector<8x64xf32>
    %127 = arith.divf %126, %125 : vector<8x64xf32>
    %128 = vector.extract_strided_slice %127 {offsets = [0, 0], sizes = [8, 32], strides = [1, 1]} : vector<8x64xf32> to vector<8x32xf32>
    %129 = vector.extract_strided_slice %127 {offsets = [0, 32], sizes = [8, 32], strides = [1, 1]} : vector<8x64xf32> to vector<8x32xf32>
    %130 = vector.extract_strided_slice %117 {offsets = [0, 128], sizes = [8, 32], strides = [1, 1]} : vector<8x192xf32> to vector<8x32xf32>
    %131 = vector.extract_strided_slice %117 {offsets = [0, 160], sizes = [8, 32], strides = [1, 1]} : vector<8x192xf32> to vector<8x32xf32>
    %132 = arith.mulf %128, %131 : vector<8x32xf32>
    %133 = arith.addf %130, %132 : vector<8x32xf32>
    %134 = math.tanh %133 : vector<8x32xf32>
    %cst_45 = arith.constant 1.000000e+00 : f32
    %135 = vector.broadcast %cst_45 : f32 to vector<8x32xf32>
    %136 = arith.subf %135, %129 : vector<8x32xf32>
    %137 = arith.mulf %136, %134 : vector<8x32xf32>
    %138 = arith.mulf %129, %114 : vector<8x32xf32>
    %139 = arith.addf %137, %138 : vector<8x32xf32>
    %140 = arith.truncf %139 : vector<8x32xf32> to vector<8x32xbf16>
    %cst_46 = arith.constant dense<0.000000e+00> : vector<8x192xf32>
    %141 = tpu.matmul %140, %7, %cst_46 {dimension_numbers = #tpu.dot_dimension_numbers<[1], [0], [0], [1], [0, 0, 1, 1], [], []>} : vector<8x32xbf16>, vector<32x192xbf16>, vector<8x192xf32> -> vector<8x192xf32>
    %142 = arith.addf %141, %15 : vector<8x192xf32>
    %143 = vector.extract_strided_slice %142 {offsets = [0, 0], sizes = [8, 64], strides = [1, 1]} : vector<8x192xf32> to vector<8x64xf32>
    %144 = vector.extract_strided_slice %142 {offsets = [0, 64], sizes = [8, 64], strides = [1, 1]} : vector<8x192xf32> to vector<8x64xf32>
    %145 = arith.addf %143, %144 : vector<8x64xf32>
    %cst_47 = arith.constant 0.000000e+00 : f32
    %146 = vector.broadcast %cst_47 : f32 to vector<8x64xf32>
    %147 = arith.subf %146, %145 : vector<8x64xf32>
    %148 = math.exp %147 : vector<8x64xf32>
    %cst_48 = arith.constant 1.000000e+00 : f32
    %149 = vector.broadcast %cst_48 : f32 to vector<8x64xf32>
    %150 = arith.addf %149, %148 : vector<8x64xf32>
    %cst_49 = arith.constant 1.000000e+00 : f32
    %151 = vector.broadcast %cst_49 : f32 to vector<8x64xf32>
    %152 = arith.divf %151, %150 : vector<8x64xf32>
    %153 = vector.extract_strided_slice %152 {offsets = [0, 0], sizes = [8, 32], strides = [1, 1]} : vector<8x64xf32> to vector<8x32xf32>
    %154 = vector.extract_strided_slice %152 {offsets = [0, 32], sizes = [8, 32], strides = [1, 1]} : vector<8x64xf32> to vector<8x32xf32>
    %155 = vector.extract_strided_slice %142 {offsets = [0, 128], sizes = [8, 32], strides = [1, 1]} : vector<8x192xf32> to vector<8x32xf32>
    %156 = vector.extract_strided_slice %142 {offsets = [0, 160], sizes = [8, 32], strides = [1, 1]} : vector<8x192xf32> to vector<8x32xf32>
    %157 = arith.mulf %153, %156 : vector<8x32xf32>
    %158 = arith.addf %155, %157 : vector<8x32xf32>
    %159 = math.tanh %158 : vector<8x32xf32>
    %cst_50 = arith.constant 1.000000e+00 : f32
    %160 = vector.broadcast %cst_50 : f32 to vector<8x32xf32>
    %161 = arith.subf %160, %154 : vector<8x32xf32>
    %162 = arith.mulf %161, %159 : vector<8x32xf32>
    %163 = arith.mulf %154, %139 : vector<8x32xf32>
    %164 = arith.addf %162, %163 : vector<8x32xf32>
    %c2_i32 = arith.constant 2 : i32
    %165 = arith.truncf %164 : vector<8x32xf32> to vector<8x32xbf16>
    %cst_51 = arith.constant dense<0.000000e+00> : vector<8x192xf32>
    %166 = tpu.matmul %165, %6, %cst_51 {dimension_numbers = #tpu.dot_dimension_numbers<[1], [0], [0], [1], [0, 0, 1, 1], [], []>} : vector<8x32xbf16>, vector<32x192xbf16>, vector<8x192xf32> -> vector<8x192xf32>
    %167 = arith.addf %166, %11 : vector<8x192xf32>
    %168 = vector.extract_strided_slice %167 {offsets = [0, 0], sizes = [8, 64], strides = [1, 1]} : vector<8x192xf32> to vector<8x64xf32>
    %169 = vector.extract_strided_slice %167 {offsets = [0, 64], sizes = [8, 64], strides = [1, 1]} : vector<8x192xf32> to vector<8x64xf32>
    %170 = arith.addf %168, %169 : vector<8x64xf32>
    %cst_52 = arith.constant 0.000000e+00 : f32
    %171 = vector.broadcast %cst_52 : f32 to vector<8x64xf32>
    %172 = arith.subf %171, %170 : vector<8x64xf32>
    %173 = math.exp %172 : vector<8x64xf32>
    %cst_53 = arith.constant 1.000000e+00 : f32
    %174 = vector.broadcast %cst_53 : f32 to vector<8x64xf32>
    %175 = arith.addf %174, %173 : vector<8x64xf32>
    %cst_54 = arith.constant 1.000000e+00 : f32
    %176 = vector.broadcast %cst_54 : f32 to vector<8x64xf32>
    %177 = arith.divf %176, %175 : vector<8x64xf32>
    %178 = vector.extract_strided_slice %177 {offsets = [0, 0], sizes = [8, 32], strides = [1, 1]} : vector<8x64xf32> to vector<8x32xf32>
    %179 = vector.extract_strided_slice %177 {offsets = [0, 32], sizes = [8, 32], strides = [1, 1]} : vector<8x64xf32> to vector<8x32xf32>
    %180 = vector.extract_strided_slice %167 {offsets = [0, 128], sizes = [8, 32], strides = [1, 1]} : vector<8x192xf32> to vector<8x32xf32>
    %181 = vector.extract_strided_slice %167 {offsets = [0, 160], sizes = [8, 32], strides = [1, 1]} : vector<8x192xf32> to vector<8x32xf32>
    %182 = arith.mulf %178, %181 : vector<8x32xf32>
    %183 = arith.addf %180, %182 : vector<8x32xf32>
    %184 = math.tanh %183 : vector<8x32xf32>
    %cst_55 = arith.constant 1.000000e+00 : f32
    %185 = vector.broadcast %cst_55 : f32 to vector<8x32xf32>
    %186 = arith.subf %185, %179 : vector<8x32xf32>
    %187 = arith.mulf %186, %184 : vector<8x32xf32>
    %188 = arith.mulf %179, %164 : vector<8x32xf32>
    %189 = arith.addf %187, %188 : vector<8x32xf32>
    %190 = arith.truncf %189 : vector<8x32xf32> to vector<8x32xbf16>
    %cst_56 = arith.constant dense<0.000000e+00> : vector<8x192xf32>
    %191 = tpu.matmul %190, %7, %cst_56 {dimension_numbers = #tpu.dot_dimension_numbers<[1], [0], [0], [1], [0, 0, 1, 1], [], []>} : vector<8x32xbf16>, vector<32x192xbf16>, vector<8x192xf32> -> vector<8x192xf32>
    %192 = arith.addf %191, %15 : vector<8x192xf32>
    %193 = vector.extract_strided_slice %192 {offsets = [0, 0], sizes = [8, 64], strides = [1, 1]} : vector<8x192xf32> to vector<8x64xf32>
    %194 = vector.extract_strided_slice %192 {offsets = [0, 64], sizes = [8, 64], strides = [1, 1]} : vector<8x192xf32> to vector<8x64xf32>
    %195 = arith.addf %193, %194 : vector<8x64xf32>
    %cst_57 = arith.constant 0.000000e+00 : f32
    %196 = vector.broadcast %cst_57 : f32 to vector<8x64xf32>
    %197 = arith.subf %196, %195 : vector<8x64xf32>
    %198 = math.exp %197 : vector<8x64xf32>
    %cst_58 = arith.constant 1.000000e+00 : f32
    %199 = vector.broadcast %cst_58 : f32 to vector<8x64xf32>
    %200 = arith.addf %199, %198 : vector<8x64xf32>
    %cst_59 = arith.constant 1.000000e+00 : f32
    %201 = vector.broadcast %cst_59 : f32 to vector<8x64xf32>
    %202 = arith.divf %201, %200 : vector<8x64xf32>
    %203 = vector.extract_strided_slice %202 {offsets = [0, 0], sizes = [8, 32], strides = [1, 1]} : vector<8x64xf32> to vector<8x32xf32>
    %204 = vector.extract_strided_slice %202 {offsets = [0, 32], sizes = [8, 32], strides = [1, 1]} : vector<8x64xf32> to vector<8x32xf32>
    %205 = vector.extract_strided_slice %192 {offsets = [0, 128], sizes = [8, 32], strides = [1, 1]} : vector<8x192xf32> to vector<8x32xf32>
    %206 = vector.extract_strided_slice %192 {offsets = [0, 160], sizes = [8, 32], strides = [1, 1]} : vector<8x192xf32> to vector<8x32xf32>
    %207 = arith.mulf %203, %206 : vector<8x32xf32>
    %208 = arith.addf %205, %207 : vector<8x32xf32>
    %209 = math.tanh %208 : vector<8x32xf32>
    %cst_60 = arith.constant 1.000000e+00 : f32
    %210 = vector.broadcast %cst_60 : f32 to vector<8x32xf32>
    %211 = arith.subf %210, %204 : vector<8x32xf32>
    %212 = arith.mulf %211, %209 : vector<8x32xf32>
    %213 = arith.mulf %204, %189 : vector<8x32xf32>
    %214 = arith.addf %212, %213 : vector<8x32xf32>
    %c3_i32 = arith.constant 3 : i32
    %215 = arith.truncf %214 : vector<8x32xf32> to vector<8x32xbf16>
    %cst_61 = arith.constant dense<0.000000e+00> : vector<8x192xf32>
    %216 = tpu.matmul %215, %6, %cst_61 {dimension_numbers = #tpu.dot_dimension_numbers<[1], [0], [0], [1], [0, 0, 1, 1], [], []>} : vector<8x32xbf16>, vector<32x192xbf16>, vector<8x192xf32> -> vector<8x192xf32>
    %217 = arith.addf %216, %11 : vector<8x192xf32>
    %218 = vector.extract_strided_slice %217 {offsets = [0, 0], sizes = [8, 64], strides = [1, 1]} : vector<8x192xf32> to vector<8x64xf32>
    %219 = vector.extract_strided_slice %217 {offsets = [0, 64], sizes = [8, 64], strides = [1, 1]} : vector<8x192xf32> to vector<8x64xf32>
    %220 = arith.addf %218, %219 : vector<8x64xf32>
    %cst_62 = arith.constant 0.000000e+00 : f32
    %221 = vector.broadcast %cst_62 : f32 to vector<8x64xf32>
    %222 = arith.subf %221, %220 : vector<8x64xf32>
    %223 = math.exp %222 : vector<8x64xf32>
    %cst_63 = arith.constant 1.000000e+00 : f32
    %224 = vector.broadcast %cst_63 : f32 to vector<8x64xf32>
    %225 = arith.addf %224, %223 : vector<8x64xf32>
    %cst_64 = arith.constant 1.000000e+00 : f32
    %226 = vector.broadcast %cst_64 : f32 to vector<8x64xf32>
    %227 = arith.divf %226, %225 : vector<8x64xf32>
    %228 = vector.extract_strided_slice %227 {offsets = [0, 0], sizes = [8, 32], strides = [1, 1]} : vector<8x64xf32> to vector<8x32xf32>
    %229 = vector.extract_strided_slice %227 {offsets = [0, 32], sizes = [8, 32], strides = [1, 1]} : vector<8x64xf32> to vector<8x32xf32>
    %230 = vector.extract_strided_slice %217 {offsets = [0, 128], sizes = [8, 32], strides = [1, 1]} : vector<8x192xf32> to vector<8x32xf32>
    %231 = vector.extract_strided_slice %217 {offsets = [0, 160], sizes = [8, 32], strides = [1, 1]} : vector<8x192xf32> to vector<8x32xf32>
    %232 = arith.mulf %228, %231 : vector<8x32xf32>
    %233 = arith.addf %230, %232 : vector<8x32xf32>
    %234 = math.tanh %233 : vector<8x32xf32>
    %cst_65 = arith.constant 1.000000e+00 : f32
    %235 = vector.broadcast %cst_65 : f32 to vector<8x32xf32>
    %236 = arith.subf %235, %229 : vector<8x32xf32>
    %237 = arith.mulf %236, %234 : vector<8x32xf32>
    %238 = arith.mulf %229, %214 : vector<8x32xf32>
    %239 = arith.addf %237, %238 : vector<8x32xf32>
    %240 = arith.truncf %239 : vector<8x32xf32> to vector<8x32xbf16>
    %cst_66 = arith.constant dense<0.000000e+00> : vector<8x192xf32>
    %241 = tpu.matmul %240, %7, %cst_66 {dimension_numbers = #tpu.dot_dimension_numbers<[1], [0], [0], [1], [0, 0, 1, 1], [], []>} : vector<8x32xbf16>, vector<32x192xbf16>, vector<8x192xf32> -> vector<8x192xf32>
    %242 = arith.addf %241, %15 : vector<8x192xf32>
    %243 = vector.extract_strided_slice %242 {offsets = [0, 0], sizes = [8, 64], strides = [1, 1]} : vector<8x192xf32> to vector<8x64xf32>
    %244 = vector.extract_strided_slice %242 {offsets = [0, 64], sizes = [8, 64], strides = [1, 1]} : vector<8x192xf32> to vector<8x64xf32>
    %245 = arith.addf %243, %244 : vector<8x64xf32>
    %cst_67 = arith.constant 0.000000e+00 : f32
    %246 = vector.broadcast %cst_67 : f32 to vector<8x64xf32>
    %247 = arith.subf %246, %245 : vector<8x64xf32>
    %248 = math.exp %247 : vector<8x64xf32>
    %cst_68 = arith.constant 1.000000e+00 : f32
    %249 = vector.broadcast %cst_68 : f32 to vector<8x64xf32>
    %250 = arith.addf %249, %248 : vector<8x64xf32>
    %cst_69 = arith.constant 1.000000e+00 : f32
    %251 = vector.broadcast %cst_69 : f32 to vector<8x64xf32>
    %252 = arith.divf %251, %250 : vector<8x64xf32>
    %253 = vector.extract_strided_slice %252 {offsets = [0, 0], sizes = [8, 32], strides = [1, 1]} : vector<8x64xf32> to vector<8x32xf32>
    %254 = vector.extract_strided_slice %252 {offsets = [0, 32], sizes = [8, 32], strides = [1, 1]} : vector<8x64xf32> to vector<8x32xf32>
    %255 = vector.extract_strided_slice %242 {offsets = [0, 128], sizes = [8, 32], strides = [1, 1]} : vector<8x192xf32> to vector<8x32xf32>
    %256 = vector.extract_strided_slice %242 {offsets = [0, 160], sizes = [8, 32], strides = [1, 1]} : vector<8x192xf32> to vector<8x32xf32>
    %257 = arith.mulf %253, %256 : vector<8x32xf32>
    %258 = arith.addf %255, %257 : vector<8x32xf32>
    %259 = math.tanh %258 : vector<8x32xf32>
    %cst_70 = arith.constant 1.000000e+00 : f32
    %260 = vector.broadcast %cst_70 : f32 to vector<8x32xf32>
    %261 = arith.subf %260, %254 : vector<8x32xf32>
    %262 = arith.mulf %261, %259 : vector<8x32xf32>
    %263 = arith.mulf %254, %239 : vector<8x32xf32>
    %264 = arith.addf %262, %263 : vector<8x32xf32>
    %c4_i32 = arith.constant 4 : i32
    %265 = arith.truncf %264 : vector<8x32xf32> to vector<8x32xbf16>
    %cst_71 = arith.constant dense<0.000000e+00> : vector<8x192xf32>
    %266 = tpu.matmul %265, %6, %cst_71 {dimension_numbers = #tpu.dot_dimension_numbers<[1], [0], [0], [1], [0, 0, 1, 1], [], []>} : vector<8x32xbf16>, vector<32x192xbf16>, vector<8x192xf32> -> vector<8x192xf32>
    %267 = arith.addf %266, %11 : vector<8x192xf32>
    %268 = vector.extract_strided_slice %267 {offsets = [0, 0], sizes = [8, 64], strides = [1, 1]} : vector<8x192xf32> to vector<8x64xf32>
    %269 = vector.extract_strided_slice %267 {offsets = [0, 64], sizes = [8, 64], strides = [1, 1]} : vector<8x192xf32> to vector<8x64xf32>
    %270 = arith.addf %268, %269 : vector<8x64xf32>
    %cst_72 = arith.constant 0.000000e+00 : f32
    %271 = vector.broadcast %cst_72 : f32 to vector<8x64xf32>
    %272 = arith.subf %271, %270 : vector<8x64xf32>
    %273 = math.exp %272 : vector<8x64xf32>
    %cst_73 = arith.constant 1.000000e+00 : f32
    %274 = vector.broadcast %cst_73 : f32 to vector<8x64xf32>
    %275 = arith.addf %274, %273 : vector<8x64xf32>
    %cst_74 = arith.constant 1.000000e+00 : f32
    %276 = vector.broadcast %cst_74 : f32 to vector<8x64xf32>
    %277 = arith.divf %276, %275 : vector<8x64xf32>
    %278 = vector.extract_strided_slice %277 {offsets = [0, 0], sizes = [8, 32], strides = [1, 1]} : vector<8x64xf32> to vector<8x32xf32>
    %279 = vector.extract_strided_slice %277 {offsets = [0, 32], sizes = [8, 32], strides = [1, 1]} : vector<8x64xf32> to vector<8x32xf32>
    %280 = vector.extract_strided_slice %267 {offsets = [0, 128], sizes = [8, 32], strides = [1, 1]} : vector<8x192xf32> to vector<8x32xf32>
    %281 = vector.extract_strided_slice %267 {offsets = [0, 160], sizes = [8, 32], strides = [1, 1]} : vector<8x192xf32> to vector<8x32xf32>
    %282 = arith.mulf %278, %281 : vector<8x32xf32>
    %283 = arith.addf %280, %282 : vector<8x32xf32>
    %284 = math.tanh %283 : vector<8x32xf32>
    %cst_75 = arith.constant 1.000000e+00 : f32
    %285 = vector.broadcast %cst_75 : f32 to vector<8x32xf32>
    %286 = arith.subf %285, %279 : vector<8x32xf32>
    %287 = arith.mulf %286, %284 : vector<8x32xf32>
    %288 = arith.mulf %279, %264 : vector<8x32xf32>
    %289 = arith.addf %287, %288 : vector<8x32xf32>
    %290 = arith.truncf %289 : vector<8x32xf32> to vector<8x32xbf16>
    %cst_76 = arith.constant dense<0.000000e+00> : vector<8x192xf32>
    %291 = tpu.matmul %290, %7, %cst_76 {dimension_numbers = #tpu.dot_dimension_numbers<[1], [0], [0], [1], [0, 0, 1, 1], [], []>} : vector<8x32xbf16>, vector<32x192xbf16>, vector<8x192xf32> -> vector<8x192xf32>
    %292 = arith.addf %291, %15 : vector<8x192xf32>
    %293 = vector.extract_strided_slice %292 {offsets = [0, 0], sizes = [8, 64], strides = [1, 1]} : vector<8x192xf32> to vector<8x64xf32>
    %294 = vector.extract_strided_slice %292 {offsets = [0, 64], sizes = [8, 64], strides = [1, 1]} : vector<8x192xf32> to vector<8x64xf32>
    %295 = arith.addf %293, %294 : vector<8x64xf32>
    %cst_77 = arith.constant 0.000000e+00 : f32
    %296 = vector.broadcast %cst_77 : f32 to vector<8x64xf32>
    %297 = arith.subf %296, %295 : vector<8x64xf32>
    %298 = math.exp %297 : vector<8x64xf32>
    %cst_78 = arith.constant 1.000000e+00 : f32
    %299 = vector.broadcast %cst_78 : f32 to vector<8x64xf32>
    %300 = arith.addf %299, %298 : vector<8x64xf32>
    %cst_79 = arith.constant 1.000000e+00 : f32
    %301 = vector.broadcast %cst_79 : f32 to vector<8x64xf32>
    %302 = arith.divf %301, %300 : vector<8x64xf32>
    %303 = vector.extract_strided_slice %302 {offsets = [0, 0], sizes = [8, 32], strides = [1, 1]} : vector<8x64xf32> to vector<8x32xf32>
    %304 = vector.extract_strided_slice %302 {offsets = [0, 32], sizes = [8, 32], strides = [1, 1]} : vector<8x64xf32> to vector<8x32xf32>
    %305 = vector.extract_strided_slice %292 {offsets = [0, 128], sizes = [8, 32], strides = [1, 1]} : vector<8x192xf32> to vector<8x32xf32>
    %306 = vector.extract_strided_slice %292 {offsets = [0, 160], sizes = [8, 32], strides = [1, 1]} : vector<8x192xf32> to vector<8x32xf32>
    %307 = arith.mulf %303, %306 : vector<8x32xf32>
    %308 = arith.addf %305, %307 : vector<8x32xf32>
    %309 = math.tanh %308 : vector<8x32xf32>
    %cst_80 = arith.constant 1.000000e+00 : f32
    %310 = vector.broadcast %cst_80 : f32 to vector<8x32xf32>
    %311 = arith.subf %310, %304 : vector<8x32xf32>
    %312 = arith.mulf %311, %309 : vector<8x32xf32>
    %313 = arith.mulf %304, %289 : vector<8x32xf32>
    %314 = arith.addf %312, %313 : vector<8x32xf32>
    %c5_i32 = arith.constant 5 : i32
    %315 = arith.truncf %314 : vector<8x32xf32> to vector<8x32xbf16>
    %cst_81 = arith.constant dense<0.000000e+00> : vector<8x192xf32>
    %316 = tpu.matmul %315, %6, %cst_81 {dimension_numbers = #tpu.dot_dimension_numbers<[1], [0], [0], [1], [0, 0, 1, 1], [], []>} : vector<8x32xbf16>, vector<32x192xbf16>, vector<8x192xf32> -> vector<8x192xf32>
    %317 = arith.addf %316, %11 : vector<8x192xf32>
    %318 = vector.extract_strided_slice %317 {offsets = [0, 0], sizes = [8, 64], strides = [1, 1]} : vector<8x192xf32> to vector<8x64xf32>
    %319 = vector.extract_strided_slice %317 {offsets = [0, 64], sizes = [8, 64], strides = [1, 1]} : vector<8x192xf32> to vector<8x64xf32>
    %320 = arith.addf %318, %319 : vector<8x64xf32>
    %cst_82 = arith.constant 0.000000e+00 : f32
    %321 = vector.broadcast %cst_82 : f32 to vector<8x64xf32>
    %322 = arith.subf %321, %320 : vector<8x64xf32>
    %323 = math.exp %322 : vector<8x64xf32>
    %cst_83 = arith.constant 1.000000e+00 : f32
    %324 = vector.broadcast %cst_83 : f32 to vector<8x64xf32>
    %325 = arith.addf %324, %323 : vector<8x64xf32>
    %cst_84 = arith.constant 1.000000e+00 : f32
    %326 = vector.broadcast %cst_84 : f32 to vector<8x64xf32>
    %327 = arith.divf %326, %325 : vector<8x64xf32>
    %328 = vector.extract_strided_slice %327 {offsets = [0, 0], sizes = [8, 32], strides = [1, 1]} : vector<8x64xf32> to vector<8x32xf32>
    %329 = vector.extract_strided_slice %327 {offsets = [0, 32], sizes = [8, 32], strides = [1, 1]} : vector<8x64xf32> to vector<8x32xf32>
    %330 = vector.extract_strided_slice %317 {offsets = [0, 128], sizes = [8, 32], strides = [1, 1]} : vector<8x192xf32> to vector<8x32xf32>
    %331 = vector.extract_strided_slice %317 {offsets = [0, 160], sizes = [8, 32], strides = [1, 1]} : vector<8x192xf32> to vector<8x32xf32>
    %332 = arith.mulf %328, %331 : vector<8x32xf32>
    %333 = arith.addf %330, %332 : vector<8x32xf32>
    %334 = math.tanh %333 : vector<8x32xf32>
    %cst_85 = arith.constant 1.000000e+00 : f32
    %335 = vector.broadcast %cst_85 : f32 to vector<8x32xf32>
    %336 = arith.subf %335, %329 : vector<8x32xf32>
    %337 = arith.mulf %336, %334 : vector<8x32xf32>
    %338 = arith.mulf %329, %314 : vector<8x32xf32>
    %339 = arith.addf %337, %338 : vector<8x32xf32>
    %340 = arith.truncf %339 : vector<8x32xf32> to vector<8x32xbf16>
    %cst_86 = arith.constant dense<0.000000e+00> : vector<8x192xf32>
    %341 = tpu.matmul %340, %7, %cst_86 {dimension_numbers = #tpu.dot_dimension_numbers<[1], [0], [0], [1], [0, 0, 1, 1], [], []>} : vector<8x32xbf16>, vector<32x192xbf16>, vector<8x192xf32> -> vector<8x192xf32>
    %342 = arith.addf %341, %15 : vector<8x192xf32>
    %343 = vector.extract_strided_slice %342 {offsets = [0, 0], sizes = [8, 64], strides = [1, 1]} : vector<8x192xf32> to vector<8x64xf32>
    %344 = vector.extract_strided_slice %342 {offsets = [0, 64], sizes = [8, 64], strides = [1, 1]} : vector<8x192xf32> to vector<8x64xf32>
    %345 = arith.addf %343, %344 : vector<8x64xf32>
    %cst_87 = arith.constant 0.000000e+00 : f32
    %346 = vector.broadcast %cst_87 : f32 to vector<8x64xf32>
    %347 = arith.subf %346, %345 : vector<8x64xf32>
    %348 = math.exp %347 : vector<8x64xf32>
    %cst_88 = arith.constant 1.000000e+00 : f32
    %349 = vector.broadcast %cst_88 : f32 to vector<8x64xf32>
    %350 = arith.addf %349, %348 : vector<8x64xf32>
    %cst_89 = arith.constant 1.000000e+00 : f32
    %351 = vector.broadcast %cst_89 : f32 to vector<8x64xf32>
    %352 = arith.divf %351, %350 : vector<8x64xf32>
    %353 = vector.extract_strided_slice %352 {offsets = [0, 0], sizes = [8, 32], strides = [1, 1]} : vector<8x64xf32> to vector<8x32xf32>
    %354 = vector.extract_strided_slice %352 {offsets = [0, 32], sizes = [8, 32], strides = [1, 1]} : vector<8x64xf32> to vector<8x32xf32>
    %355 = vector.extract_strided_slice %342 {offsets = [0, 128], sizes = [8, 32], strides = [1, 1]} : vector<8x192xf32> to vector<8x32xf32>
    %356 = vector.extract_strided_slice %342 {offsets = [0, 160], sizes = [8, 32], strides = [1, 1]} : vector<8x192xf32> to vector<8x32xf32>
    %357 = arith.mulf %353, %356 : vector<8x32xf32>
    %358 = arith.addf %355, %357 : vector<8x32xf32>
    %359 = math.tanh %358 : vector<8x32xf32>
    %cst_90 = arith.constant 1.000000e+00 : f32
    %360 = vector.broadcast %cst_90 : f32 to vector<8x32xf32>
    %361 = arith.subf %360, %354 : vector<8x32xf32>
    %362 = arith.mulf %361, %359 : vector<8x32xf32>
    %363 = arith.mulf %354, %339 : vector<8x32xf32>
    %364 = arith.addf %362, %363 : vector<8x32xf32>
    %c6_i32 = arith.constant 6 : i32
    %365 = arith.truncf %364 : vector<8x32xf32> to vector<8x32xbf16>
    %cst_91 = arith.constant dense<0.000000e+00> : vector<8x192xf32>
    %366 = tpu.matmul %365, %6, %cst_91 {dimension_numbers = #tpu.dot_dimension_numbers<[1], [0], [0], [1], [0, 0, 1, 1], [], []>} : vector<8x32xbf16>, vector<32x192xbf16>, vector<8x192xf32> -> vector<8x192xf32>
    %367 = arith.addf %366, %11 : vector<8x192xf32>
    %368 = vector.extract_strided_slice %367 {offsets = [0, 0], sizes = [8, 64], strides = [1, 1]} : vector<8x192xf32> to vector<8x64xf32>
    %369 = vector.extract_strided_slice %367 {offsets = [0, 64], sizes = [8, 64], strides = [1, 1]} : vector<8x192xf32> to vector<8x64xf32>
    %370 = arith.addf %368, %369 : vector<8x64xf32>
    %cst_92 = arith.constant 0.000000e+00 : f32
    %371 = vector.broadcast %cst_92 : f32 to vector<8x64xf32>
    %372 = arith.subf %371, %370 : vector<8x64xf32>
    %373 = math.exp %372 : vector<8x64xf32>
    %cst_93 = arith.constant 1.000000e+00 : f32
    %374 = vector.broadcast %cst_93 : f32 to vector<8x64xf32>
    %375 = arith.addf %374, %373 : vector<8x64xf32>
    %cst_94 = arith.constant 1.000000e+00 : f32
    %376 = vector.broadcast %cst_94 : f32 to vector<8x64xf32>
    %377 = arith.divf %376, %375 : vector<8x64xf32>
    %378 = vector.extract_strided_slice %377 {offsets = [0, 0], sizes = [8, 32], strides = [1, 1]} : vector<8x64xf32> to vector<8x32xf32>
    %379 = vector.extract_strided_slice %377 {offsets = [0, 32], sizes = [8, 32], strides = [1, 1]} : vector<8x64xf32> to vector<8x32xf32>
    %380 = vector.extract_strided_slice %367 {offsets = [0, 128], sizes = [8, 32], strides = [1, 1]} : vector<8x192xf32> to vector<8x32xf32>
    %381 = vector.extract_strided_slice %367 {offsets = [0, 160], sizes = [8, 32], strides = [1, 1]} : vector<8x192xf32> to vector<8x32xf32>
    %382 = arith.mulf %378, %381 : vector<8x32xf32>
    %383 = arith.addf %380, %382 : vector<8x32xf32>
    %384 = math.tanh %383 : vector<8x32xf32>
    %cst_95 = arith.constant 1.000000e+00 : f32
    %385 = vector.broadcast %cst_95 : f32 to vector<8x32xf32>
    %386 = arith.subf %385, %379 : vector<8x32xf32>
    %387 = arith.mulf %386, %384 : vector<8x32xf32>
    %388 = arith.mulf %379, %364 : vector<8x32xf32>
    %389 = arith.addf %387, %388 : vector<8x32xf32>
    %390 = arith.truncf %389 : vector<8x32xf32> to vector<8x32xbf16>
    %cst_96 = arith.constant dense<0.000000e+00> : vector<8x192xf32>
    %391 = tpu.matmul %390, %7, %cst_96 {dimension_numbers = #tpu.dot_dimension_numbers<[1], [0], [0], [1], [0, 0, 1, 1], [], []>} : vector<8x32xbf16>, vector<32x192xbf16>, vector<8x192xf32> -> vector<8x192xf32>
    %392 = arith.addf %391, %15 : vector<8x192xf32>
    %393 = vector.extract_strided_slice %392 {offsets = [0, 0], sizes = [8, 64], strides = [1, 1]} : vector<8x192xf32> to vector<8x64xf32>
    %394 = vector.extract_strided_slice %392 {offsets = [0, 64], sizes = [8, 64], strides = [1, 1]} : vector<8x192xf32> to vector<8x64xf32>
    %395 = arith.addf %393, %394 : vector<8x64xf32>
    %cst_97 = arith.constant 0.000000e+00 : f32
    %396 = vector.broadcast %cst_97 : f32 to vector<8x64xf32>
    %397 = arith.subf %396, %395 : vector<8x64xf32>
    %398 = math.exp %397 : vector<8x64xf32>
    %cst_98 = arith.constant 1.000000e+00 : f32
    %399 = vector.broadcast %cst_98 : f32 to vector<8x64xf32>
    %400 = arith.addf %399, %398 : vector<8x64xf32>
    %cst_99 = arith.constant 1.000000e+00 : f32
    %401 = vector.broadcast %cst_99 : f32 to vector<8x64xf32>
    %402 = arith.divf %401, %400 : vector<8x64xf32>
    %403 = vector.extract_strided_slice %402 {offsets = [0, 0], sizes = [8, 32], strides = [1, 1]} : vector<8x64xf32> to vector<8x32xf32>
    %404 = vector.extract_strided_slice %402 {offsets = [0, 32], sizes = [8, 32], strides = [1, 1]} : vector<8x64xf32> to vector<8x32xf32>
    %405 = vector.extract_strided_slice %392 {offsets = [0, 128], sizes = [8, 32], strides = [1, 1]} : vector<8x192xf32> to vector<8x32xf32>
    %406 = vector.extract_strided_slice %392 {offsets = [0, 160], sizes = [8, 32], strides = [1, 1]} : vector<8x192xf32> to vector<8x32xf32>
    %407 = arith.mulf %403, %406 : vector<8x32xf32>
    %408 = arith.addf %405, %407 : vector<8x32xf32>
    %409 = math.tanh %408 : vector<8x32xf32>
    %cst_100 = arith.constant 1.000000e+00 : f32
    %410 = vector.broadcast %cst_100 : f32 to vector<8x32xf32>
    %411 = arith.subf %410, %404 : vector<8x32xf32>
    %412 = arith.mulf %411, %409 : vector<8x32xf32>
    %413 = arith.mulf %404, %389 : vector<8x32xf32>
    %414 = arith.addf %412, %413 : vector<8x32xf32>
    %c7_i32 = arith.constant 7 : i32
    %415 = arith.truncf %414 : vector<8x32xf32> to vector<8x32xbf16>
    %cst_101 = arith.constant dense<0.000000e+00> : vector<8x192xf32>
    %416 = tpu.matmul %415, %6, %cst_101 {dimension_numbers = #tpu.dot_dimension_numbers<[1], [0], [0], [1], [0, 0, 1, 1], [], []>} : vector<8x32xbf16>, vector<32x192xbf16>, vector<8x192xf32> -> vector<8x192xf32>
    %417 = arith.addf %416, %11 : vector<8x192xf32>
    %418 = vector.extract_strided_slice %417 {offsets = [0, 0], sizes = [8, 64], strides = [1, 1]} : vector<8x192xf32> to vector<8x64xf32>
    %419 = vector.extract_strided_slice %417 {offsets = [0, 64], sizes = [8, 64], strides = [1, 1]} : vector<8x192xf32> to vector<8x64xf32>
    %420 = arith.addf %418, %419 : vector<8x64xf32>
    %cst_102 = arith.constant 0.000000e+00 : f32
    %421 = vector.broadcast %cst_102 : f32 to vector<8x64xf32>
    %422 = arith.subf %421, %420 : vector<8x64xf32>
    %423 = math.exp %422 : vector<8x64xf32>
    %cst_103 = arith.constant 1.000000e+00 : f32
    %424 = vector.broadcast %cst_103 : f32 to vector<8x64xf32>
    %425 = arith.addf %424, %423 : vector<8x64xf32>
    %cst_104 = arith.constant 1.000000e+00 : f32
    %426 = vector.broadcast %cst_104 : f32 to vector<8x64xf32>
    %427 = arith.divf %426, %425 : vector<8x64xf32>
    %428 = vector.extract_strided_slice %427 {offsets = [0, 0], sizes = [8, 32], strides = [1, 1]} : vector<8x64xf32> to vector<8x32xf32>
    %429 = vector.extract_strided_slice %427 {offsets = [0, 32], sizes = [8, 32], strides = [1, 1]} : vector<8x64xf32> to vector<8x32xf32>
    %430 = vector.extract_strided_slice %417 {offsets = [0, 128], sizes = [8, 32], strides = [1, 1]} : vector<8x192xf32> to vector<8x32xf32>
    %431 = vector.extract_strided_slice %417 {offsets = [0, 160], sizes = [8, 32], strides = [1, 1]} : vector<8x192xf32> to vector<8x32xf32>
    %432 = arith.mulf %428, %431 : vector<8x32xf32>
    %433 = arith.addf %430, %432 : vector<8x32xf32>
    %434 = math.tanh %433 : vector<8x32xf32>
    %cst_105 = arith.constant 1.000000e+00 : f32
    %435 = vector.broadcast %cst_105 : f32 to vector<8x32xf32>
    %436 = arith.subf %435, %429 : vector<8x32xf32>
    %437 = arith.mulf %436, %434 : vector<8x32xf32>
    %438 = arith.mulf %429, %414 : vector<8x32xf32>
    %439 = arith.addf %437, %438 : vector<8x32xf32>
    %440 = arith.truncf %439 : vector<8x32xf32> to vector<8x32xbf16>
    %cst_106 = arith.constant dense<0.000000e+00> : vector<8x192xf32>
    %441 = tpu.matmul %440, %7, %cst_106 {dimension_numbers = #tpu.dot_dimension_numbers<[1], [0], [0], [1], [0, 0, 1, 1], [], []>} : vector<8x32xbf16>, vector<32x192xbf16>, vector<8x192xf32> -> vector<8x192xf32>
    %442 = arith.addf %441, %15 : vector<8x192xf32>
    %443 = vector.extract_strided_slice %442 {offsets = [0, 0], sizes = [8, 64], strides = [1, 1]} : vector<8x192xf32> to vector<8x64xf32>
    %444 = vector.extract_strided_slice %442 {offsets = [0, 64], sizes = [8, 64], strides = [1, 1]} : vector<8x192xf32> to vector<8x64xf32>
    %445 = arith.addf %443, %444 : vector<8x64xf32>
    %cst_107 = arith.constant 0.000000e+00 : f32
    %446 = vector.broadcast %cst_107 : f32 to vector<8x64xf32>
    %447 = arith.subf %446, %445 : vector<8x64xf32>
    %448 = math.exp %447 : vector<8x64xf32>
    %cst_108 = arith.constant 1.000000e+00 : f32
    %449 = vector.broadcast %cst_108 : f32 to vector<8x64xf32>
    %450 = arith.addf %449, %448 : vector<8x64xf32>
    %cst_109 = arith.constant 1.000000e+00 : f32
    %451 = vector.broadcast %cst_109 : f32 to vector<8x64xf32>
    %452 = arith.divf %451, %450 : vector<8x64xf32>
    %453 = vector.extract_strided_slice %452 {offsets = [0, 0], sizes = [8, 32], strides = [1, 1]} : vector<8x64xf32> to vector<8x32xf32>
    %454 = vector.extract_strided_slice %452 {offsets = [0, 32], sizes = [8, 32], strides = [1, 1]} : vector<8x64xf32> to vector<8x32xf32>
    %455 = vector.extract_strided_slice %442 {offsets = [0, 128], sizes = [8, 32], strides = [1, 1]} : vector<8x192xf32> to vector<8x32xf32>
    %456 = vector.extract_strided_slice %442 {offsets = [0, 160], sizes = [8, 32], strides = [1, 1]} : vector<8x192xf32> to vector<8x32xf32>
    %457 = arith.mulf %453, %456 : vector<8x32xf32>
    %458 = arith.addf %455, %457 : vector<8x32xf32>
    %459 = math.tanh %458 : vector<8x32xf32>
    %cst_110 = arith.constant 1.000000e+00 : f32
    %460 = vector.broadcast %cst_110 : f32 to vector<8x32xf32>
    %461 = arith.subf %460, %454 : vector<8x32xf32>
    %462 = arith.mulf %461, %459 : vector<8x32xf32>
    %463 = arith.mulf %454, %439 : vector<8x32xf32>
    %464 = arith.addf %462, %463 : vector<8x32xf32>
    %c8_i32 = arith.constant 8 : i32
    %465 = arith.truncf %464 : vector<8x32xf32> to vector<8x32xbf16>
    %cst_111 = arith.constant dense<0.000000e+00> : vector<8x192xf32>
    %466 = tpu.matmul %465, %6, %cst_111 {dimension_numbers = #tpu.dot_dimension_numbers<[1], [0], [0], [1], [0, 0, 1, 1], [], []>} : vector<8x32xbf16>, vector<32x192xbf16>, vector<8x192xf32> -> vector<8x192xf32>
    %467 = arith.addf %466, %11 : vector<8x192xf32>
    %468 = vector.extract_strided_slice %467 {offsets = [0, 0], sizes = [8, 64], strides = [1, 1]} : vector<8x192xf32> to vector<8x64xf32>
    %469 = vector.extract_strided_slice %467 {offsets = [0, 64], sizes = [8, 64], strides = [1, 1]} : vector<8x192xf32> to vector<8x64xf32>
    %470 = arith.addf %468, %469 : vector<8x64xf32>
    %cst_112 = arith.constant 0.000000e+00 : f32
    %471 = vector.broadcast %cst_112 : f32 to vector<8x64xf32>
    %472 = arith.subf %471, %470 : vector<8x64xf32>
    %473 = math.exp %472 : vector<8x64xf32>
    %cst_113 = arith.constant 1.000000e+00 : f32
    %474 = vector.broadcast %cst_113 : f32 to vector<8x64xf32>
    %475 = arith.addf %474, %473 : vector<8x64xf32>
    %cst_114 = arith.constant 1.000000e+00 : f32
    %476 = vector.broadcast %cst_114 : f32 to vector<8x64xf32>
    %477 = arith.divf %476, %475 : vector<8x64xf32>
    %478 = vector.extract_strided_slice %477 {offsets = [0, 0], sizes = [8, 32], strides = [1, 1]} : vector<8x64xf32> to vector<8x32xf32>
    %479 = vector.extract_strided_slice %477 {offsets = [0, 32], sizes = [8, 32], strides = [1, 1]} : vector<8x64xf32> to vector<8x32xf32>
    %480 = vector.extract_strided_slice %467 {offsets = [0, 128], sizes = [8, 32], strides = [1, 1]} : vector<8x192xf32> to vector<8x32xf32>
    %481 = vector.extract_strided_slice %467 {offsets = [0, 160], sizes = [8, 32], strides = [1, 1]} : vector<8x192xf32> to vector<8x32xf32>
    %482 = arith.mulf %478, %481 : vector<8x32xf32>
    %483 = arith.addf %480, %482 : vector<8x32xf32>
    %484 = math.tanh %483 : vector<8x32xf32>
    %cst_115 = arith.constant 1.000000e+00 : f32
    %485 = vector.broadcast %cst_115 : f32 to vector<8x32xf32>
    %486 = arith.subf %485, %479 : vector<8x32xf32>
    %487 = arith.mulf %486, %484 : vector<8x32xf32>
    %488 = arith.mulf %479, %464 : vector<8x32xf32>
    %489 = arith.addf %487, %488 : vector<8x32xf32>
    %490 = arith.truncf %489 : vector<8x32xf32> to vector<8x32xbf16>
    %cst_116 = arith.constant dense<0.000000e+00> : vector<8x192xf32>
    %491 = tpu.matmul %490, %7, %cst_116 {dimension_numbers = #tpu.dot_dimension_numbers<[1], [0], [0], [1], [0, 0, 1, 1], [], []>} : vector<8x32xbf16>, vector<32x192xbf16>, vector<8x192xf32> -> vector<8x192xf32>
    %492 = arith.addf %491, %15 : vector<8x192xf32>
    %493 = vector.extract_strided_slice %492 {offsets = [0, 0], sizes = [8, 64], strides = [1, 1]} : vector<8x192xf32> to vector<8x64xf32>
    %494 = vector.extract_strided_slice %492 {offsets = [0, 64], sizes = [8, 64], strides = [1, 1]} : vector<8x192xf32> to vector<8x64xf32>
    %495 = arith.addf %493, %494 : vector<8x64xf32>
    %cst_117 = arith.constant 0.000000e+00 : f32
    %496 = vector.broadcast %cst_117 : f32 to vector<8x64xf32>
    %497 = arith.subf %496, %495 : vector<8x64xf32>
    %498 = math.exp %497 : vector<8x64xf32>
    %cst_118 = arith.constant 1.000000e+00 : f32
    %499 = vector.broadcast %cst_118 : f32 to vector<8x64xf32>
    %500 = arith.addf %499, %498 : vector<8x64xf32>
    %cst_119 = arith.constant 1.000000e+00 : f32
    %501 = vector.broadcast %cst_119 : f32 to vector<8x64xf32>
    %502 = arith.divf %501, %500 : vector<8x64xf32>
    %503 = vector.extract_strided_slice %502 {offsets = [0, 0], sizes = [8, 32], strides = [1, 1]} : vector<8x64xf32> to vector<8x32xf32>
    %504 = vector.extract_strided_slice %502 {offsets = [0, 32], sizes = [8, 32], strides = [1, 1]} : vector<8x64xf32> to vector<8x32xf32>
    %505 = vector.extract_strided_slice %492 {offsets = [0, 128], sizes = [8, 32], strides = [1, 1]} : vector<8x192xf32> to vector<8x32xf32>
    %506 = vector.extract_strided_slice %492 {offsets = [0, 160], sizes = [8, 32], strides = [1, 1]} : vector<8x192xf32> to vector<8x32xf32>
    %507 = arith.mulf %503, %506 : vector<8x32xf32>
    %508 = arith.addf %505, %507 : vector<8x32xf32>
    %509 = math.tanh %508 : vector<8x32xf32>
    %cst_120 = arith.constant 1.000000e+00 : f32
    %510 = vector.broadcast %cst_120 : f32 to vector<8x32xf32>
    %511 = arith.subf %510, %504 : vector<8x32xf32>
    %512 = arith.mulf %511, %509 : vector<8x32xf32>
    %513 = arith.mulf %504, %489 : vector<8x32xf32>
    %514 = arith.addf %512, %513 : vector<8x32xf32>
    %c9_i32 = arith.constant 9 : i32
    %515 = arith.truncf %514 : vector<8x32xf32> to vector<8x32xbf16>
    %cst_121 = arith.constant dense<0.000000e+00> : vector<8x192xf32>
    %516 = tpu.matmul %515, %6, %cst_121 {dimension_numbers = #tpu.dot_dimension_numbers<[1], [0], [0], [1], [0, 0, 1, 1], [], []>} : vector<8x32xbf16>, vector<32x192xbf16>, vector<8x192xf32> -> vector<8x192xf32>
    %517 = arith.addf %516, %11 : vector<8x192xf32>
    %518 = vector.extract_strided_slice %517 {offsets = [0, 0], sizes = [8, 64], strides = [1, 1]} : vector<8x192xf32> to vector<8x64xf32>
    %519 = vector.extract_strided_slice %517 {offsets = [0, 64], sizes = [8, 64], strides = [1, 1]} : vector<8x192xf32> to vector<8x64xf32>
    %520 = arith.addf %518, %519 : vector<8x64xf32>
    %cst_122 = arith.constant 0.000000e+00 : f32
    %521 = vector.broadcast %cst_122 : f32 to vector<8x64xf32>
    %522 = arith.subf %521, %520 : vector<8x64xf32>
    %523 = math.exp %522 : vector<8x64xf32>
    %cst_123 = arith.constant 1.000000e+00 : f32
    %524 = vector.broadcast %cst_123 : f32 to vector<8x64xf32>
    %525 = arith.addf %524, %523 : vector<8x64xf32>
    %cst_124 = arith.constant 1.000000e+00 : f32
    %526 = vector.broadcast %cst_124 : f32 to vector<8x64xf32>
    %527 = arith.divf %526, %525 : vector<8x64xf32>
    %528 = vector.extract_strided_slice %527 {offsets = [0, 0], sizes = [8, 32], strides = [1, 1]} : vector<8x64xf32> to vector<8x32xf32>
    %529 = vector.extract_strided_slice %527 {offsets = [0, 32], sizes = [8, 32], strides = [1, 1]} : vector<8x64xf32> to vector<8x32xf32>
    %530 = vector.extract_strided_slice %517 {offsets = [0, 128], sizes = [8, 32], strides = [1, 1]} : vector<8x192xf32> to vector<8x32xf32>
    %531 = vector.extract_strided_slice %517 {offsets = [0, 160], sizes = [8, 32], strides = [1, 1]} : vector<8x192xf32> to vector<8x32xf32>
    %532 = arith.mulf %528, %531 : vector<8x32xf32>
    %533 = arith.addf %530, %532 : vector<8x32xf32>
    %534 = math.tanh %533 : vector<8x32xf32>
    %cst_125 = arith.constant 1.000000e+00 : f32
    %535 = vector.broadcast %cst_125 : f32 to vector<8x32xf32>
    %536 = arith.subf %535, %529 : vector<8x32xf32>
    %537 = arith.mulf %536, %534 : vector<8x32xf32>
    %538 = arith.mulf %529, %514 : vector<8x32xf32>
    %539 = arith.addf %537, %538 : vector<8x32xf32>
    %540 = arith.truncf %539 : vector<8x32xf32> to vector<8x32xbf16>
    %cst_126 = arith.constant dense<0.000000e+00> : vector<8x192xf32>
    %541 = tpu.matmul %540, %7, %cst_126 {dimension_numbers = #tpu.dot_dimension_numbers<[1], [0], [0], [1], [0, 0, 1, 1], [], []>} : vector<8x32xbf16>, vector<32x192xbf16>, vector<8x192xf32> -> vector<8x192xf32>
    %542 = arith.addf %541, %15 : vector<8x192xf32>
    %543 = vector.extract_strided_slice %542 {offsets = [0, 0], sizes = [8, 64], strides = [1, 1]} : vector<8x192xf32> to vector<8x64xf32>
    %544 = vector.extract_strided_slice %542 {offsets = [0, 64], sizes = [8, 64], strides = [1, 1]} : vector<8x192xf32> to vector<8x64xf32>
    %545 = arith.addf %543, %544 : vector<8x64xf32>
    %cst_127 = arith.constant 0.000000e+00 : f32
    %546 = vector.broadcast %cst_127 : f32 to vector<8x64xf32>
    %547 = arith.subf %546, %545 : vector<8x64xf32>
    %548 = math.exp %547 : vector<8x64xf32>
    %cst_128 = arith.constant 1.000000e+00 : f32
    %549 = vector.broadcast %cst_128 : f32 to vector<8x64xf32>
    %550 = arith.addf %549, %548 : vector<8x64xf32>
    %cst_129 = arith.constant 1.000000e+00 : f32
    %551 = vector.broadcast %cst_129 : f32 to vector<8x64xf32>
    %552 = arith.divf %551, %550 : vector<8x64xf32>
    %553 = vector.extract_strided_slice %552 {offsets = [0, 0], sizes = [8, 32], strides = [1, 1]} : vector<8x64xf32> to vector<8x32xf32>
    %554 = vector.extract_strided_slice %552 {offsets = [0, 32], sizes = [8, 32], strides = [1, 1]} : vector<8x64xf32> to vector<8x32xf32>
    %555 = vector.extract_strided_slice %542 {offsets = [0, 128], sizes = [8, 32], strides = [1, 1]} : vector<8x192xf32> to vector<8x32xf32>
    %556 = vector.extract_strided_slice %542 {offsets = [0, 160], sizes = [8, 32], strides = [1, 1]} : vector<8x192xf32> to vector<8x32xf32>
    %557 = arith.mulf %553, %556 : vector<8x32xf32>
    %558 = arith.addf %555, %557 : vector<8x32xf32>
    %559 = math.tanh %558 : vector<8x32xf32>
    %cst_130 = arith.constant 1.000000e+00 : f32
    %560 = vector.broadcast %cst_130 : f32 to vector<8x32xf32>
    %561 = arith.subf %560, %554 : vector<8x32xf32>
    %562 = arith.mulf %561, %559 : vector<8x32xf32>
    %563 = arith.mulf %554, %539 : vector<8x32xf32>
    %564 = arith.addf %562, %563 : vector<8x32xf32>
    %565 = vector.shape_cast %64 : vector<8x1xi1> to vector<8x1xi1>
    %566 = vector.broadcast %565 : vector<8x1xi1> to vector<8x32xi1>
    %567 = arith.select %566, %564, %49 : vector<8x32xi1>, vector<8x32xf32>
    %cst_131 = arith.constant dense<0.000000e+00> : vector<32x32xf32>
    %568 = tpu.matmul %22, %567, %cst_131 {dimension_numbers = #tpu.dot_dimension_numbers<[1], [0], [0], [1], [0, 0, 1, 1], [], []>, precision = #tpu.contract_precision<fp32>} : vector<32x8xf32>, vector<8x32xf32>, vector<32x32xf32> -> vector<32x32xf32>
    %569 = vector.extract_strided_slice %568 {offsets = [0, 0], sizes = [16, 32], strides = [1, 1]} : vector<32x32xf32> to vector<16x32xf32>
    %570 = vector.extract_strided_slice %568 {offsets = [16, 0], sizes = [16, 32], strides = [1, 1]} : vector<32x32xf32> to vector<16x32xf32>
    %571 = arith.subf %569, %570 : vector<16x32xf32>
    %572 = math.absf %571 : vector<16x32xf32>
    %cst_132 = arith.constant dense<0.000000e+00> : vector<8x32xf32>
    %573 = tpu.matmul %27, %572, %cst_132 {dimension_numbers = #tpu.dot_dimension_numbers<[1], [0], [0], [1], [0, 0, 1, 1], [], []>, precision = #tpu.contract_precision<fp32>} : vector<8x16xf32>, vector<16x32xf32>, vector<8x32xf32> -> vector<8x32xf32>
    %c96 = arith.constant 96 : index
    %c0_133 = arith.constant 0 : index
    %574 = vector.load %arg3[%c96, %c0_133] : memref<248x32xf32, #tpu.memory_space<vmem>>, vector<32x32xf32>
    %c128 = arith.constant 128 : index
    %c0_134 = arith.constant 0 : index
    %575 = vector.load %arg3[%c128, %c0_134] : memref<248x32xf32, #tpu.memory_space<vmem>>, vector<32x32xf32>
    %c160 = arith.constant 160 : index
    %c0_135 = arith.constant 0 : index
    %576 = vector.load %arg3[%c160, %c0_135] : memref<248x32xf32, #tpu.memory_space<vmem>>, vector<1x32xf32>
    %cst_136 = arith.constant dense<0.000000e+00> : vector<8x32xf32>
    %577 = tpu.matmul %567, %574, %cst_136 {dimension_numbers = #tpu.dot_dimension_numbers<[1], [0], [0], [1], [0, 0, 1, 1], [], []>, precision = #tpu.contract_precision<fp32>} : vector<8x32xf32>, vector<32x32xf32>, vector<8x32xf32> -> vector<8x32xf32>
    %cst_137 = arith.constant dense<0.000000e+00> : vector<8x32xf32>
    %578 = tpu.matmul %573, %575, %cst_137 {dimension_numbers = #tpu.dot_dimension_numbers<[1], [0], [0], [1], [0, 0, 1, 1], [], []>, precision = #tpu.contract_precision<fp32>} : vector<8x32xf32>, vector<32x32xf32>, vector<8x32xf32> -> vector<8x32xf32>
    %579 = arith.addf %577, %578 : vector<8x32xf32>
    %580 = vector.broadcast %576 : vector<1x32xf32> to vector<8x32xf32>
    %581 = arith.addf %579, %580 : vector<8x32xf32>
    %cst_138 = arith.constant 0.000000e+00 : f32
    %582 = vector.broadcast %cst_138 : f32 to vector<8x32xf32>
    %583 = arith.maximumf %581, %582 : vector<8x32xf32>
    %cst_139 = arith.constant dense<0.000000e+00> : vector<8x1xf32>
    %584 = tpu.matmul %583, %2, %cst_139 {dimension_numbers = #tpu.dot_dimension_numbers<[1], [0], [0], [1], [0, 0, 1, 1], [], []>, precision = #tpu.contract_precision<fp32>} : vector<8x32xf32>, vector<32x1xf32>, vector<8x1xf32> -> vector<8x1xf32>
    %585 = vector.broadcast %3 : vector<1x1xf32> to vector<8x1xf32>
    %586 = arith.addf %584, %585 : vector<8x1xf32>
    %cst_140 = arith.constant 0.000000e+00 : f32
    %587 = vector.broadcast %cst_140 : f32 to vector<8x1xf32>
    %588 = arith.maximumf %586, %587 : vector<8x1xf32>
    %589 = math.absf %586 : vector<8x1xf32>
    %cst_141 = arith.constant 0.000000e+00 : f32
    %590 = vector.broadcast %cst_141 : f32 to vector<8x1xf32>
    %591 = arith.subf %590, %589 : vector<8x1xf32>
    %592 = math.exp %591 : vector<8x1xf32>
    %cst_142 = arith.constant 1.000000e+00 : f32
    %593 = vector.broadcast %cst_142 : f32 to vector<8x1xf32>
    %594 = arith.addf %593, %592 : vector<8x1xf32>
    %595 = math.log %594 : vector<8x1xf32>
    %596 = arith.addf %588, %595 : vector<8x1xf32>
    %cst_143 = arith.constant 5.000000e-03 : f32
    %597 = vector.broadcast %cst_143 : f32 to vector<8x1xf32>
    %598 = arith.cmpf olt, %596, %597 : vector<8x1xf32>
    %c0_i32_144 = arith.constant 0 : i32
    %599 = arith.truncf %583 : vector<8x32xf32> to vector<8x32xbf16>
    %cst_145 = arith.constant dense<0.000000e+00> : vector<8x192xf32>
    %600 = tpu.matmul %599, %6, %cst_145 {dimension_numbers = #tpu.dot_dimension_numbers<[1], [0], [0], [1], [0, 0, 1, 1], [], []>} : vector<8x32xbf16>, vector<32x192xbf16>, vector<8x192xf32> -> vector<8x192xf32>
    %601 = arith.addf %600, %11 : vector<8x192xf32>
    %602 = vector.extract_strided_slice %601 {offsets = [0, 0], sizes = [8, 64], strides = [1, 1]} : vector<8x192xf32> to vector<8x64xf32>
    %603 = vector.extract_strided_slice %601 {offsets = [0, 64], sizes = [8, 64], strides = [1, 1]} : vector<8x192xf32> to vector<8x64xf32>
    %604 = arith.addf %602, %603 : vector<8x64xf32>
    %cst_146 = arith.constant 0.000000e+00 : f32
    %605 = vector.broadcast %cst_146 : f32 to vector<8x64xf32>
    %606 = arith.subf %605, %604 : vector<8x64xf32>
    %607 = math.exp %606 : vector<8x64xf32>
    %cst_147 = arith.constant 1.000000e+00 : f32
    %608 = vector.broadcast %cst_147 : f32 to vector<8x64xf32>
    %609 = arith.addf %608, %607 : vector<8x64xf32>
    %cst_148 = arith.constant 1.000000e+00 : f32
    %610 = vector.broadcast %cst_148 : f32 to vector<8x64xf32>
    %611 = arith.divf %610, %609 : vector<8x64xf32>
    %612 = vector.extract_strided_slice %611 {offsets = [0, 0], sizes = [8, 32], strides = [1, 1]} : vector<8x64xf32> to vector<8x32xf32>
    %613 = vector.extract_strided_slice %611 {offsets = [0, 32], sizes = [8, 32], strides = [1, 1]} : vector<8x64xf32> to vector<8x32xf32>
    %614 = vector.extract_strided_slice %601 {offsets = [0, 128], sizes = [8, 32], strides = [1, 1]} : vector<8x192xf32> to vector<8x32xf32>
    %615 = vector.extract_strided_slice %601 {offsets = [0, 160], sizes = [8, 32], strides = [1, 1]} : vector<8x192xf32> to vector<8x32xf32>
    %616 = arith.mulf %612, %615 : vector<8x32xf32>
    %617 = arith.addf %614, %616 : vector<8x32xf32>
    %618 = math.tanh %617 : vector<8x32xf32>
    %cst_149 = arith.constant 1.000000e+00 : f32
    %619 = vector.broadcast %cst_149 : f32 to vector<8x32xf32>
    %620 = arith.subf %619, %613 : vector<8x32xf32>
    %621 = arith.mulf %620, %618 : vector<8x32xf32>
    %622 = arith.mulf %613, %583 : vector<8x32xf32>
    %623 = arith.addf %621, %622 : vector<8x32xf32>
    %624 = arith.truncf %623 : vector<8x32xf32> to vector<8x32xbf16>
    %cst_150 = arith.constant dense<0.000000e+00> : vector<8x192xf32>
    %625 = tpu.matmul %624, %7, %cst_150 {dimension_numbers = #tpu.dot_dimension_numbers<[1], [0], [0], [1], [0, 0, 1, 1], [], []>} : vector<8x32xbf16>, vector<32x192xbf16>, vector<8x192xf32> -> vector<8x192xf32>
    %626 = arith.addf %625, %15 : vector<8x192xf32>
    %627 = vector.extract_strided_slice %626 {offsets = [0, 0], sizes = [8, 64], strides = [1, 1]} : vector<8x192xf32> to vector<8x64xf32>
    %628 = vector.extract_strided_slice %626 {offsets = [0, 64], sizes = [8, 64], strides = [1, 1]} : vector<8x192xf32> to vector<8x64xf32>
    %629 = arith.addf %627, %628 : vector<8x64xf32>
    %cst_151 = arith.constant 0.000000e+00 : f32
    %630 = vector.broadcast %cst_151 : f32 to vector<8x64xf32>
    %631 = arith.subf %630, %629 : vector<8x64xf32>
    %632 = math.exp %631 : vector<8x64xf32>
    %cst_152 = arith.constant 1.000000e+00 : f32
    %633 = vector.broadcast %cst_152 : f32 to vector<8x64xf32>
    %634 = arith.addf %633, %632 : vector<8x64xf32>
    %cst_153 = arith.constant 1.000000e+00 : f32
    %635 = vector.broadcast %cst_153 : f32 to vector<8x64xf32>
    %636 = arith.divf %635, %634 : vector<8x64xf32>
    %637 = vector.extract_strided_slice %636 {offsets = [0, 0], sizes = [8, 32], strides = [1, 1]} : vector<8x64xf32> to vector<8x32xf32>
    %638 = vector.extract_strided_slice %636 {offsets = [0, 32], sizes = [8, 32], strides = [1, 1]} : vector<8x64xf32> to vector<8x32xf32>
    %639 = vector.extract_strided_slice %626 {offsets = [0, 128], sizes = [8, 32], strides = [1, 1]} : vector<8x192xf32> to vector<8x32xf32>
    %640 = vector.extract_strided_slice %626 {offsets = [0, 160], sizes = [8, 32], strides = [1, 1]} : vector<8x192xf32> to vector<8x32xf32>
    %641 = arith.mulf %637, %640 : vector<8x32xf32>
    %642 = arith.addf %639, %641 : vector<8x32xf32>
    %643 = math.tanh %642 : vector<8x32xf32>
    %cst_154 = arith.constant 1.000000e+00 : f32
    %644 = vector.broadcast %cst_154 : f32 to vector<8x32xf32>
    %645 = arith.subf %644, %638 : vector<8x32xf32>
    %646 = arith.mulf %645, %643 : vector<8x32xf32>
    %647 = arith.mulf %638, %623 : vector<8x32xf32>
    %648 = arith.addf %646, %647 : vector<8x32xf32>
    %c1_i32_155 = arith.constant 1 : i32
    %649 = arith.truncf %648 : vector<8x32xf32> to vector<8x32xbf16>
    %cst_156 = arith.constant dense<0.000000e+00> : vector<8x192xf32>
    %650 = tpu.matmul %649, %6, %cst_156 {dimension_numbers = #tpu.dot_dimension_numbers<[1], [0], [0], [1], [0, 0, 1, 1], [], []>} : vector<8x32xbf16>, vector<32x192xbf16>, vector<8x192xf32> -> vector<8x192xf32>
    %651 = arith.addf %650, %11 : vector<8x192xf32>
    %652 = vector.extract_strided_slice %651 {offsets = [0, 0], sizes = [8, 64], strides = [1, 1]} : vector<8x192xf32> to vector<8x64xf32>
    %653 = vector.extract_strided_slice %651 {offsets = [0, 64], sizes = [8, 64], strides = [1, 1]} : vector<8x192xf32> to vector<8x64xf32>
    %654 = arith.addf %652, %653 : vector<8x64xf32>
    %cst_157 = arith.constant 0.000000e+00 : f32
    %655 = vector.broadcast %cst_157 : f32 to vector<8x64xf32>
    %656 = arith.subf %655, %654 : vector<8x64xf32>
    %657 = math.exp %656 : vector<8x64xf32>
    %cst_158 = arith.constant 1.000000e+00 : f32
    %658 = vector.broadcast %cst_158 : f32 to vector<8x64xf32>
    %659 = arith.addf %658, %657 : vector<8x64xf32>
    %cst_159 = arith.constant 1.000000e+00 : f32
    %660 = vector.broadcast %cst_159 : f32 to vector<8x64xf32>
    %661 = arith.divf %660, %659 : vector<8x64xf32>
    %662 = vector.extract_strided_slice %661 {offsets = [0, 0], sizes = [8, 32], strides = [1, 1]} : vector<8x64xf32> to vector<8x32xf32>
    %663 = vector.extract_strided_slice %661 {offsets = [0, 32], sizes = [8, 32], strides = [1, 1]} : vector<8x64xf32> to vector<8x32xf32>
    %664 = vector.extract_strided_slice %651 {offsets = [0, 128], sizes = [8, 32], strides = [1, 1]} : vector<8x192xf32> to vector<8x32xf32>
    %665 = vector.extract_strided_slice %651 {offsets = [0, 160], sizes = [8, 32], strides = [1, 1]} : vector<8x192xf32> to vector<8x32xf32>
    %666 = arith.mulf %662, %665 : vector<8x32xf32>
    %667 = arith.addf %664, %666 : vector<8x32xf32>
    %668 = math.tanh %667 : vector<8x32xf32>
    %cst_160 = arith.constant 1.000000e+00 : f32
    %669 = vector.broadcast %cst_160 : f32 to vector<8x32xf32>
    %670 = arith.subf %669, %663 : vector<8x32xf32>
    %671 = arith.mulf %670, %668 : vector<8x32xf32>
    %672 = arith.mulf %663, %648 : vector<8x32xf32>
    %673 = arith.addf %671, %672 : vector<8x32xf32>
    %674 = arith.truncf %673 : vector<8x32xf32> to vector<8x32xbf16>
    %cst_161 = arith.constant dense<0.000000e+00> : vector<8x192xf32>
    %675 = tpu.matmul %674, %7, %cst_161 {dimension_numbers = #tpu.dot_dimension_numbers<[1], [0], [0], [1], [0, 0, 1, 1], [], []>} : vector<8x32xbf16>, vector<32x192xbf16>, vector<8x192xf32> -> vector<8x192xf32>
    %676 = arith.addf %675, %15 : vector<8x192xf32>
    %677 = vector.extract_strided_slice %676 {offsets = [0, 0], sizes = [8, 64], strides = [1, 1]} : vector<8x192xf32> to vector<8x64xf32>
    %678 = vector.extract_strided_slice %676 {offsets = [0, 64], sizes = [8, 64], strides = [1, 1]} : vector<8x192xf32> to vector<8x64xf32>
    %679 = arith.addf %677, %678 : vector<8x64xf32>
    %cst_162 = arith.constant 0.000000e+00 : f32
    %680 = vector.broadcast %cst_162 : f32 to vector<8x64xf32>
    %681 = arith.subf %680, %679 : vector<8x64xf32>
    %682 = math.exp %681 : vector<8x64xf32>
    %cst_163 = arith.constant 1.000000e+00 : f32
    %683 = vector.broadcast %cst_163 : f32 to vector<8x64xf32>
    %684 = arith.addf %683, %682 : vector<8x64xf32>
    %cst_164 = arith.constant 1.000000e+00 : f32
    %685 = vector.broadcast %cst_164 : f32 to vector<8x64xf32>
    %686 = arith.divf %685, %684 : vector<8x64xf32>
    %687 = vector.extract_strided_slice %686 {offsets = [0, 0], sizes = [8, 32], strides = [1, 1]} : vector<8x64xf32> to vector<8x32xf32>
    %688 = vector.extract_strided_slice %686 {offsets = [0, 32], sizes = [8, 32], strides = [1, 1]} : vector<8x64xf32> to vector<8x32xf32>
    %689 = vector.extract_strided_slice %676 {offsets = [0, 128], sizes = [8, 32], strides = [1, 1]} : vector<8x192xf32> to vector<8x32xf32>
    %690 = vector.extract_strided_slice %676 {offsets = [0, 160], sizes = [8, 32], strides = [1, 1]} : vector<8x192xf32> to vector<8x32xf32>
    %691 = arith.mulf %687, %690 : vector<8x32xf32>
    %692 = arith.addf %689, %691 : vector<8x32xf32>
    %693 = math.tanh %692 : vector<8x32xf32>
    %cst_165 = arith.constant 1.000000e+00 : f32
    %694 = vector.broadcast %cst_165 : f32 to vector<8x32xf32>
    %695 = arith.subf %694, %688 : vector<8x32xf32>
    %696 = arith.mulf %695, %693 : vector<8x32xf32>
    %697 = arith.mulf %688, %673 : vector<8x32xf32>
    %698 = arith.addf %696, %697 : vector<8x32xf32>
    %c2_i32_166 = arith.constant 2 : i32
    %699 = arith.truncf %698 : vector<8x32xf32> to vector<8x32xbf16>
    %cst_167 = arith.constant dense<0.000000e+00> : vector<8x192xf32>
    %700 = tpu.matmul %699, %6, %cst_167 {dimension_numbers = #tpu.dot_dimension_numbers<[1], [0], [0], [1], [0, 0, 1, 1], [], []>} : vector<8x32xbf16>, vector<32x192xbf16>, vector<8x192xf32> -> vector<8x192xf32>
    %701 = arith.addf %700, %11 : vector<8x192xf32>
    %702 = vector.extract_strided_slice %701 {offsets = [0, 0], sizes = [8, 64], strides = [1, 1]} : vector<8x192xf32> to vector<8x64xf32>
    %703 = vector.extract_strided_slice %701 {offsets = [0, 64], sizes = [8, 64], strides = [1, 1]} : vector<8x192xf32> to vector<8x64xf32>
    %704 = arith.addf %702, %703 : vector<8x64xf32>
    %cst_168 = arith.constant 0.000000e+00 : f32
    %705 = vector.broadcast %cst_168 : f32 to vector<8x64xf32>
    %706 = arith.subf %705, %704 : vector<8x64xf32>
    %707 = math.exp %706 : vector<8x64xf32>
    %cst_169 = arith.constant 1.000000e+00 : f32
    %708 = vector.broadcast %cst_169 : f32 to vector<8x64xf32>
    %709 = arith.addf %708, %707 : vector<8x64xf32>
    %cst_170 = arith.constant 1.000000e+00 : f32
    %710 = vector.broadcast %cst_170 : f32 to vector<8x64xf32>
    %711 = arith.divf %710, %709 : vector<8x64xf32>
    %712 = vector.extract_strided_slice %711 {offsets = [0, 0], sizes = [8, 32], strides = [1, 1]} : vector<8x64xf32> to vector<8x32xf32>
    %713 = vector.extract_strided_slice %711 {offsets = [0, 32], sizes = [8, 32], strides = [1, 1]} : vector<8x64xf32> to vector<8x32xf32>
    %714 = vector.extract_strided_slice %701 {offsets = [0, 128], sizes = [8, 32], strides = [1, 1]} : vector<8x192xf32> to vector<8x32xf32>
    %715 = vector.extract_strided_slice %701 {offsets = [0, 160], sizes = [8, 32], strides = [1, 1]} : vector<8x192xf32> to vector<8x32xf32>
    %716 = arith.mulf %712, %715 : vector<8x32xf32>
    %717 = arith.addf %714, %716 : vector<8x32xf32>
    %718 = math.tanh %717 : vector<8x32xf32>
    %cst_171 = arith.constant 1.000000e+00 : f32
    %719 = vector.broadcast %cst_171 : f32 to vector<8x32xf32>
    %720 = arith.subf %719, %713 : vector<8x32xf32>
    %721 = arith.mulf %720, %718 : vector<8x32xf32>
    %722 = arith.mulf %713, %698 : vector<8x32xf32>
    %723 = arith.addf %721, %722 : vector<8x32xf32>
    %724 = arith.truncf %723 : vector<8x32xf32> to vector<8x32xbf16>
    %cst_172 = arith.constant dense<0.000000e+00> : vector<8x192xf32>
    %725 = tpu.matmul %724, %7, %cst_172 {dimension_numbers = #tpu.dot_dimension_numbers<[1], [0], [0], [1], [0, 0, 1, 1], [], []>} : vector<8x32xbf16>, vector<32x192xbf16>, vector<8x192xf32> -> vector<8x192xf32>
    %726 = arith.addf %725, %15 : vector<8x192xf32>
    %727 = vector.extract_strided_slice %726 {offsets = [0, 0], sizes = [8, 64], strides = [1, 1]} : vector<8x192xf32> to vector<8x64xf32>
    %728 = vector.extract_strided_slice %726 {offsets = [0, 64], sizes = [8, 64], strides = [1, 1]} : vector<8x192xf32> to vector<8x64xf32>
    %729 = arith.addf %727, %728 : vector<8x64xf32>
    %cst_173 = arith.constant 0.000000e+00 : f32
    %730 = vector.broadcast %cst_173 : f32 to vector<8x64xf32>
    %731 = arith.subf %730, %729 : vector<8x64xf32>
    %732 = math.exp %731 : vector<8x64xf32>
    %cst_174 = arith.constant 1.000000e+00 : f32
    %733 = vector.broadcast %cst_174 : f32 to vector<8x64xf32>
    %734 = arith.addf %733, %732 : vector<8x64xf32>
    %cst_175 = arith.constant 1.000000e+00 : f32
    %735 = vector.broadcast %cst_175 : f32 to vector<8x64xf32>
    %736 = arith.divf %735, %734 : vector<8x64xf32>
    %737 = vector.extract_strided_slice %736 {offsets = [0, 0], sizes = [8, 32], strides = [1, 1]} : vector<8x64xf32> to vector<8x32xf32>
    %738 = vector.extract_strided_slice %736 {offsets = [0, 32], sizes = [8, 32], strides = [1, 1]} : vector<8x64xf32> to vector<8x32xf32>
    %739 = vector.extract_strided_slice %726 {offsets = [0, 128], sizes = [8, 32], strides = [1, 1]} : vector<8x192xf32> to vector<8x32xf32>
    %740 = vector.extract_strided_slice %726 {offsets = [0, 160], sizes = [8, 32], strides = [1, 1]} : vector<8x192xf32> to vector<8x32xf32>
    %741 = arith.mulf %737, %740 : vector<8x32xf32>
    %742 = arith.addf %739, %741 : vector<8x32xf32>
    %743 = math.tanh %742 : vector<8x32xf32>
    %cst_176 = arith.constant 1.000000e+00 : f32
    %744 = vector.broadcast %cst_176 : f32 to vector<8x32xf32>
    %745 = arith.subf %744, %738 : vector<8x32xf32>
    %746 = arith.mulf %745, %743 : vector<8x32xf32>
    %747 = arith.mulf %738, %723 : vector<8x32xf32>
    %748 = arith.addf %746, %747 : vector<8x32xf32>
    %c3_i32_177 = arith.constant 3 : i32
    %749 = arith.truncf %748 : vector<8x32xf32> to vector<8x32xbf16>
    %cst_178 = arith.constant dense<0.000000e+00> : vector<8x192xf32>
    %750 = tpu.matmul %749, %6, %cst_178 {dimension_numbers = #tpu.dot_dimension_numbers<[1], [0], [0], [1], [0, 0, 1, 1], [], []>} : vector<8x32xbf16>, vector<32x192xbf16>, vector<8x192xf32> -> vector<8x192xf32>
    %751 = arith.addf %750, %11 : vector<8x192xf32>
    %752 = vector.extract_strided_slice %751 {offsets = [0, 0], sizes = [8, 64], strides = [1, 1]} : vector<8x192xf32> to vector<8x64xf32>
    %753 = vector.extract_strided_slice %751 {offsets = [0, 64], sizes = [8, 64], strides = [1, 1]} : vector<8x192xf32> to vector<8x64xf32>
    %754 = arith.addf %752, %753 : vector<8x64xf32>
    %cst_179 = arith.constant 0.000000e+00 : f32
    %755 = vector.broadcast %cst_179 : f32 to vector<8x64xf32>
    %756 = arith.subf %755, %754 : vector<8x64xf32>
    %757 = math.exp %756 : vector<8x64xf32>
    %cst_180 = arith.constant 1.000000e+00 : f32
    %758 = vector.broadcast %cst_180 : f32 to vector<8x64xf32>
    %759 = arith.addf %758, %757 : vector<8x64xf32>
    %cst_181 = arith.constant 1.000000e+00 : f32
    %760 = vector.broadcast %cst_181 : f32 to vector<8x64xf32>
    %761 = arith.divf %760, %759 : vector<8x64xf32>
    %762 = vector.extract_strided_slice %761 {offsets = [0, 0], sizes = [8, 32], strides = [1, 1]} : vector<8x64xf32> to vector<8x32xf32>
    %763 = vector.extract_strided_slice %761 {offsets = [0, 32], sizes = [8, 32], strides = [1, 1]} : vector<8x64xf32> to vector<8x32xf32>
    %764 = vector.extract_strided_slice %751 {offsets = [0, 128], sizes = [8, 32], strides = [1, 1]} : vector<8x192xf32> to vector<8x32xf32>
    %765 = vector.extract_strided_slice %751 {offsets = [0, 160], sizes = [8, 32], strides = [1, 1]} : vector<8x192xf32> to vector<8x32xf32>
    %766 = arith.mulf %762, %765 : vector<8x32xf32>
    %767 = arith.addf %764, %766 : vector<8x32xf32>
    %768 = math.tanh %767 : vector<8x32xf32>
    %cst_182 = arith.constant 1.000000e+00 : f32
    %769 = vector.broadcast %cst_182 : f32 to vector<8x32xf32>
    %770 = arith.subf %769, %763 : vector<8x32xf32>
    %771 = arith.mulf %770, %768 : vector<8x32xf32>
    %772 = arith.mulf %763, %748 : vector<8x32xf32>
    %773 = arith.addf %771, %772 : vector<8x32xf32>
    %774 = arith.truncf %773 : vector<8x32xf32> to vector<8x32xbf16>
    %cst_183 = arith.constant dense<0.000000e+00> : vector<8x192xf32>
    %775 = tpu.matmul %774, %7, %cst_183 {dimension_numbers = #tpu.dot_dimension_numbers<[1], [0], [0], [1], [0, 0, 1, 1], [], []>} : vector<8x32xbf16>, vector<32x192xbf16>, vector<8x192xf32> -> vector<8x192xf32>
    %776 = arith.addf %775, %15 : vector<8x192xf32>
    %777 = vector.extract_strided_slice %776 {offsets = [0, 0], sizes = [8, 64], strides = [1, 1]} : vector<8x192xf32> to vector<8x64xf32>
    %778 = vector.extract_strided_slice %776 {offsets = [0, 64], sizes = [8, 64], strides = [1, 1]} : vector<8x192xf32> to vector<8x64xf32>
    %779 = arith.addf %777, %778 : vector<8x64xf32>
    %cst_184 = arith.constant 0.000000e+00 : f32
    %780 = vector.broadcast %cst_184 : f32 to vector<8x64xf32>
    %781 = arith.subf %780, %779 : vector<8x64xf32>
    %782 = math.exp %781 : vector<8x64xf32>
    %cst_185 = arith.constant 1.000000e+00 : f32
    %783 = vector.broadcast %cst_185 : f32 to vector<8x64xf32>
    %784 = arith.addf %783, %782 : vector<8x64xf32>
    %cst_186 = arith.constant 1.000000e+00 : f32
    %785 = vector.broadcast %cst_186 : f32 to vector<8x64xf32>
    %786 = arith.divf %785, %784 : vector<8x64xf32>
    %787 = vector.extract_strided_slice %786 {offsets = [0, 0], sizes = [8, 32], strides = [1, 1]} : vector<8x64xf32> to vector<8x32xf32>
    %788 = vector.extract_strided_slice %786 {offsets = [0, 32], sizes = [8, 32], strides = [1, 1]} : vector<8x64xf32> to vector<8x32xf32>
    %789 = vector.extract_strided_slice %776 {offsets = [0, 128], sizes = [8, 32], strides = [1, 1]} : vector<8x192xf32> to vector<8x32xf32>
    %790 = vector.extract_strided_slice %776 {offsets = [0, 160], sizes = [8, 32], strides = [1, 1]} : vector<8x192xf32> to vector<8x32xf32>
    %791 = arith.mulf %787, %790 : vector<8x32xf32>
    %792 = arith.addf %789, %791 : vector<8x32xf32>
    %793 = math.tanh %792 : vector<8x32xf32>
    %cst_187 = arith.constant 1.000000e+00 : f32
    %794 = vector.broadcast %cst_187 : f32 to vector<8x32xf32>
    %795 = arith.subf %794, %788 : vector<8x32xf32>
    %796 = arith.mulf %795, %793 : vector<8x32xf32>
    %797 = arith.mulf %788, %773 : vector<8x32xf32>
    %798 = arith.addf %796, %797 : vector<8x32xf32>
    %c4_i32_188 = arith.constant 4 : i32
    %799 = arith.truncf %798 : vector<8x32xf32> to vector<8x32xbf16>
    %cst_189 = arith.constant dense<0.000000e+00> : vector<8x192xf32>
    %800 = tpu.matmul %799, %6, %cst_189 {dimension_numbers = #tpu.dot_dimension_numbers<[1], [0], [0], [1], [0, 0, 1, 1], [], []>} : vector<8x32xbf16>, vector<32x192xbf16>, vector<8x192xf32> -> vector<8x192xf32>
    %801 = arith.addf %800, %11 : vector<8x192xf32>
    %802 = vector.extract_strided_slice %801 {offsets = [0, 0], sizes = [8, 64], strides = [1, 1]} : vector<8x192xf32> to vector<8x64xf32>
    %803 = vector.extract_strided_slice %801 {offsets = [0, 64], sizes = [8, 64], strides = [1, 1]} : vector<8x192xf32> to vector<8x64xf32>
    %804 = arith.addf %802, %803 : vector<8x64xf32>
    %cst_190 = arith.constant 0.000000e+00 : f32
    %805 = vector.broadcast %cst_190 : f32 to vector<8x64xf32>
    %806 = arith.subf %805, %804 : vector<8x64xf32>
    %807 = math.exp %806 : vector<8x64xf32>
    %cst_191 = arith.constant 1.000000e+00 : f32
    %808 = vector.broadcast %cst_191 : f32 to vector<8x64xf32>
    %809 = arith.addf %808, %807 : vector<8x64xf32>
    %cst_192 = arith.constant 1.000000e+00 : f32
    %810 = vector.broadcast %cst_192 : f32 to vector<8x64xf32>
    %811 = arith.divf %810, %809 : vector<8x64xf32>
    %812 = vector.extract_strided_slice %811 {offsets = [0, 0], sizes = [8, 32], strides = [1, 1]} : vector<8x64xf32> to vector<8x32xf32>
    %813 = vector.extract_strided_slice %811 {offsets = [0, 32], sizes = [8, 32], strides = [1, 1]} : vector<8x64xf32> to vector<8x32xf32>
    %814 = vector.extract_strided_slice %801 {offsets = [0, 128], sizes = [8, 32], strides = [1, 1]} : vector<8x192xf32> to vector<8x32xf32>
    %815 = vector.extract_strided_slice %801 {offsets = [0, 160], sizes = [8, 32], strides = [1, 1]} : vector<8x192xf32> to vector<8x32xf32>
    %816 = arith.mulf %812, %815 : vector<8x32xf32>
    %817 = arith.addf %814, %816 : vector<8x32xf32>
    %818 = math.tanh %817 : vector<8x32xf32>
    %cst_193 = arith.constant 1.000000e+00 : f32
    %819 = vector.broadcast %cst_193 : f32 to vector<8x32xf32>
    %820 = arith.subf %819, %813 : vector<8x32xf32>
    %821 = arith.mulf %820, %818 : vector<8x32xf32>
    %822 = arith.mulf %813, %798 : vector<8x32xf32>
    %823 = arith.addf %821, %822 : vector<8x32xf32>
    %824 = arith.truncf %823 : vector<8x32xf32> to vector<8x32xbf16>
    %cst_194 = arith.constant dense<0.000000e+00> : vector<8x192xf32>
    %825 = tpu.matmul %824, %7, %cst_194 {dimension_numbers = #tpu.dot_dimension_numbers<[1], [0], [0], [1], [0, 0, 1, 1], [], []>} : vector<8x32xbf16>, vector<32x192xbf16>, vector<8x192xf32> -> vector<8x192xf32>
    %826 = arith.addf %825, %15 : vector<8x192xf32>
    %827 = vector.extract_strided_slice %826 {offsets = [0, 0], sizes = [8, 64], strides = [1, 1]} : vector<8x192xf32> to vector<8x64xf32>
    %828 = vector.extract_strided_slice %826 {offsets = [0, 64], sizes = [8, 64], strides = [1, 1]} : vector<8x192xf32> to vector<8x64xf32>
    %829 = arith.addf %827, %828 : vector<8x64xf32>
    %cst_195 = arith.constant 0.000000e+00 : f32
    %830 = vector.broadcast %cst_195 : f32 to vector<8x64xf32>
    %831 = arith.subf %830, %829 : vector<8x64xf32>
    %832 = math.exp %831 : vector<8x64xf32>
    %cst_196 = arith.constant 1.000000e+00 : f32
    %833 = vector.broadcast %cst_196 : f32 to vector<8x64xf32>
    %834 = arith.addf %833, %832 : vector<8x64xf32>
    %cst_197 = arith.constant 1.000000e+00 : f32
    %835 = vector.broadcast %cst_197 : f32 to vector<8x64xf32>
    %836 = arith.divf %835, %834 : vector<8x64xf32>
    %837 = vector.extract_strided_slice %836 {offsets = [0, 0], sizes = [8, 32], strides = [1, 1]} : vector<8x64xf32> to vector<8x32xf32>
    %838 = vector.extract_strided_slice %836 {offsets = [0, 32], sizes = [8, 32], strides = [1, 1]} : vector<8x64xf32> to vector<8x32xf32>
    %839 = vector.extract_strided_slice %826 {offsets = [0, 128], sizes = [8, 32], strides = [1, 1]} : vector<8x192xf32> to vector<8x32xf32>
    %840 = vector.extract_strided_slice %826 {offsets = [0, 160], sizes = [8, 32], strides = [1, 1]} : vector<8x192xf32> to vector<8x32xf32>
    %841 = arith.mulf %837, %840 : vector<8x32xf32>
    %842 = arith.addf %839, %841 : vector<8x32xf32>
    %843 = math.tanh %842 : vector<8x32xf32>
    %cst_198 = arith.constant 1.000000e+00 : f32
    %844 = vector.broadcast %cst_198 : f32 to vector<8x32xf32>
    %845 = arith.subf %844, %838 : vector<8x32xf32>
    %846 = arith.mulf %845, %843 : vector<8x32xf32>
    %847 = arith.mulf %838, %823 : vector<8x32xf32>
    %848 = arith.addf %846, %847 : vector<8x32xf32>
    %c5_i32_199 = arith.constant 5 : i32
    %849 = arith.truncf %848 : vector<8x32xf32> to vector<8x32xbf16>
    %cst_200 = arith.constant dense<0.000000e+00> : vector<8x192xf32>
    %850 = tpu.matmul %849, %6, %cst_200 {dimension_numbers = #tpu.dot_dimension_numbers<[1], [0], [0], [1], [0, 0, 1, 1], [], []>} : vector<8x32xbf16>, vector<32x192xbf16>, vector<8x192xf32> -> vector<8x192xf32>
    %851 = arith.addf %850, %11 : vector<8x192xf32>
    %852 = vector.extract_strided_slice %851 {offsets = [0, 0], sizes = [8, 64], strides = [1, 1]} : vector<8x192xf32> to vector<8x64xf32>
    %853 = vector.extract_strided_slice %851 {offsets = [0, 64], sizes = [8, 64], strides = [1, 1]} : vector<8x192xf32> to vector<8x64xf32>
    %854 = arith.addf %852, %853 : vector<8x64xf32>
    %cst_201 = arith.constant 0.000000e+00 : f32
    %855 = vector.broadcast %cst_201 : f32 to vector<8x64xf32>
    %856 = arith.subf %855, %854 : vector<8x64xf32>
    %857 = math.exp %856 : vector<8x64xf32>
    %cst_202 = arith.constant 1.000000e+00 : f32
    %858 = vector.broadcast %cst_202 : f32 to vector<8x64xf32>
    %859 = arith.addf %858, %857 : vector<8x64xf32>
    %cst_203 = arith.constant 1.000000e+00 : f32
    %860 = vector.broadcast %cst_203 : f32 to vector<8x64xf32>
    %861 = arith.divf %860, %859 : vector<8x64xf32>
    %862 = vector.extract_strided_slice %861 {offsets = [0, 0], sizes = [8, 32], strides = [1, 1]} : vector<8x64xf32> to vector<8x32xf32>
    %863 = vector.extract_strided_slice %861 {offsets = [0, 32], sizes = [8, 32], strides = [1, 1]} : vector<8x64xf32> to vector<8x32xf32>
    %864 = vector.extract_strided_slice %851 {offsets = [0, 128], sizes = [8, 32], strides = [1, 1]} : vector<8x192xf32> to vector<8x32xf32>
    %865 = vector.extract_strided_slice %851 {offsets = [0, 160], sizes = [8, 32], strides = [1, 1]} : vector<8x192xf32> to vector<8x32xf32>
    %866 = arith.mulf %862, %865 : vector<8x32xf32>
    %867 = arith.addf %864, %866 : vector<8x32xf32>
    %868 = math.tanh %867 : vector<8x32xf32>
    %cst_204 = arith.constant 1.000000e+00 : f32
    %869 = vector.broadcast %cst_204 : f32 to vector<8x32xf32>
    %870 = arith.subf %869, %863 : vector<8x32xf32>
    %871 = arith.mulf %870, %868 : vector<8x32xf32>
    %872 = arith.mulf %863, %848 : vector<8x32xf32>
    %873 = arith.addf %871, %872 : vector<8x32xf32>
    %874 = arith.truncf %873 : vector<8x32xf32> to vector<8x32xbf16>
    %cst_205 = arith.constant dense<0.000000e+00> : vector<8x192xf32>
    %875 = tpu.matmul %874, %7, %cst_205 {dimension_numbers = #tpu.dot_dimension_numbers<[1], [0], [0], [1], [0, 0, 1, 1], [], []>} : vector<8x32xbf16>, vector<32x192xbf16>, vector<8x192xf32> -> vector<8x192xf32>
    %876 = arith.addf %875, %15 : vector<8x192xf32>
    %877 = vector.extract_strided_slice %876 {offsets = [0, 0], sizes = [8, 64], strides = [1, 1]} : vector<8x192xf32> to vector<8x64xf32>
    %878 = vector.extract_strided_slice %876 {offsets = [0, 64], sizes = [8, 64], strides = [1, 1]} : vector<8x192xf32> to vector<8x64xf32>
    %879 = arith.addf %877, %878 : vector<8x64xf32>
    %cst_206 = arith.constant 0.000000e+00 : f32
    %880 = vector.broadcast %cst_206 : f32 to vector<8x64xf32>
    %881 = arith.subf %880, %879 : vector<8x64xf32>
    %882 = math.exp %881 : vector<8x64xf32>
    %cst_207 = arith.constant 1.000000e+00 : f32
    %883 = vector.broadcast %cst_207 : f32 to vector<8x64xf32>
    %884 = arith.addf %883, %882 : vector<8x64xf32>
    %cst_208 = arith.constant 1.000000e+00 : f32
    %885 = vector.broadcast %cst_208 : f32 to vector<8x64xf32>
    %886 = arith.divf %885, %884 : vector<8x64xf32>
    %887 = vector.extract_strided_slice %886 {offsets = [0, 0], sizes = [8, 32], strides = [1, 1]} : vector<8x64xf32> to vector<8x32xf32>
    %888 = vector.extract_strided_slice %886 {offsets = [0, 32], sizes = [8, 32], strides = [1, 1]} : vector<8x64xf32> to vector<8x32xf32>
    %889 = vector.extract_strided_slice %876 {offsets = [0, 128], sizes = [8, 32], strides = [1, 1]} : vector<8x192xf32> to vector<8x32xf32>
    %890 = vector.extract_strided_slice %876 {offsets = [0, 160], sizes = [8, 32], strides = [1, 1]} : vector<8x192xf32> to vector<8x32xf32>
    %891 = arith.mulf %887, %890 : vector<8x32xf32>
    %892 = arith.addf %889, %891 : vector<8x32xf32>
    %893 = math.tanh %892 : vector<8x32xf32>
    %cst_209 = arith.constant 1.000000e+00 : f32
    %894 = vector.broadcast %cst_209 : f32 to vector<8x32xf32>
    %895 = arith.subf %894, %888 : vector<8x32xf32>
    %896 = arith.mulf %895, %893 : vector<8x32xf32>
    %897 = arith.mulf %888, %873 : vector<8x32xf32>
    %898 = arith.addf %896, %897 : vector<8x32xf32>
    %c6_i32_210 = arith.constant 6 : i32
    %899 = arith.truncf %898 : vector<8x32xf32> to vector<8x32xbf16>
    %cst_211 = arith.constant dense<0.000000e+00> : vector<8x192xf32>
    %900 = tpu.matmul %899, %6, %cst_211 {dimension_numbers = #tpu.dot_dimension_numbers<[1], [0], [0], [1], [0, 0, 1, 1], [], []>} : vector<8x32xbf16>, vector<32x192xbf16>, vector<8x192xf32> -> vector<8x192xf32>
    %901 = arith.addf %900, %11 : vector<8x192xf32>
    %902 = vector.extract_strided_slice %901 {offsets = [0, 0], sizes = [8, 64], strides = [1, 1]} : vector<8x192xf32> to vector<8x64xf32>
    %903 = vector.extract_strided_slice %901 {offsets = [0, 64], sizes = [8, 64], strides = [1, 1]} : vector<8x192xf32> to vector<8x64xf32>
    %904 = arith.addf %902, %903 : vector<8x64xf32>
    %cst_212 = arith.constant 0.000000e+00 : f32
    %905 = vector.broadcast %cst_212 : f32 to vector<8x64xf32>
    %906 = arith.subf %905, %904 : vector<8x64xf32>
    %907 = math.exp %906 : vector<8x64xf32>
    %cst_213 = arith.constant 1.000000e+00 : f32
    %908 = vector.broadcast %cst_213 : f32 to vector<8x64xf32>
    %909 = arith.addf %908, %907 : vector<8x64xf32>
    %cst_214 = arith.constant 1.000000e+00 : f32
    %910 = vector.broadcast %cst_214 : f32 to vector<8x64xf32>
    %911 = arith.divf %910, %909 : vector<8x64xf32>
    %912 = vector.extract_strided_slice %911 {offsets = [0, 0], sizes = [8, 32], strides = [1, 1]} : vector<8x64xf32> to vector<8x32xf32>
    %913 = vector.extract_strided_slice %911 {offsets = [0, 32], sizes = [8, 32], strides = [1, 1]} : vector<8x64xf32> to vector<8x32xf32>
    %914 = vector.extract_strided_slice %901 {offsets = [0, 128], sizes = [8, 32], strides = [1, 1]} : vector<8x192xf32> to vector<8x32xf32>
    %915 = vector.extract_strided_slice %901 {offsets = [0, 160], sizes = [8, 32], strides = [1, 1]} : vector<8x192xf32> to vector<8x32xf32>
    %916 = arith.mulf %912, %915 : vector<8x32xf32>
    %917 = arith.addf %914, %916 : vector<8x32xf32>
    %918 = math.tanh %917 : vector<8x32xf32>
    %cst_215 = arith.constant 1.000000e+00 : f32
    %919 = vector.broadcast %cst_215 : f32 to vector<8x32xf32>
    %920 = arith.subf %919, %913 : vector<8x32xf32>
    %921 = arith.mulf %920, %918 : vector<8x32xf32>
    %922 = arith.mulf %913, %898 : vector<8x32xf32>
    %923 = arith.addf %921, %922 : vector<8x32xf32>
    %924 = arith.truncf %923 : vector<8x32xf32> to vector<8x32xbf16>
    %cst_216 = arith.constant dense<0.000000e+00> : vector<8x192xf32>
    %925 = tpu.matmul %924, %7, %cst_216 {dimension_numbers = #tpu.dot_dimension_numbers<[1], [0], [0], [1], [0, 0, 1, 1], [], []>} : vector<8x32xbf16>, vector<32x192xbf16>, vector<8x192xf32> -> vector<8x192xf32>
    %926 = arith.addf %925, %15 : vector<8x192xf32>
    %927 = vector.extract_strided_slice %926 {offsets = [0, 0], sizes = [8, 64], strides = [1, 1]} : vector<8x192xf32> to vector<8x64xf32>
    %928 = vector.extract_strided_slice %926 {offsets = [0, 64], sizes = [8, 64], strides = [1, 1]} : vector<8x192xf32> to vector<8x64xf32>
    %929 = arith.addf %927, %928 : vector<8x64xf32>
    %cst_217 = arith.constant 0.000000e+00 : f32
    %930 = vector.broadcast %cst_217 : f32 to vector<8x64xf32>
    %931 = arith.subf %930, %929 : vector<8x64xf32>
    %932 = math.exp %931 : vector<8x64xf32>
    %cst_218 = arith.constant 1.000000e+00 : f32
    %933 = vector.broadcast %cst_218 : f32 to vector<8x64xf32>
    %934 = arith.addf %933, %932 : vector<8x64xf32>
    %cst_219 = arith.constant 1.000000e+00 : f32
    %935 = vector.broadcast %cst_219 : f32 to vector<8x64xf32>
    %936 = arith.divf %935, %934 : vector<8x64xf32>
    %937 = vector.extract_strided_slice %936 {offsets = [0, 0], sizes = [8, 32], strides = [1, 1]} : vector<8x64xf32> to vector<8x32xf32>
    %938 = vector.extract_strided_slice %936 {offsets = [0, 32], sizes = [8, 32], strides = [1, 1]} : vector<8x64xf32> to vector<8x32xf32>
    %939 = vector.extract_strided_slice %926 {offsets = [0, 128], sizes = [8, 32], strides = [1, 1]} : vector<8x192xf32> to vector<8x32xf32>
    %940 = vector.extract_strided_slice %926 {offsets = [0, 160], sizes = [8, 32], strides = [1, 1]} : vector<8x192xf32> to vector<8x32xf32>
    %941 = arith.mulf %937, %940 : vector<8x32xf32>
    %942 = arith.addf %939, %941 : vector<8x32xf32>
    %943 = math.tanh %942 : vector<8x32xf32>
    %cst_220 = arith.constant 1.000000e+00 : f32
    %944 = vector.broadcast %cst_220 : f32 to vector<8x32xf32>
    %945 = arith.subf %944, %938 : vector<8x32xf32>
    %946 = arith.mulf %945, %943 : vector<8x32xf32>
    %947 = arith.mulf %938, %923 : vector<8x32xf32>
    %948 = arith.addf %946, %947 : vector<8x32xf32>
    %c7_i32_221 = arith.constant 7 : i32
    %949 = arith.truncf %948 : vector<8x32xf32> to vector<8x32xbf16>
    %cst_222 = arith.constant dense<0.000000e+00> : vector<8x192xf32>
    %950 = tpu.matmul %949, %6, %cst_222 {dimension_numbers = #tpu.dot_dimension_numbers<[1], [0], [0], [1], [0, 0, 1, 1], [], []>} : vector<8x32xbf16>, vector<32x192xbf16>, vector<8x192xf32> -> vector<8x192xf32>
    %951 = arith.addf %950, %11 : vector<8x192xf32>
    %952 = vector.extract_strided_slice %951 {offsets = [0, 0], sizes = [8, 64], strides = [1, 1]} : vector<8x192xf32> to vector<8x64xf32>
    %953 = vector.extract_strided_slice %951 {offsets = [0, 64], sizes = [8, 64], strides = [1, 1]} : vector<8x192xf32> to vector<8x64xf32>
    %954 = arith.addf %952, %953 : vector<8x64xf32>
    %cst_223 = arith.constant 0.000000e+00 : f32
    %955 = vector.broadcast %cst_223 : f32 to vector<8x64xf32>
    %956 = arith.subf %955, %954 : vector<8x64xf32>
    %957 = math.exp %956 : vector<8x64xf32>
    %cst_224 = arith.constant 1.000000e+00 : f32
    %958 = vector.broadcast %cst_224 : f32 to vector<8x64xf32>
    %959 = arith.addf %958, %957 : vector<8x64xf32>
    %cst_225 = arith.constant 1.000000e+00 : f32
    %960 = vector.broadcast %cst_225 : f32 to vector<8x64xf32>
    %961 = arith.divf %960, %959 : vector<8x64xf32>
    %962 = vector.extract_strided_slice %961 {offsets = [0, 0], sizes = [8, 32], strides = [1, 1]} : vector<8x64xf32> to vector<8x32xf32>
    %963 = vector.extract_strided_slice %961 {offsets = [0, 32], sizes = [8, 32], strides = [1, 1]} : vector<8x64xf32> to vector<8x32xf32>
    %964 = vector.extract_strided_slice %951 {offsets = [0, 128], sizes = [8, 32], strides = [1, 1]} : vector<8x192xf32> to vector<8x32xf32>
    %965 = vector.extract_strided_slice %951 {offsets = [0, 160], sizes = [8, 32], strides = [1, 1]} : vector<8x192xf32> to vector<8x32xf32>
    %966 = arith.mulf %962, %965 : vector<8x32xf32>
    %967 = arith.addf %964, %966 : vector<8x32xf32>
    %968 = math.tanh %967 : vector<8x32xf32>
    %cst_226 = arith.constant 1.000000e+00 : f32
    %969 = vector.broadcast %cst_226 : f32 to vector<8x32xf32>
    %970 = arith.subf %969, %963 : vector<8x32xf32>
    %971 = arith.mulf %970, %968 : vector<8x32xf32>
    %972 = arith.mulf %963, %948 : vector<8x32xf32>
    %973 = arith.addf %971, %972 : vector<8x32xf32>
    %974 = arith.truncf %973 : vector<8x32xf32> to vector<8x32xbf16>
    %cst_227 = arith.constant dense<0.000000e+00> : vector<8x192xf32>
    %975 = tpu.matmul %974, %7, %cst_227 {dimension_numbers = #tpu.dot_dimension_numbers<[1], [0], [0], [1], [0, 0, 1, 1], [], []>} : vector<8x32xbf16>, vector<32x192xbf16>, vector<8x192xf32> -> vector<8x192xf32>
    %976 = arith.addf %975, %15 : vector<8x192xf32>
    %977 = vector.extract_strided_slice %976 {offsets = [0, 0], sizes = [8, 64], strides = [1, 1]} : vector<8x192xf32> to vector<8x64xf32>
    %978 = vector.extract_strided_slice %976 {offsets = [0, 64], sizes = [8, 64], strides = [1, 1]} : vector<8x192xf32> to vector<8x64xf32>
    %979 = arith.addf %977, %978 : vector<8x64xf32>
    %cst_228 = arith.constant 0.000000e+00 : f32
    %980 = vector.broadcast %cst_228 : f32 to vector<8x64xf32>
    %981 = arith.subf %980, %979 : vector<8x64xf32>
    %982 = math.exp %981 : vector<8x64xf32>
    %cst_229 = arith.constant 1.000000e+00 : f32
    %983 = vector.broadcast %cst_229 : f32 to vector<8x64xf32>
    %984 = arith.addf %983, %982 : vector<8x64xf32>
    %cst_230 = arith.constant 1.000000e+00 : f32
    %985 = vector.broadcast %cst_230 : f32 to vector<8x64xf32>
    %986 = arith.divf %985, %984 : vector<8x64xf32>
    %987 = vector.extract_strided_slice %986 {offsets = [0, 0], sizes = [8, 32], strides = [1, 1]} : vector<8x64xf32> to vector<8x32xf32>
    %988 = vector.extract_strided_slice %986 {offsets = [0, 32], sizes = [8, 32], strides = [1, 1]} : vector<8x64xf32> to vector<8x32xf32>
    %989 = vector.extract_strided_slice %976 {offsets = [0, 128], sizes = [8, 32], strides = [1, 1]} : vector<8x192xf32> to vector<8x32xf32>
    %990 = vector.extract_strided_slice %976 {offsets = [0, 160], sizes = [8, 32], strides = [1, 1]} : vector<8x192xf32> to vector<8x32xf32>
    %991 = arith.mulf %987, %990 : vector<8x32xf32>
    %992 = arith.addf %989, %991 : vector<8x32xf32>
    %993 = math.tanh %992 : vector<8x32xf32>
    %cst_231 = arith.constant 1.000000e+00 : f32
    %994 = vector.broadcast %cst_231 : f32 to vector<8x32xf32>
    %995 = arith.subf %994, %988 : vector<8x32xf32>
    %996 = arith.mulf %995, %993 : vector<8x32xf32>
    %997 = arith.mulf %988, %973 : vector<8x32xf32>
    %998 = arith.addf %996, %997 : vector<8x32xf32>
    %c8_i32_232 = arith.constant 8 : i32
    %999 = arith.truncf %998 : vector<8x32xf32> to vector<8x32xbf16>
    %cst_233 = arith.constant dense<0.000000e+00> : vector<8x192xf32>
    %1000 = tpu.matmul %999, %6, %cst_233 {dimension_numbers = #tpu.dot_dimension_numbers<[1], [0], [0], [1], [0, 0, 1, 1], [], []>} : vector<8x32xbf16>, vector<32x192xbf16>, vector<8x192xf32> -> vector<8x192xf32>
    %1001 = arith.addf %1000, %11 : vector<8x192xf32>
    %1002 = vector.extract_strided_slice %1001 {offsets = [0, 0], sizes = [8, 64], strides = [1, 1]} : vector<8x192xf32> to vector<8x64xf32>
    %1003 = vector.extract_strided_slice %1001 {offsets = [0, 64], sizes = [8, 64], strides = [1, 1]} : vector<8x192xf32> to vector<8x64xf32>
    %1004 = arith.addf %1002, %1003 : vector<8x64xf32>
    %cst_234 = arith.constant 0.000000e+00 : f32
    %1005 = vector.broadcast %cst_234 : f32 to vector<8x64xf32>
    %1006 = arith.subf %1005, %1004 : vector<8x64xf32>
    %1007 = math.exp %1006 : vector<8x64xf32>
    %cst_235 = arith.constant 1.000000e+00 : f32
    %1008 = vector.broadcast %cst_235 : f32 to vector<8x64xf32>
    %1009 = arith.addf %1008, %1007 : vector<8x64xf32>
    %cst_236 = arith.constant 1.000000e+00 : f32
    %1010 = vector.broadcast %cst_236 : f32 to vector<8x64xf32>
    %1011 = arith.divf %1010, %1009 : vector<8x64xf32>
    %1012 = vector.extract_strided_slice %1011 {offsets = [0, 0], sizes = [8, 32], strides = [1, 1]} : vector<8x64xf32> to vector<8x32xf32>
    %1013 = vector.extract_strided_slice %1011 {offsets = [0, 32], sizes = [8, 32], strides = [1, 1]} : vector<8x64xf32> to vector<8x32xf32>
    %1014 = vector.extract_strided_slice %1001 {offsets = [0, 128], sizes = [8, 32], strides = [1, 1]} : vector<8x192xf32> to vector<8x32xf32>
    %1015 = vector.extract_strided_slice %1001 {offsets = [0, 160], sizes = [8, 32], strides = [1, 1]} : vector<8x192xf32> to vector<8x32xf32>
    %1016 = arith.mulf %1012, %1015 : vector<8x32xf32>
    %1017 = arith.addf %1014, %1016 : vector<8x32xf32>
    %1018 = math.tanh %1017 : vector<8x32xf32>
    %cst_237 = arith.constant 1.000000e+00 : f32
    %1019 = vector.broadcast %cst_237 : f32 to vector<8x32xf32>
    %1020 = arith.subf %1019, %1013 : vector<8x32xf32>
    %1021 = arith.mulf %1020, %1018 : vector<8x32xf32>
    %1022 = arith.mulf %1013, %998 : vector<8x32xf32>
    %1023 = arith.addf %1021, %1022 : vector<8x32xf32>
    %1024 = arith.truncf %1023 : vector<8x32xf32> to vector<8x32xbf16>
    %cst_238 = arith.constant dense<0.000000e+00> : vector<8x192xf32>
    %1025 = tpu.matmul %1024, %7, %cst_238 {dimension_numbers = #tpu.dot_dimension_numbers<[1], [0], [0], [1], [0, 0, 1, 1], [], []>} : vector<8x32xbf16>, vector<32x192xbf16>, vector<8x192xf32> -> vector<8x192xf32>
    %1026 = arith.addf %1025, %15 : vector<8x192xf32>
    %1027 = vector.extract_strided_slice %1026 {offsets = [0, 0], sizes = [8, 64], strides = [1, 1]} : vector<8x192xf32> to vector<8x64xf32>
    %1028 = vector.extract_strided_slice %1026 {offsets = [0, 64], sizes = [8, 64], strides = [1, 1]} : vector<8x192xf32> to vector<8x64xf32>
    %1029 = arith.addf %1027, %1028 : vector<8x64xf32>
    %cst_239 = arith.constant 0.000000e+00 : f32
    %1030 = vector.broadcast %cst_239 : f32 to vector<8x64xf32>
    %1031 = arith.subf %1030, %1029 : vector<8x64xf32>
    %1032 = math.exp %1031 : vector<8x64xf32>
    %cst_240 = arith.constant 1.000000e+00 : f32
    %1033 = vector.broadcast %cst_240 : f32 to vector<8x64xf32>
    %1034 = arith.addf %1033, %1032 : vector<8x64xf32>
    %cst_241 = arith.constant 1.000000e+00 : f32
    %1035 = vector.broadcast %cst_241 : f32 to vector<8x64xf32>
    %1036 = arith.divf %1035, %1034 : vector<8x64xf32>
    %1037 = vector.extract_strided_slice %1036 {offsets = [0, 0], sizes = [8, 32], strides = [1, 1]} : vector<8x64xf32> to vector<8x32xf32>
    %1038 = vector.extract_strided_slice %1036 {offsets = [0, 32], sizes = [8, 32], strides = [1, 1]} : vector<8x64xf32> to vector<8x32xf32>
    %1039 = vector.extract_strided_slice %1026 {offsets = [0, 128], sizes = [8, 32], strides = [1, 1]} : vector<8x192xf32> to vector<8x32xf32>
    %1040 = vector.extract_strided_slice %1026 {offsets = [0, 160], sizes = [8, 32], strides = [1, 1]} : vector<8x192xf32> to vector<8x32xf32>
    %1041 = arith.mulf %1037, %1040 : vector<8x32xf32>
    %1042 = arith.addf %1039, %1041 : vector<8x32xf32>
    %1043 = math.tanh %1042 : vector<8x32xf32>
    %cst_242 = arith.constant 1.000000e+00 : f32
    %1044 = vector.broadcast %cst_242 : f32 to vector<8x32xf32>
    %1045 = arith.subf %1044, %1038 : vector<8x32xf32>
    %1046 = arith.mulf %1045, %1043 : vector<8x32xf32>
    %1047 = arith.mulf %1038, %1023 : vector<8x32xf32>
    %1048 = arith.addf %1046, %1047 : vector<8x32xf32>
    %c9_i32_243 = arith.constant 9 : i32
    %1049 = arith.truncf %1048 : vector<8x32xf32> to vector<8x32xbf16>
    %cst_244 = arith.constant dense<0.000000e+00> : vector<8x192xf32>
    %1050 = tpu.matmul %1049, %6, %cst_244 {dimension_numbers = #tpu.dot_dimension_numbers<[1], [0], [0], [1], [0, 0, 1, 1], [], []>} : vector<8x32xbf16>, vector<32x192xbf16>, vector<8x192xf32> -> vector<8x192xf32>
    %1051 = arith.addf %1050, %11 : vector<8x192xf32>
    %1052 = vector.extract_strided_slice %1051 {offsets = [0, 0], sizes = [8, 64], strides = [1, 1]} : vector<8x192xf32> to vector<8x64xf32>
    %1053 = vector.extract_strided_slice %1051 {offsets = [0, 64], sizes = [8, 64], strides = [1, 1]} : vector<8x192xf32> to vector<8x64xf32>
    %1054 = arith.addf %1052, %1053 : vector<8x64xf32>
    %cst_245 = arith.constant 0.000000e+00 : f32
    %1055 = vector.broadcast %cst_245 : f32 to vector<8x64xf32>
    %1056 = arith.subf %1055, %1054 : vector<8x64xf32>
    %1057 = math.exp %1056 : vector<8x64xf32>
    %cst_246 = arith.constant 1.000000e+00 : f32
    %1058 = vector.broadcast %cst_246 : f32 to vector<8x64xf32>
    %1059 = arith.addf %1058, %1057 : vector<8x64xf32>
    %cst_247 = arith.constant 1.000000e+00 : f32
    %1060 = vector.broadcast %cst_247 : f32 to vector<8x64xf32>
    %1061 = arith.divf %1060, %1059 : vector<8x64xf32>
    %1062 = vector.extract_strided_slice %1061 {offsets = [0, 0], sizes = [8, 32], strides = [1, 1]} : vector<8x64xf32> to vector<8x32xf32>
    %1063 = vector.extract_strided_slice %1061 {offsets = [0, 32], sizes = [8, 32], strides = [1, 1]} : vector<8x64xf32> to vector<8x32xf32>
    %1064 = vector.extract_strided_slice %1051 {offsets = [0, 128], sizes = [8, 32], strides = [1, 1]} : vector<8x192xf32> to vector<8x32xf32>
    %1065 = vector.extract_strided_slice %1051 {offsets = [0, 160], sizes = [8, 32], strides = [1, 1]} : vector<8x192xf32> to vector<8x32xf32>
    %1066 = arith.mulf %1062, %1065 : vector<8x32xf32>
    %1067 = arith.addf %1064, %1066 : vector<8x32xf32>
    %1068 = math.tanh %1067 : vector<8x32xf32>
    %cst_248 = arith.constant 1.000000e+00 : f32
    %1069 = vector.broadcast %cst_248 : f32 to vector<8x32xf32>
    %1070 = arith.subf %1069, %1063 : vector<8x32xf32>
    %1071 = arith.mulf %1070, %1068 : vector<8x32xf32>
    %1072 = arith.mulf %1063, %1048 : vector<8x32xf32>
    %1073 = arith.addf %1071, %1072 : vector<8x32xf32>
    %1074 = arith.truncf %1073 : vector<8x32xf32> to vector<8x32xbf16>
    %cst_249 = arith.constant dense<0.000000e+00> : vector<8x192xf32>
    %1075 = tpu.matmul %1074, %7, %cst_249 {dimension_numbers = #tpu.dot_dimension_numbers<[1], [0], [0], [1], [0, 0, 1, 1], [], []>} : vector<8x32xbf16>, vector<32x192xbf16>, vector<8x192xf32> -> vector<8x192xf32>
    %1076 = arith.addf %1075, %15 : vector<8x192xf32>
    %1077 = vector.extract_strided_slice %1076 {offsets = [0, 0], sizes = [8, 64], strides = [1, 1]} : vector<8x192xf32> to vector<8x64xf32>
    %1078 = vector.extract_strided_slice %1076 {offsets = [0, 64], sizes = [8, 64], strides = [1, 1]} : vector<8x192xf32> to vector<8x64xf32>
    %1079 = arith.addf %1077, %1078 : vector<8x64xf32>
    %cst_250 = arith.constant 0.000000e+00 : f32
    %1080 = vector.broadcast %cst_250 : f32 to vector<8x64xf32>
    %1081 = arith.subf %1080, %1079 : vector<8x64xf32>
    %1082 = math.exp %1081 : vector<8x64xf32>
    %cst_251 = arith.constant 1.000000e+00 : f32
    %1083 = vector.broadcast %cst_251 : f32 to vector<8x64xf32>
    %1084 = arith.addf %1083, %1082 : vector<8x64xf32>
    %cst_252 = arith.constant 1.000000e+00 : f32
    %1085 = vector.broadcast %cst_252 : f32 to vector<8x64xf32>
    %1086 = arith.divf %1085, %1084 : vector<8x64xf32>
    %1087 = vector.extract_strided_slice %1086 {offsets = [0, 0], sizes = [8, 32], strides = [1, 1]} : vector<8x64xf32> to vector<8x32xf32>
    %1088 = vector.extract_strided_slice %1086 {offsets = [0, 32], sizes = [8, 32], strides = [1, 1]} : vector<8x64xf32> to vector<8x32xf32>
    %1089 = vector.extract_strided_slice %1076 {offsets = [0, 128], sizes = [8, 32], strides = [1, 1]} : vector<8x192xf32> to vector<8x32xf32>
    %1090 = vector.extract_strided_slice %1076 {offsets = [0, 160], sizes = [8, 32], strides = [1, 1]} : vector<8x192xf32> to vector<8x32xf32>
    %1091 = arith.mulf %1087, %1090 : vector<8x32xf32>
    %1092 = arith.addf %1089, %1091 : vector<8x32xf32>
    %1093 = math.tanh %1092 : vector<8x32xf32>
    %cst_253 = arith.constant 1.000000e+00 : f32
    %1094 = vector.broadcast %cst_253 : f32 to vector<8x32xf32>
    %1095 = arith.subf %1094, %1088 : vector<8x32xf32>
    %1096 = arith.mulf %1095, %1093 : vector<8x32xf32>
    %1097 = arith.mulf %1088, %1073 : vector<8x32xf32>
    %1098 = arith.addf %1096, %1097 : vector<8x32xf32>
    %1099 = vector.shape_cast %598 : vector<8x1xi1> to vector<8x1xi1>
    %1100 = vector.broadcast %1099 : vector<8x1xi1> to vector<8x32xi1>
    %1101 = arith.select %1100, %1098, %583 : vector<8x32xi1>, vector<8x32xf32>
    %cst_254 = arith.constant dense<0.000000e+00> : vector<8x2xf32>
    %1102 = tpu.matmul %1101, %4, %cst_254 {dimension_numbers = #tpu.dot_dimension_numbers<[1], [0], [0], [1], [0, 0, 1, 1], [], []>, precision = #tpu.contract_precision<fp32>} : vector<8x32xf32>, vector<32x2xf32>, vector<8x2xf32> -> vector<8x2xf32>
    %1103 = vector.broadcast %5 : vector<1x2xf32> to vector<8x2xf32>
    %1104 = arith.addf %1102, %1103 : vector<8x2xf32>
    %c0_255 = arith.constant 0 : index
    %c0_256 = arith.constant 0 : index
    %1105 = vector.load %arg4[%c0_255, %c0_256] : memref<8x2xf32, #tpu.memory_space<vmem>>, vector<8x2xf32>
    tpu.vector_store %arg4[%c0_255, %c0_256], %1104 {strides = array<i32>} : memref<8x2xf32, #tpu.memory_space<vmem>>, vector<8x2xf32>,
    return
  }
}

</mosaic_0001>

<bundles_post_ra>
// kernel: utd_graphnet_forward.1
= control target key start
LH: loop header
LB: loop body
LE: loop exit
PB: predicated region body
PF: predicated region fallthrough
CT: control target
= control target key end

     0   :  { %vm128_vm0 = vcmask 130048   ;;  %v10990_v0 = vmov 0.0|0.0   ;;  %vm10991_vm1 = vmmov 0   ;;  %v10992_v3 = vmov 0.0   ;;  %s10994_s23 = smov 64   ;;  %s10995_s24 = smov 96   ;;  %s12473_s3 = inlined_call_operand.vmem [shape: f32[248,32], index: 3, kind: input, shape index: {}]   ;;  %s12474_s1 = inlined_call_operand.vmem [shape: f32[8,16], index: 1, kind: input, shape index: {}]   ;;  %s12475_s0 = inlined_call_operand.vmem [shape: s32[40,16], index: 0, kind: input, shape index: {}]   ;;  %s12476_s2 = inlined_call_operand.vmem [shape: bf16[96,192], index: 2, kind: input, shape index: {}]   ;;  %s12477_s4 = inlined_call_operand.vmem [shape: f32[8,2], index: 4, kind: output, shape index: {}]  }
   0x1   :  { %10283 = vmatprep.subr.bf16.mxu0 %v10990_v0  ;;  %v18_v1 = vld [vmem:[%s12473_s3] sm:$0xff]  ;;  %v19_v2 = vld [vmem:[%s12473_s3 + $0x8] sm:$0xff]  ;;  %9603 = vmatprep.mubr.msk.f32.mxu0 %vm10991_vm1, %v10992_v3  ;;  %v48_v5 = vlaneseq  ;;  %v10993_v9 = vmov 0   ;;  %v85_v13 = vld [vmem:[%s12475_s0 + $0x10] sm:$0xff]  ;;  %vm592_vm4 = vcmask 64512   ;;  %vm1655_vm8 = vcmask 261120  }
   0x2   :  { %v123_v4 = vld [vmem:[%s12474_s1] sm:$0xff]  ;;  %v133_v6 = vand.u32 4294901760, %v18_v1  ;;  %v136_v7 = vand.u32 4294901760, %v19_v2  ;;  %10699 = vset.pattern.permute.xlu0 %v10993_v9  ;;  %10700 = vset.pattern.permute.xlu1 %v10993_v9  ;;  %v84_v14 = vld [vmem:[%s12475_s0 + $0x8] sm:$0xff]  ;;  %v86_v15 = vld [vmem:[%s12475_s0 + $0x18] sm:$0xff]  ;;  %s10996_s1 = smov 32  }
   0x3   :  { %v130_v8 = vsel %vm128_vm0, %v123_v4, 0  ;;  %v83_v10 = vld [vmem:[%s12475_s0] sm:$0xff]  ;;  %v11057_v16 = vshrl.u32 %v48_v5, 7  ;;  %97 = vperm.xlu1 %10700, %v85_v13   ;;  %v61_v28 = vld [vmem:[%s12476_s2 + $0x50] sm:$0x11]  ;;  %v89_v48 = vand.u32 127, %v48_v5 }
   0x4   :  { %v11042_v11 = vld [vmem:[%s12475_s0 + $0x20] ss:$0 sm:$0xff]  ;;  %v11045_v12 = vand.u32 4294901760, %v130_v8  ;;  %91 = vperm.xlu0 %10699, %v83_v10   ;;  %v10284_v17 = vpack.c.bf16 %v136_v7, %v133_v6  ;;  %v211_v18 = vsub.f32 %v18_v1, %v133_v6  ;;  %v218_v19 = vsub.f32 %v19_v2, %v136_v7  ;;  %v9192_v7 = vld [vmem:[%s12473_s3 + $0x10] ss:$0 sm:$0xff] }
   0x5   :  { %vm120_vm2 = vcmp.eq.s32.totalorder %v11042_v11, %v11057_v16  ;;  %v39_v23 = vld [vmem:[%s12476_s2 + $0x20] sm:$0x11]  ;;  %v50_v27 = vsub.s32 0, %v11057_v16  ;;  %v9184_v31 = vcombine.low %v61_v28, %v61_v28  ;;  %v9185_v35 = vcombine.high %v61_v28, %v61_v28 }
   0x6   :  { %v200_v20 = vsub.f32 %v130_v8, %v11045_v12  ;;  %10285 = vmatpush3.bf16.msra.mxu0 %v10284_v17  ;;  %v212_v21 = vand.u32 4294901760, %v211_v18  ;;  %v219_v22 = vand.u32 4294901760, %v218_v19  ;;  %v9182_v25 = vcombine.low %v39_v23, %v39_v23 }
   0x7   :  { %10286 = vmatprep.subr.bf16.mxu0 %v10990_v0  ;;  %v9183_v26 = vcombine.high %v39_v23, %v39_v23  ;;  %100 = vperm.xlu1 %10700, %v86_v15   ;;  %v68_v38 = vpack.i.b16 %v9184_v31, %v9184_v31  ;;  %v75_v42 = vpack.i.b16 %v9185_v35, %v9185_v35  ;;  %vm9176_vm13 = vcmask 15360  }
   0x8   :  { %v201_v24 = vand.u32 4294901760, %v200_v20  ;;  %94 = vperm.xlu0 %10699, %v84_v14   ;;  %v213_v29 = vsub.f32 %v211_v18, %v212_v21  ;;  %v220_v30 = vsub.f32 %v218_v19, %v219_v22  ;;  %v46_v33 = vpack.i.b16 %v9182_v25, %v9182_v25 }
   0x9   :  { %v53_v34 = vpack.i.b16 %v9183_v26, %v9183_v26  ;;  %v11074_v44 = vrot.slane %v68_v38, %v50_v27  ;;  %v11076_v45 = vrot.slane %v75_v42, %v50_v27  ;;  %v10290_v46 = vpack.c.bf16 %v218_v19, %v211_v18 }
   0xa   :  { %v202_v32 = vsub.f32 %v200_v20, %v201_v24  ;;  %v214_v36 = vand.u32 4294901760, %v213_v29  ;;  %v221_v37 = vand.u32 4294901760, %v220_v30  ;;  %v11070_v40 = vrot.slane %v46_v33, %v50_v27 }
   0xb   :  { %v11072_v41 = vrot.slane %v53_v34, %v50_v27  ;;  %v10296_v47 = vpack.c.bf16 %v219_v22, %v212_v21 }
   0xc   :  { %v203_v39 = vand.u32 4294901760, %v202_v32  ;;  %v10287_v43 = vpack.c.bf16 %v221_v37, %v214_v36  ;;  %v11205_v32 = vsel %vm120_vm2, 1.0, %v10992_v3 }
   0xd   :  { %v1185_v34 = vsel %vm128_vm0, %v11205_v32, 0 }
   0xe   :  { %9604 = vmatmul.mubr.f32.vlgmr.msra.gmra.mrb[0].mxu0 %v203_v39  ;;  %v11209_v38 = vsub.f32 %v1185_v34, %v1185_v34 }
   0xf   :  { %10288 = vmatpush3.bf16.msra.mxu0 %v10287_v43  ;;  %9610 = vmatprep.mubr.msk.f32.mxu0 %vm10991_vm1, %v10992_v3 }
  0x10   :  { %10289 = vmatprep.subr.bf16.mxu0 %v10990_v0 }
  0x16   :  { %9611 = vmatmul.mubr.f32.vlgmr.msra.gmra.mrb[0].mxu0 %v11045_v12 }
  0x17   :  { %10291 = vmatpush3.bf16.msra.mxu0 %v10290_v46  ;;  %9617 = vmatprep.mubr.msk.f32.mxu0 %vm10991_vm1, %v10992_v3 }
  0x18   :  { %10292 = vmatprep.subr.bf16.mxu0 %v10990_v0 }
  0x1e   :  { %9618 = vmatmul.mubr.f32.vlgmr.msra.gmra.mrb[0].mxu0 %v200_v20 }
  0x1f   :  { %10294 = vmatpush3.bf16.msra.mxu0 %v10284_v17  ;;  %9624 = vmatprep.mubr.msk.f32.mxu0 %vm10991_vm1, %v10992_v3 }
  0x20   :  { %10295 = vmatprep.subr.bf16.mxu0 %v10990_v0 }
  0x26   :  { %9625 = vmatmul.mubr.f32.vlgmr.msra.gmra.mrb[0].mxu0 %v201_v24 }
  0x27   :  { %10297 = vmatpush3.bf16.msra.mxu0 %v10296_v47  ;;  %9631 = vmatprep.mubr.msk.f32.mxu0 %vm10991_vm1, %v10992_v3 }
  0x28   :  { %10298 = vmatprep.subr.bf16.mxu0 %v10990_v0 }
  0x2e   :  { %9632 = vmatmul.mubr.f32.vlgmr.msra.gmra.mrb[0].mxu0 %v11045_v12 }
  0x2f   :  { %10300 = vmatpush3.bf16.msra.mxu0 %v10284_v17  ;;  %9638 = vmatprep.mubr.msk.f32.mxu0 %vm10991_vm1, %v10992_v3 }
  0x36   :  { %9639 = vmatmul.mubr.f32.vlgmr.msra.gmra.mrb[0].mxu0 %v11045_v12 }
  0x82   :  { %v98_v56 = vpop.permute.xlu1 %97 }
  0x83   :  { %v92_v49 = vpop.permute.xlu0 %91  ;;  %vm104_vm6 = vcmp.eq.s32.totalorder %v98_v56, %v89_v48 }
  0x84   :  { %vm102_vm3 = vcmp.eq.s32.totalorder %v92_v49, %v89_v48  ;;  %v11116_v60 = vsel %vm104_vm6, 1.0, %v10992_v3 }
  0x85   :  { %v11097_v50 = vsel %vm102_vm3, 1.0, %v10992_v3  ;;  %v600_v63 = vsel %vm592_vm4, %v11116_v60, 0 }
  0x86   :  { %v594_v51 = vsel %vm592_vm4, %v11097_v50, 0  ;;  %v101_v58 = vpop.permute.xlu1 %100  ;;  %v11127_v2 = vsub.f32 %v600_v63, %v600_v63 }
  0x87   :  { %v11101_v52 = vsub.f32 %v594_v51, %v594_v51  ;;  %v95_v57 = vpop.permute.xlu0 %94  ;;  %vm105_vm7 = vcmp.eq.s32.totalorder %v101_v58, %v89_v48 }
  0x88   :  { %vm103_vm5 = vcmp.eq.s32.totalorder %v95_v57, %v89_v48  ;;  %v11121_v62 = vsel %vm105_vm7, 1.0, %v10992_v3  ;;  %v11140_v8 = vand.u32 4294901760, %v11127_v2  ;;  %v11212_v48 = vand.u32 4294901760, %v11209_v38 }
  0x89   :  { %9659 = vmatprep.mubr.f32.mxu1 %v11101_v52  ;;  %v11105_v53 = vand.u32 4294901760, %v11101_v52  ;;  %v11113_v59 = vsel %vm103_vm5, 1.0, %v10992_v3  ;;  %v603_v4 = vsel %vm592_vm4, %v11121_v62, 0 }
  0x8a   :  { %v597_v61 = vsel %vm592_vm4, %v11113_v59, 0  ;;  %v11134_v6 = vsub.f32 %v603_v4, %v603_v4  ;;  %v694_v17 = vsub.f32 %v11127_v2, %v11140_v8 }
  0x8b   :  { %v674_v54 = vsub.f32 %v11101_v52, %v11105_v53  ;;  %v11125_v1 = vsub.f32 %v597_v61, %v597_v61 }
  0x8c   :  { %v11145_v15 = vand.u32 4294901760, %v11134_v6  ;;  %v11156_v22 = vand.u32 4294901760, %v694_v17 }
  0x8d   :  { %v11109_v55 = vand.u32 4294901760, %v674_v54  ;;  %v11132_v5 = vand.u32 4294901760, %v11125_v1  ;;  %v1257_v54 = vsub.f32 %v11209_v38, %v11212_v48 }
  0x8e   :  { %v704_v21 = vsub.f32 %v11134_v6, %v11145_v15 }
  0x8f   :  { %9643 = vmatprep.mubr.f32.mxu0 %v11109_v55  ;;  %v684_v14 = vsub.f32 %v11125_v1, %v11132_v5  ;;  %v11216_v4 = vand.u32 4294901760, %v1257_v54 }
  0x90   :  { %v11160_v24 = vand.u32 4294901760, %v704_v21 }
  0x91   :  { %v11152_v20 = vand.u32 4294901760, %v684_v14 }
 0x109   :  { %v587_v10 = vpop.f32.mrb[0].mxu0 }
 0x10a   :  { %v10589_v12 = vadd.f32 %v9192_v7, %v587_v10  ;;  %v9640_v13 = vpop.f32.mrb[1].mxu0 }
 0x10c   :  { %v11149_v18 = vmax.f32 %v10589_v12, 0.0 }
 0x10e   :  { %v606_v19 = vand.u32 4294901760, %v11149_v18 }
 0x110   :  { %v713_v23 = vsub.f32 %v11149_v18, %v606_v19  ;;  %9641 = vmatprep.subr.mxu0 %v606_v19 }
 0x111   :  { %9642 = vmatpush3.msra.mxu0 %v606_v19 }
 0x112   :  { %9644 = vmatmul.mubr.f32.vlgmr.msra.gmra.mrb[2].mxu0 %v11152_v20  ;;  %9657 = vmatprep.subr.mxu1 %v713_v23  ;;  %v714_v25 = vand.u32 4294901760, %v713_v23 }
 0x113   :  { %9658 = vmatpush3.msra.mxu1 %v713_v23  ;;  %9646 = vmatprep.mubr.f32.mxu0 %v11156_v22 }
 0x114   :  { %9660 = vmatmul.mubr.f32.vlgmr.msra.gmra.mrb[0].mxu1 %v11125_v1  ;;  %9665 = vmatprep.subr.mxu1 %v606_v19  ;;  %v715_v26 = vsub.f32 %v713_v23, %v714_v25  ;;  %v1650_v23 = vld [vmem:[%s12473_s3 + $0x38] sm:$0xff] }
 0x115   :  { %9662 = vmatprep.mubr.f32.mxu1 %v11127_v2  ;;  %9666 = vmatpush3.msra.mxu1 %v606_v19 }
 0x116   :  { %9647 = vmatmul.mubr.f32.gmra.mrb[4].mxu0 %v11160_v24  ;;  %9673 = vmatprep.subr.mxu1 %v714_v25  ;;  %v716_v27 = vand.u32 4294901760, %v715_v26  ;;  %v1660_v26 = vand.u32 4294901760, %v1650_v23 }
 0x117   :  { %9651 = vmatprep.mubr.msk.f32.mxu0 %vm592_vm4, %v11097_v50 }
 0x118   :  { %9649 = vmatprep.subr.mxu0 %v716_v27  ;;  %9663 = vmatmul.mubr.f32.gmra.mrb[2].mxu1 %v11134_v6 }
 0x119   :  { %9650 = vmatpush3.msra.mxu0 %v716_v27  ;;  %9667 = vmatprep.mubr.f32.mxu1 %v11105_v53 }
 0x11a   :  { %9652 = vmatmul.mubr.msk.f32.vlgmr.msra.gmra.mrb[2].mxu0 %vm592_vm4, %v11113_v59  ;;  %10301 = vmatprep.subr.bf16.mxu0 %v10990_v0 }
 0x11b   :  { %9654 = vmatprep.mubr.msk.f32.mxu0 %vm592_vm4, %v11116_v60 }
 0x11c   :  { %9668 = vmatmul.mubr.f32.vlgmr.msra.gmra.mrb[0].mxu1 %v11132_v5 }
 0x11d   :  { %9674 = vmatpush3.msra.mxu1 %v714_v25  ;;  %9670 = vmatprep.mubr.f32.mxu1 %v11140_v8  ;;  %v1651_v25 = vld [vmem:[%s12473_s3 + $0x40] sm:$0xff] }
 0x11e   :  { %9681 = vmatprep.subr.mxu1 %v606_v19  ;;  %9655 = vmatmul.mubr.msk.f32.gmra.mrb[4].mxu0 %vm592_vm4, %v11121_v62  ;;  %v1663_v27 = vand.u32 4294901760, %v1651_v25 }
 0x11f   :  { %9693 = vmatprep.mubr.msk.f32.mxu0 %vm10991_vm1, %v10992_v3 }
 0x120   :  { %9671 = vmatmul.mubr.f32.gmra.mrb[2].mxu1 %v11145_v15 }
 0x121   :  { %9675 = vmatprep.mubr.msk.f32.mxu1 %vm592_vm4, %v11097_v50 }
 0x124   :  { %9676 = vmatmul.mubr.msk.f32.vlgmr.msra.gmra.mrb[0].mxu1 %vm592_vm4, %v11113_v59 }
 0x125   :  { %9682 = vmatpush3.msra.mxu1 %v606_v19  ;;  %9678 = vmatprep.mubr.msk.f32.mxu1 %vm592_vm4, %v11116_v60 }
 0x126   :  { %10319 = vmatprep.subr.bf16.mxu1 %v10990_v0 }
 0x128   :  { %9679 = vmatmul.mubr.msk.f32.gmra.mrb[2].mxu1 %vm592_vm4, %v11121_v62 }
 0x129   :  { %9683 = vmatprep.mubr.msk.f32.mxu1 %vm592_vm4, %v11097_v50 }
 0x12c   :  { %9684 = vmatmul.mubr.msk.f32.vlgmr.msra.gmra.mrb[0].mxu1 %vm592_vm4, %v11113_v59 }
 0x12d   :  { %9686 = vmatprep.mubr.msk.f32.mxu1 %vm592_vm4, %v11116_v60 }
 0x130   :  { %9687 = vmatmul.mubr.msk.f32.gmra.mrb[2].mxu1 %vm592_vm4, %v11121_v62 }
 0x131   :  { %9739 = vmatprep.mubr.msk.f32.mxu1 %vm10991_vm1, %v10992_v3 }
 0x1ed   :  { %v9653_v28 = vpop.f32.mrb[2].mxu0 }
 0x1ee   :  { %v783_v29 = vpop.f32.mrb[3].mxu0 }
 0x1f1   :  { %v9656_v30 = vpop.f32.mrb[4].mxu0 }
 0x1f2   :  { %v795_v31 = vpop.f32.mrb[5].mxu0 }
 0x1ff   :  { %v9685_v33 = vpop.f32.mrb[0].mxu1 }
 0x200   :  { %v10590_v35 = vadd.f32 %v9685_v33, %v9653_v28  ;;  %v1158_v36 = vpop.f32.mrb[1].mxu1  ;;  %v11238_v28 = vsub.f32 %v1650_v23, %v1660_v26 }
 0x201   :  { %v10591_v37 = vadd.f32 %v1158_v36, %v783_v29  ;;  %v11240_v29 = vsub.f32 %v1651_v25, %v1663_v27 }
 0x203   :  { %v9688_v39 = vpop.f32.mrb[2].mxu1 }
 0x204   :  { %v10592_v42 = vadd.f32 %v9688_v39, %v9656_v30  ;;  %v1170_v43 = vpop.f32.mrb[3].mxu1  ;;  %v1741_v30 = vand.u32 4294901760, %v11238_v28  ;;  %v1652_v39 = vld [vmem:[%s12473_s3 + $0x48] sm:$0xff] }
 0x205   :  { %v10593_v46 = vadd.f32 %v1170_v43, %v795_v31  ;;  %v1748_v31 = vand.u32 4294901760, %v11240_v29  ;;  %v1666_v43 = vand.u32 4294901760, %v1652_v39 }
 0x206   :  { %v1181_v47 = vsub.f32 %v10590_v35, %v10592_v42  ;;  %v1742_v33 = vsub.f32 %v11238_v28, %v1741_v30  ;;  %v1653_v42 = vld [vmem:[%s12473_s3 + $0x50] sm:$0xff] }
 0x207   :  { %v1180_v11 = vsub.f32 %v10591_v37, %v10593_v46  ;;  %v1749_v34 = vsub.f32 %v11240_v29, %v1748_v31  ;;  %v1669_v46 = vand.u32 4294901760, %v1653_v42 }
 0x208   :  { %v1183_v16 = vand.u32 2147483647, %v1181_v47  ;;  %v1743_v35 = vand.u32 4294901760, %v1742_v33  ;;  %v11270_v47 = vsub.f32 %v1652_v39, %v1666_v43 }
 0x209   :  { %v1182_v49 = vand.u32 2147483647, %v1180_v11  ;;  %v1750_v36 = vand.u32 4294901760, %v1749_v34  ;;  %v11272_v11 = vsub.f32 %v1653_v42, %v1669_v46 }
 0x20a   :  { %v1191_v51 = vand.u32 4294901760, %v1183_v16 }
 0x20b   :  { %v1188_v56 = vand.u32 4294901760, %v1182_v49  ;;  %v10326_v37 = vpack.c.bf16 %v1750_v36, %v1743_v35 }
 0x20c   :  { %v1273_v57 = vsub.f32 %v1183_v16, %v1191_v51  ;;  %v1755_v16 = vand.u32 4294901760, %v11270_v47 }
 0x20d   :  { %v10302_v58 = vpack.c.bf16 %v1191_v51, %v1188_v56  ;;  %v1266_v61 = vsub.f32 %v1182_v49, %v1188_v56  ;;  %v1762_v49 = vand.u32 4294901760, %v11272_v11 }
 0x20e   :  { %v1274_v63 = vand.u32 4294901760, %v1273_v57  ;;  %v1756_v51 = vsub.f32 %v11270_v47, %v1755_v16 }
 0x20f   :  { %v1267_v7 = vand.u32 4294901760, %v1266_v61  ;;  %10303 = vmatpush3.bf16.msra.mxu0 %v10302_v58  ;;  %v10308_v10 = vpack.c.bf16 %v1273_v57, %v1266_v61  ;;  %v1763_v54 = vsub.f32 %v11272_v11, %v1762_v49 }
 0x210   :  { %v1275_v12 = vsub.f32 %v1273_v57, %v1274_v63  ;;  %10304 = vmatprep.subr.bf16.mxu0 %v10990_v0  ;;  %v1757_v56 = vand.u32 4294901760, %v1756_v51 }
 0x211   :  { %v1268_v13 = vsub.f32 %v1266_v61, %v1267_v7  ;;  %v10314_v14 = vpack.c.bf16 %v1274_v63, %v1267_v7  ;;  %v1764_v57 = vand.u32 4294901760, %v1763_v54  ;;  %v10320_v61 = vpack.c.bf16 %v1663_v27, %v1660_v26 }
 0x212   :  { %9694 = vmatmul.mubr.f32.vlgmr.msra.gmra.mrb[6].mxu0 %v11216_v4  ;;  %v1276_v17 = vand.u32 4294901760, %v1275_v12  ;;  %v10323_v63 = vpack.c.bf16 %v1669_v46, %v1666_v43  ;;  %v10335_v7 = vpack.c.bf16 %v11272_v11, %v11270_v47  ;;  %v11288_v12 = vld [vmem:[%s12473_s3 + $0x18] sm:$0xff] }
 0x213   :  { %v1269_v19 = vand.u32 4294901760, %v1268_v13  ;;  %9700 = vmatprep.mubr.msk.f32.mxu0 %vm10991_vm1, %v10992_v3  ;;  %10321 = vmatpush3.bf16.msra.mxu1 %v10320_v61  ;;  %v11293_v13 = vld [vmem:[%s12473_s3 + $0x20] sm:$0xff] }
 0x214   :  { %10322 = vmatprep.subr.bf16.mxu1 %v10990_v0 }
 0x215   :  { %v10305_v21 = vpack.c.bf16 %v1276_v17, %v1269_v19  ;;  %v2151_v17 = vand.u32 4294901760, %v11293_v13  ;;  %v11300_v19 = vld [vmem:[%s12473_s3 + $0x28] sm:$0xff] }
 0x216   :  { %v2154_v34 = vand.u32 4294901760, %v11300_v19 }
 0x217   :  { %10306 = vmatpush3.bf16.msra.mxu0 %v10305_v21  ;;  %10324 = vmatpush3.bf16.msra.mxu1 %v10323_v63  ;;  %v11305_v21 = vld [vmem:[%s12473_s3 + $0x30] sm:$0xff]  ;;  %v11316_v33 = vsub.f32 %v11293_v13, %v2151_v17  ;;  %v11402_v13 = vld [vmem:[%s12476_s2 + $0x4] ss:$8 sps:$4 sm:$0xff]  }
 0x218   :  { %10307 = vmatprep.subr.bf16.mxu0 %v10990_v0  ;;  %10331 = vmatprep.subr.bf16.mxu1 %v10990_v0  ;;  %v2157_v35 = vand.u32 4294901760, %v11305_v21  ;;  %v11327_v43 = vsub.f32 %v11300_v19, %v2154_v34  ;;  %v11424_v19 = vld [vmem:[%s12476_s2 + $0x14] ss:$8 sps:$4 sm:$0xff]  }
 0x219   :  { %v2236_v42 = vand.u32 4294901760, %v11316_v33 }
 0x21a   :  { %9701 = vmatmul.mubr.msk.f32.vlgmr.msra.gmra.mrb[6].mxu0 %vm128_vm0, %v11205_v32  ;;  %v11332_v46 = vsub.f32 %v11305_v21, %v2157_v35  ;;  %v2243_v54 = vand.u32 4294901760, %v11327_v43 }
 0x21b   :  { %10309 = vmatpush3.bf16.msra.mxu0 %v10308_v10  ;;  %9707 = vmatprep.mubr.msk.f32.mxu0 %vm10991_vm1, %v10992_v3  ;;  %v11283_v10 = vpack.c.bf16 %v1762_v49, %v1755_v16  ;;  %v10332_v16 = vpack.c.bf16 %v11240_v29, %v11238_v28  ;;  %v2237_v51 = vsub.f32 %v11316_v33, %v2236_v42 }
 0x21c   :  { %10310 = vmatprep.subr.bf16.mxu0 %v10990_v0 }
 0x222   :  { %9708 = vmatmul.mubr.f32.vlgmr.msra.gmra.mrb[6].mxu0 %v11209_v38 }
 0x223   :  { %10312 = vmatpush3.bf16.msra.mxu0 %v10302_v58  ;;  %9714 = vmatprep.mubr.msk.f32.mxu0 %vm10991_vm1, %v10992_v3 }
 0x224   :  { %10313 = vmatprep.subr.bf16.mxu0 %v10990_v0 }
 0x22a   :  { %9715 = vmatmul.mubr.f32.vlgmr.msra.gmra.mrb[6].mxu0 %v11212_v48 }
 0x22b   :  { %10315 = vmatpush3.bf16.msra.mxu0 %v10314_v14  ;;  %9721 = vmatprep.mubr.msk.f32.mxu0 %vm10991_vm1, %v10992_v3  ;;  %v2148_v14 = vand.u32 4294901760, %v11288_v12 }
 0x22c   :  { %10316 = vmatprep.subr.bf16.mxu0 %v10990_v0 }
 0x22d   :  { %v11310_v25 = vsub.f32 %v11288_v12, %v2148_v14  ;;  %v10356_v28 = vpack.c.bf16 %v2151_v17, %v2148_v14  ;;  %v10371_v12 = vpack.c.bf16 %v11332_v46, %v11327_v43  ;;  %v11417_v17 = vld [vmem:[%s12476_s2] ss:$8 sps:$4 sm:$0xff]  }
 0x22f   :  { %v2229_v39 = vand.u32 4294901760, %v11310_v25 }
 0x231   :  { %v2230_v49 = vsub.f32 %v11310_v25, %v2229_v39  ;;  %v10380_v14 = vpack.c.bf16 %v2236_v42, %v2229_v39 }
 0x232   :  { %9722 = vmatmul.mubr.msk.f32.vlgmr.msra.gmra.mrb[6].mxu0 %vm128_vm0, %v11205_v32 }
 0x233   :  { %10318 = vmatpush3.bf16.msra.mxu0 %v10302_v58  ;;  %9728 = vmatprep.mubr.msk.f32.mxu0 %vm10991_vm1, %v10992_v3  ;;  %v10329_v58 = vpack.c.bf16 %v1764_v57, %v1757_v56  ;;  %v2250_v56 = vand.u32 4294901760, %v11332_v46 }
 0x234   :  { %10325 = vmatprep.subr.bf16.mxu0 %v10990_v0 }
 0x235   :  { %v10383_v21 = vpack.c.bf16 %v2250_v56, %v2243_v54 }
 0x23a   :  { %9729 = vmatmul.mubr.msk.f32.vlgmr.msra.gmra.mrb[6].mxu0 %vm128_vm0, %v11205_v32 }
 0x23b   :  { %10327 = vmatpush3.bf16.msra.mxu0 %v10326_v37  ;;  %9750 = vmatprep.mubr.msk.f32.mxu0 %vm10991_vm1, %v10992_v3 }
 0x23c   :  { %10328 = vmatprep.subr.bf16.mxu0 %v10990_v0 }
 0x23f   :  { %10330 = vmatpush3.bf16.msra.mxu0 %v10329_v58  ;;  %v2231_v58 = vand.u32 4294901760, %v2230_v49 }
 0x240   :  { %10337 = vmatprep.subr.bf16.mxu0 %v10990_v0 }
 0x30d   :  { %v1642_v23 = vpop.f32.mrb[6].mxu0 }
 0x30e   :  { %v1657_v26 = vsel %vm1655_vm8, %v1642_v23, 0  ;;  %v9730_v27 = vpop.f32.mrb[7].mxu0  ;;  %v2238_v23 = vand.u32 4294901760, %v2237_v51 }
 0x30f   :  { %v1728_v36 = vand.u32 4294901760, %v1657_v26  ;;  %v2251_v27 = vsub.f32 %v11332_v46, %v2250_v56  ;;  %v23_v46 = vld [vmem:[%s12473_s3 + $0xb8] sm:$0xff] }
 0x310   :  { %v2652_v56 = vand.u32 4294901760, %v23_v46 }
 0x311   :  { %v1729_v37 = vsub.f32 %v1657_v26, %v1728_v36  ;;  %9751 = vmatmul.mubr.f32.vlgmr.msra.gmra.mrb[8].mxu0 %v1728_v36  ;;  %v2244_v26 = vsub.f32 %v11327_v43, %v2243_v54  ;;  %v2252_v49 = vand.u32 4294901760, %v2251_v27  ;;  %v24_v54 = vld [vmem:[%s12473_s3 + $0xc0] sm:$0xff] }
 0x312   :  { %10339 = vmatpush3.bf16.msra.mxu0 %v10320_v61  ;;  %9772 = vmatprep.mubr.msk.f32.mxu0 %vm10991_vm1, %v10992_v3 }
 0x313   :  { %v1730_v47 = vand.u32 4294901760, %v1729_v37  ;;  %10340 = vmatprep.subr.bf16.mxu0 %v10990_v0 }
 0x315   :  { %v1731_v11 = vsub.f32 %v1729_v37, %v1730_v47 }
 0x316   :  { %10342 = vmatpush3.bf16.msra.mxu0 %v10323_v63 }
 0x317   :  { %v1732_v57 = vand.u32 4294901760, %v1731_v11  ;;  %10349 = vmatprep.subr.bf16.mxu0 %v10990_v0  ;;  %v10362_v11 = vpack.c.bf16 %v2238_v23, %v2231_v58 }
 0x319   :  { %9773 = vmatmul.mubr.f32.vlgmr.msra.gmra.mrb[10].mxu0 %v1730_v47  ;;  %9740 = vmatmul.mubr.f32.vlgmr.msra.gmra.mrb[4].mxu1 %v1732_v57  ;;  %v2145_v47 = vsel %vm1655_vm8, %v11149_v18, 0  ;;  %v2655_v57 = vand.u32 4294901760, %v24_v54 }
 0x31a   :  { %10333 = vmatpush3.bf16.msra.mxu1 %v10332_v16  ;;  %10351 = vmatpush3.bf16.msra.mxu0 %v10320_v61  ;;  %v10344_v61 = vpack.c.bf16 %v1748_v31, %v1741_v30  ;;  %v2245_v16 = vand.u32 4294901760, %v2244_v26  ;;  %v11364_v51 = vand.u32 4294901760, %v2145_v47  ;;  %v10359_v30 = vpack.c.bf16 %v2157_v35, %v2154_v34  ;;  %v21_v34 = vld [vmem:[%s12473_s3 + $0xa8] sm:$0xff]  ;;  %v22_v35 = vld [vmem:[%s12473_s3 + $0xb0] sm:$0xff] }
 0x31b   :  { %10334 = vmatprep.subr.bf16.mxu1 %v10990_v0  ;;  %10352 = vmatprep.subr.bf16.mxu0 %v10990_v0  ;;  %v11469_v26 = vpack.c.bf16 %v2655_v57, %v2652_v56 }
 0x31c   :  { %9761 = vmatprep.mubr.msk.f32.mxu1 %vm10991_vm1, %v10992_v3  ;;  %9794 = vmatprep.mubr.msk.f32.mxu0 %vm10991_vm1, %v10992_v3  ;;  %v10365_v18 = vpack.c.bf16 %v2252_v49, %v2245_v16 }
 0x31e   :  { %10336 = vmatpush3.bf16.msra.mxu1 %v10335_v7  ;;  %10354 = vmatpush3.bf16.msra.mxu0 %v10323_v63  ;;  %v2217_v63 = vsub.f32 %v2145_v47, %v11364_v51  ;;  %v10368_v7 = vpack.c.bf16 %v11316_v33, %v11310_v25  ;;  %v11436_v25 = vld [vmem:[%s12476_s2 + $0x10] ss:$8 sps:$4 sm:$0xff]   ;;  %v11443_v33 = vld [vmem:[%s12476_s2 + $0x34] ss:$8 sps:$4 sm:$0xff]  }
 0x31f   :  { %10343 = vmatprep.subr.bf16.mxu1 %v10990_v0  ;;  %10361 = vmatprep.subr.bf16.mxu0 %v10990_v0 }
 0x320   :  { %v2218_v29 = vand.u32 4294901760, %v2217_v63 }
 0x321   :  { %9762 = vmatmul.mubr.f32.vlgmr.msra.gmra.mrb[6].mxu1 %v1729_v37  ;;  %9795 = vmatmul.mubr.f32.vlgmr.msra.gmra.mrb[12].mxu0 %v1728_v36  ;;  %v2649_v37 = vand.u32 4294901760, %v22_v35 }
 0x322   :  { %10345 = vmatpush3.bf16.msra.mxu1 %v10344_v61  ;;  %10363 = vmatpush3.bf16.msra.mxu0 %v10362_v11  ;;  %v2219_v31 = vsub.f32 %v2217_v63, %v2218_v29  ;;  %v2740_v61 = vsub.f32 %v23_v46, %v2652_v56  ;;  %v2747_v11 = vsub.f32 %v24_v54, %v2655_v57 }
 0x323   :  { %10346 = vmatprep.subr.bf16.mxu1 %v10990_v0  ;;  %10364 = vmatprep.subr.bf16.mxu0 %v10990_v0  ;;  %v2733_v43 = vsub.f32 %v22_v35, %v2649_v37 }
 0x324   :  { %9783 = vmatprep.mubr.msk.f32.mxu1 %vm10991_vm1, %v10992_v3  ;;  %9816 = vmatprep.mubr.msk.f32.mxu0 %vm10991_vm1, %v10992_v3 }
 0x325   :  { %v2734_v23 = vand.u32 4294901760, %v2733_v43 }
 0x326   :  { %10348 = vmatpush3.bf16.msra.mxu1 %v11283_v10  ;;  %10366 = vmatpush3.bf16.msra.mxu0 %v10365_v18  ;;  %v2220_v10 = vand.u32 4294901760, %v2219_v31  ;;  %v2748_v18 = vand.u32 4294901760, %v2747_v11 }
 0x327   :  { %10355 = vmatprep.subr.bf16.mxu1 %v10990_v0  ;;  %10373 = vmatprep.subr.bf16.mxu0 %v10990_v0  ;;  %v2735_v47 = vsub.f32 %v2733_v43, %v2734_v23 }
 0x329   :  { %9784 = vmatmul.mubr.f32.vlgmr.msra.gmra.mrb[8].mxu1 %v1728_v36  ;;  %9817 = vmatmul.mubr.f32.vlgmr.msra.gmra.mrb[14].mxu0 %v11364_v51  ;;  %v2646_v36 = vand.u32 4294901760, %v21_v34  ;;  %v2736_v49 = vand.u32 4294901760, %v2735_v47 }
 0x32a   :  { %10357 = vmatpush3.bf16.msra.mxu1 %v10356_v28  ;;  %10375 = vmatpush3.bf16.msra.mxu0 %v10356_v28 }
 0x32b   :  { %10358 = vmatprep.subr.bf16.mxu1 %v10990_v0  ;;  %10376 = vmatprep.subr.bf16.mxu0 %v10990_v0  ;;  %v11459_v39 = vpack.c.bf16 %v2649_v37, %v2646_v36  ;;  %v2726_v42 = vsub.f32 %v21_v34, %v2646_v36 }
 0x32c   :  { %9805 = vmatprep.mubr.msk.f32.mxu1 %vm10991_vm1, %v10992_v3  ;;  %9838 = vmatprep.mubr.msk.f32.mxu0 %vm10991_vm1, %v10992_v3 }
 0x32d   :  { %v2727_v58 = vand.u32 4294901760, %v2726_v42 }
 0x32e   :  { %10360 = vmatpush3.bf16.msra.mxu1 %v10359_v30  ;;  %10378 = vmatpush3.bf16.msra.mxu0 %v10359_v30 }
 0x32f   :  { %10367 = vmatprep.subr.bf16.mxu1 %v10990_v0  ;;  %10385 = vmatprep.subr.bf16.mxu0 %v10990_v0  ;;  %v2728_v27 = vsub.f32 %v2726_v42, %v2727_v58 }
 0x331   :  { %9806 = vmatmul.mubr.f32.vlgmr.msra.gmra.mrb[10].mxu1 %v2220_v10  ;;  %9839 = vmatmul.mubr.f32.vlgmr.msra.gmra.mrb[16].mxu0 %v2218_v29  ;;  %v2729_v16 = vand.u32 4294901760, %v2728_v27  ;;  %v2749_v29 = vsub.f32 %v2747_v11, %v2748_v18  ;;  %v11477_v10 = vpack.c.bf16 %v2733_v43, %v2726_v42 }
 0x332   :  { %10369 = vmatpush3.bf16.msra.mxu1 %v10368_v7  ;;  %10387 = vmatpush3.bf16.msra.mxu0 %v10356_v28 }
 0x333   :  { %10370 = vmatprep.subr.bf16.mxu1 %v10990_v0  ;;  %10388 = vmatprep.subr.bf16.mxu0 %v10990_v0  ;;  %v2750_v31 = vand.u32 4294901760, %v2749_v29 }
 0x334   :  { %9827 = vmatprep.mubr.msk.f32.mxu1 %vm10991_vm1, %v10992_v3  ;;  %9860 = vmatprep.mubr.msk.f32.mxu0 %vm10991_vm1, %v10992_v3 }
 0x336   :  { %10372 = vmatpush3.bf16.msra.mxu1 %v10371_v12  ;;  %10390 = vmatpush3.bf16.msra.mxu0 %v10359_v30  ;;  %v11479_v12 = vpack.c.bf16 %v2747_v11, %v2740_v61 }
 0x337   :  { %10379 = vmatprep.subr.bf16.mxu1 %v10990_v0  ;;  %3164 = vmatprep.subr.bf16.mxu0 %v11402_v13 }
 0x339   :  { %9828 = vmatmul.mubr.f32.vlgmr.msra.gmra.mrb[12].mxu1 %v2217_v63  ;;  %9861 = vmatmul.mubr.f32.vlgmr.msra.gmra.mrb[18].mxu0 %v11364_v51  ;;  %v11473_v63 = vpack.c.bf16 %v2736_v49, %v2729_v16 }
 0x33a   :  { %10381 = vmatpush3.bf16.msra.mxu1 %v10380_v14  ;;  %9849 = vmatprep.mubr.msk.f32.mxu1 %vm10991_vm1, %v10992_v3  ;;  %v11481_v14 = vpack.c.bf16 %v2734_v23, %v2727_v58 }
 0x33b   :  { %10382 = vmatprep.subr.bf16.mxu1 %v10990_v0  ;;  %3165 = vmatpush1.bf16.msra.mxu0 %v11417_v17 }
 0x33c   :  { %3166 = vmatprep.subr.bf16.mxu0 %v11424_v19  ;;  %3196 = vmatprep.mubr.bf16.mxu0 %v10993_v9 }
 0x33e   :  { %10384 = vmatpush3.bf16.msra.mxu1 %v10383_v21 }
 0x33f   :  { %3167 = vmatpush1.bf16.msra.mxu0 %v11436_v25  ;;  %10391 = vmatprep.subr.bf16.mxu1 %v10990_v0 }
 0x340   :  { %3261 = vmatprep.subr.bf16.mxu0 %v11443_v33 }
 0x341   :  { %9850 = vmatmul.mubr.f32.vlgmr.msra.gmra.mrb[14].mxu1 %v11364_v51  ;;  %v2741_v51 = vand.u32 4294901760, %v2740_v61 }
 0x342   :  { %9871 = vmatprep.mubr.msk.f32.mxu1 %vm10991_vm1, %v10992_v3  ;;  %10393 = vmatpush3.bf16.msra.mxu1 %v11459_v39 }
 0x343   :  { %10394 = vmatprep.subr.bf16.mxu1 %v10990_v0  ;;  %v2742_v28 = vsub.f32 %v2740_v61, %v2741_v51  ;;  %v11483_v21 = vpack.c.bf16 %v2748_v18, %v2741_v51 }
 0x345   :  { %v2743_v30 = vand.u32 4294901760, %v2742_v28 }
 0x346   :  { %10396 = vmatpush3.bf16.msra.mxu1 %v11469_v26 }
 0x347   :  { %10397 = vmatprep.subr.bf16.mxu1 %v10990_v0  ;;  %v11475_v7 = vpack.c.bf16 %v2750_v31, %v2743_v30 }
 0x3e4   :  { %v1825_v34 = vpop.f32.mrb[8].mxu0 }
 0x3e5   :  { %v9752_v35 = vpop.f32.mrb[9].mxu0 }
 0x3ec   :  { %v1982_v36 = vpop.f32.mrb[10].mxu0  ;;  %v1734_v37 = vpop.f32.mrb[4].mxu1 }
 0x3ed   :  { %v1826_v46 = vadd.f32 %v1825_v34, %v1734_v37  ;;  %v9774_v54 = vpop.f32.mrb[11].mxu0  ;;  %v9741_v56 = vpop.f32.mrb[5].mxu1 }
 0x3f4   :  { %v1905_v57 = vpop.f32.mrb[6].mxu1  ;;  %v2140_v27 = vpop.f32.mrb[12].mxu0 }
 0x3f5   :  { %v1906_v47 = vadd.f32 %v1905_v57, %v1826_v46  ;;  %v9763_v16 = vpop.f32.mrb[7].mxu1  ;;  %v9796_v49 = vpop.f32.mrb[13].mxu0 }
 0x3f6   :  { %v9208_v49 = vld [vmem:[%s12473_s3 + $0x58] ss:$0 sm:$0xff] }
 0x3f7   :  { %v1983_v42 = vadd.f32 %v1982_v36, %v1906_v47 }
 0x3fc   :  { %v2065_v43 = vpop.f32.mrb[8].mxu1  ;;  %v2313_v61 = vpop.f32.mrb[14].mxu0 }
 0x3fd   :  { %v2066_v11 = vadd.f32 %v2065_v43, %v1983_v42  ;;  %v9785_v58 = vpop.f32.mrb[9].mxu1  ;;  %v9818_v23 = vpop.f32.mrb[15].mxu0 }
 0x3ff   :  { %v2141_v51 = vadd.f32 %v2140_v27, %v2066_v11  ;;  %v11498_v11 = vld [vmem:[%s12476_s2 + $0x44] ss:$8 sps:$4 sm:$0xff]  }
 0x404   :  { %v2222_v18 = vpop.f32.mrb[10].mxu1  ;;  %v2470_v28 = vpop.f32.mrb[16].mxu0 }
 0x405   :  { %v2223_v29 = vadd.f32 %v2222_v18, %v2141_v51  ;;  %v9807_v30 = vpop.f32.mrb[11].mxu1  ;;  %v9840_v31 = vpop.f32.mrb[17].mxu0  ;;  %v11508_v18 = vld [vmem:[%s12476_s2 + $0x40] ss:$8 sps:$4 sm:$0xff]  }
 0x407   :  { %v2314_v34 = vadd.f32 %v2313_v61, %v2223_v29  ;;  %v11493_v61 = vld [vmem:[%s12476_s2 + $0x30] ss:$8 sps:$4 sm:$0xff]  }
 0x40c   :  { %v2393_v35 = vpop.f32.mrb[12].mxu1  ;;  %v2628_v37 = vpop.f32.mrb[18].mxu0 }
 0x40d   :  { %v2394_v54 = vadd.f32 %v2393_v35, %v2314_v34  ;;  %v9829_v56 = vpop.f32.mrb[13].mxu1  ;;  %v9862_v46 = vpop.f32.mrb[19].mxu0  ;;  %v11551_v34 = vunpack.c.l.bf16 %v11070_v40  ;;  %v11554_v35 = vunpack.c.l.bf16 %v11072_v41 }
 0x40f   :  { %v2471_v57 = vadd.f32 %v2470_v28, %v2394_v54 }
 0x414   :  { %v2553_v16 = vpop.f32.mrb[14].mxu1 }
 0x415   :  { %v2554_v36 = vadd.f32 %v2553_v16, %v2471_v57  ;;  %v9851_v47 = vpop.f32.mrb[15].mxu1 }
 0x417   :  { %v2629_v27 = vadd.f32 %v2628_v37, %v2554_v36 }
 0x419   :  { %v2636_v42 = vadd.f32 %v9208_v49, %v2629_v27 }
 0x41b   :  { %v11488_v43 = vmax.f32 %v2636_v42, 0.0 }
 0x41d   :  { %v2643_v58 = vsel %vm1655_vm8, %v11488_v43, 0  ;;  %v3140_v23 = vpack.c.bf16 %v11488_v43, %v11488_v43 }
 0x41e   :  { %v2714_v51 = vand.u32 4294901760, %v2643_v58 }
 0x41f   :  { %9214 = vmatmul.mubr.msk.bf16.vlgmr.msra.gmra.mrb[20].mxu0 %vm1655_vm8, %v3140_v23 }
 0x420   :  { %v2715_v28 = vsub.f32 %v2643_v58, %v2714_v51  ;;  %3262 = vmatpush1.bf16.msra.mxu0 %v11493_v61  ;;  %3293 = vmatprep.mubr.bf16.mxu0 %v10993_v9 }
 0x421   :  { %3263 = vmatprep.subr.bf16.mxu0 %v11498_v11 }
 0x422   :  { %v2716_v29 = vand.u32 4294901760, %v2715_v28 }
 0x424   :  { %v2717_v30 = vsub.f32 %v2715_v28, %v2716_v29  ;;  %3264 = vmatpush1.bf16.msra.mxu0 %v11508_v18 }
 0x425   :  { %3335 = vmatprep.subr.bf16.mxu0 %v11402_v13 }
 0x426   :  { %v2718_v31 = vand.u32 4294901760, %v2717_v30 }
 0x428   :  { %9872 = vmatmul.mubr.f32.vlgmr.msra.gmra.mrb[16].mxu1 %v2718_v31 }
 0x429   :  { %10399 = vmatpush3.bf16.msra.mxu1 %v11473_v63  ;;  %9882 = vmatprep.mubr.msk.f32.mxu1 %vm10991_vm1, %v10992_v3 }
 0x42a   :  { %10400 = vmatprep.subr.bf16.mxu1 %v10990_v0 }
 0x42d   :  { %10402 = vmatpush3.bf16.msra.mxu1 %v11475_v7 }
 0x42e   :  { %10403 = vmatprep.subr.bf16.mxu1 %v10990_v0 }
 0x430   :  { %9883 = vmatmul.mubr.f32.vlgmr.msra.gmra.mrb[16].mxu1 %v2714_v51 }
 0x431   :  { %10405 = vmatpush3.bf16.msra.mxu1 %v11477_v10  ;;  %9893 = vmatprep.mubr.msk.f32.mxu1 %vm10991_vm1, %v10992_v3 }
 0x432   :  { %10406 = vmatprep.subr.bf16.mxu1 %v10990_v0 }
 0x435   :  { %10408 = vmatpush3.bf16.msra.mxu1 %v11479_v12 }
 0x436   :  { %10409 = vmatprep.subr.bf16.mxu1 %v10990_v0 }
 0x438   :  { %9894 = vmatmul.mubr.f32.vlgmr.msra.gmra.mrb[16].mxu1 %v2715_v28 }
 0x439   :  { %10411 = vmatpush3.bf16.msra.mxu1 %v11459_v39  ;;  %9904 = vmatprep.mubr.msk.f32.mxu1 %vm10991_vm1, %v10992_v3 }
 0x43a   :  { %10412 = vmatprep.subr.bf16.mxu1 %v10990_v0 }
 0x43d   :  { %10414 = vmatpush3.bf16.msra.mxu1 %v11469_v26 }
 0x43e   :  { %10415 = vmatprep.subr.bf16.mxu1 %v10990_v0 }
 0x440   :  { %9905 = vmatmul.mubr.f32.vlgmr.msra.gmra.mrb[16].mxu1 %v2716_v29 }
 0x441   :  { %10417 = vmatpush3.bf16.msra.mxu1 %v11481_v14  ;;  %9915 = vmatprep.mubr.msk.f32.mxu1 %vm10991_vm1, %v10992_v3 }
 0x442   :  { %10418 = vmatprep.subr.bf16.mxu1 %v10990_v0 }
 0x445   :  { %10420 = vmatpush3.bf16.msra.mxu1 %v11483_v21 }
 0x446   :  { %10421 = vmatprep.subr.bf16.mxu1 %v10990_v0 }
 0x448   :  { %9916 = vmatmul.mubr.f32.vlgmr.msra.gmra.mrb[16].mxu1 %v2714_v51 }
 0x449   :  { %10423 = vmatpush3.bf16.msra.mxu1 %v11459_v39  ;;  %9926 = vmatprep.mubr.msk.f32.mxu1 %vm10991_vm1, %v10992_v3 }
 0x44a   :  { %10424 = vmatprep.subr.bf16.mxu1 %v10990_v0 }
 0x44d   :  { %10426 = vmatpush3.bf16.msra.mxu1 %v11469_v26 }
 0x44e   :  { %3631 = vmatprep.subr.bf16.mxu1 %v11402_v13 }
 0x450   :  { %9927 = vmatmul.mubr.f32.vlgmr.msra.gmra.mrb[16].mxu1 %v2714_v51 }
 0x451   :  { %3632 = vmatpush1.bf16.msra.mxu1 %v11417_v17  ;;  %3663 = vmatprep.mubr.bf16.mxu1 %v10993_v9 }
 0x452   :  { %3633 = vmatprep.subr.bf16.mxu1 %v11424_v19 }
 0x455   :  { %3634 = vmatpush1.bf16.msra.mxu1 %v11436_v25 }
 0x456   :  { %3779 = vmatprep.subr.bf16.mxu1 %v11402_v13 }
 0x4f2   :  { %v3198_v37 = vpop.f32.mrb[20].mxu0 }
 0x4f3   :  { %v3199_v54 = vadd.f32 %v3198_v37, %v11551_v34  ;;  %v3200_v56 = vpop.f32.mrb[21].mxu0 }
 0x4f4   :  { %v3201_v46 = vadd.f32 %v3200_v56, %v11554_v35  ;;  %v3202_v57 = vpop.f32.mrb[22].mxu0 }
 0x4f5   :  { %v3203_v16 = vpop.f32.mrb[23].mxu0  ;;  %3206 = vrot.lane.b32.xlu0 %v3199_v54, %s10994_s23 }
 0x4f6   :  { %3217 = vrot.lane.b32.xlu1 %v3201_v46, %s10995_s24 }
 0x4fa   :  { %3229 = vrot.lane.b32.xlu1 %v11488_v43, %s10996_s1 }
 0x523   :  { %v11562_v40 = vpop.f32.mrb[16].mxu1 }
 0x524   :  { %v9928_v41 = vpop.f32.mrb[17].mxu1 }
 0x567   :  { %v3207_v36 = vpop.permute.xlu0 %3206 }
 0x568   :  { %v3209_v47 = vadd.f32 %v3207_v36, %v3199_v54  ;;  %v3218_v51 = vpop.permute.xlu1 %3217  ;;  %v11579_v36 = vunpack.c.l.bf16 %v11076_v45 }
 0x56a   :  { %v3210_v49 = vsub.f32 0.0, %v3209_v47 }
 0x56c   :  { %v3211_v27 = vmul.f32 1.442695, %v3210_v49  ;;  %v11565_v31 = vpop.permute.xlu1 %3229 }
 0x56e   :  { %10717 = vpow2.f32 %v3211_v27 }
 0x578   :  { %v10718_v42 = vpop.eup %10717 }
 0x579   :  { %v3213_v58 = vadd.f32 1.0, %v10718_v42 }
 0x57b   :  { %10719 = vrcp.f32 %v3213_v58 }
 0x585   :  { %v10720_v23 = vpop.eup %10719 }
 0x586   :  { %v3220_v28 = vmul.f32 %v10720_v23, %v3218_v51  ;;  %v3223_v43 = vsub.f32 1.0, %v10720_v23  ;;  %v3232_v54 = vmul.f32 %v10720_v23, %v11565_v31 }
 0x588   :  { %v3221_v29 = vadd.f32 %v3220_v28, %v3201_v46  ;;  %v11576_v46 = vunpack.c.l.bf16 %v11074_v44 }
 0x58a   :  { %10721 = vtanh.f32 %v3221_v29 }
 0x594   :  { %v10722_v30 = vpop.eup %10721 }
 0x595   :  { %3225 = vrot.lane.b32.xlu0 %v10722_v30, %s10996_s1 }
 0x607   :  { %v3226_v37 = vpop.permute.xlu0 %3225 }
 0x608   :  { %v3228_v56 = vmul.f32 %v3226_v37, %v3223_v43 }
 0x60a   :  { %v3233_v57 = vadd.f32 %v3232_v54, %v3228_v56 }
 0x60c   :  { %v3234_v16 = vpack.c.bf16 %v3233_v57, %v3233_v57 }
 0x60e   :  { %3236 = vrot.lane.b32.xlu0 %v3234_v16, %s10995_s24 }
 0x680   :  { %v3237_v41 = vpop.permute.xlu0 %3236 }
 0x681   :  { %9219 = vmatmul.mubr.msk.bf16.vlgmr.msra.gmra.mrb[24].mxu0 %vm1655_vm8, %v3237_v41 }
 0x682   :  { %3336 = vmatpush1.bf16.msra.mxu0 %v11417_v17  ;;  %3367 = vmatprep.mubr.bf16.mxu0 %v10993_v9 }
 0x683   :  { %3337 = vmatprep.subr.bf16.mxu0 %v11424_v19 }
 0x686   :  { %3338 = vmatpush1.bf16.msra.mxu0 %v11436_v25 }
 0x687   :  { %3409 = vmatprep.subr.bf16.mxu0 %v11443_v33 }
 0x754   :  { %v3295_v47 = vpop.f32.mrb[24].mxu0 }
 0x755   :  { %v3296_v49 = vadd.f32 %v3295_v47, %v11576_v46  ;;  %v3297_v27 = vpop.f32.mrb[25].mxu0 }
 0x756   :  { %v3298_v42 = vadd.f32 %v3297_v27, %v11579_v36  ;;  %v3299_v58 = vpop.f32.mrb[26].mxu0 }
 0x757   :  { %v3300_v23 = vpop.f32.mrb[27].mxu0  ;;  %3303 = vrot.lane.b32.xlu1 %v3296_v49, %s10994_s23 }
 0x758   :  { %3314 = vrot.lane.b32.xlu0 %v3298_v42, %s10995_s24 }
 0x7c9   :  { %v3304_v51 = vpop.permute.xlu1 %3303 }
 0x7ca   :  { %v3306_v28 = vadd.f32 %v3304_v51, %v3296_v49  ;;  %v3315_v37 = vpop.permute.xlu0 %3314 }
 0x7cc   :  { %v3307_v29 = vsub.f32 0.0, %v3306_v28 }
 0x7ce   :  { %v3308_v44 = vmul.f32 1.442695, %v3307_v29 }
 0x7d0   :  { %10723 = vpow2.f32 %v3308_v44 }
 0x7da   :  { %v10724_v30 = vpop.eup %10723 }
 0x7db   :  { %v3310_v45 = vadd.f32 1.0, %v10724_v30 }
 0x7dd   :  { %10725 = vrcp.f32 %v3310_v45 }
 0x7e7   :  { %v10726_v43 = vpop.eup %10725 }
 0x7e8   :  { %v3317_v54 = vmul.f32 %v10726_v43, %v3315_v37  ;;  %v3320_v41 = vsub.f32 1.0, %v10726_v43  ;;  %v3326_v27 = vmul.f32 %v10726_v43, %v3233_v57 }
 0x7ea   :  { %v3318_v56 = vadd.f32 %v3317_v54, %v3298_v42 }
 0x7ec   :  { %10727 = vtanh.f32 %v3318_v56 }
 0x7f6   :  { %v10728_v16 = vpop.eup %10727 }
 0x7f7   :  { %3322 = vrot.lane.b32.xlu1 %v10728_v16, %s10996_s1 }
 0x869   :  { %v3323_v47 = vpop.permute.xlu1 %3322 }
 0x86a   :  { %v3325_v58 = vmul.f32 %v3323_v47, %v3320_v41 }
 0x86c   :  { %v3327_v23 = vadd.f32 %v3326_v27, %v3325_v58 }
 0x86e   :  { %v3328_v49 = vpack.c.bf16 %v3327_v23, %v3327_v23 }
 0x870   :  { %3330 = vrot.lane.b32.xlu0 %v3328_v49, %s10995_s24 }
 0x8e2   :  { %v3331_v51 = vpop.permute.xlu0 %3330 }
 0x8e3   :  { %9220 = vmatmul.mubr.msk.bf16.vlgmr.msra.gmra.mrb[28].mxu0 %vm1655_vm8, %v3331_v51 }
 0x8e4   :  { %3410 = vmatpush1.bf16.msra.mxu0 %v11493_v61  ;;  %3441 = vmatprep.mubr.bf16.mxu0 %v10993_v9 }
 0x8e5   :  { %3411 = vmatprep.subr.bf16.mxu0 %v11498_v11 }
 0x8e8   :  { %3412 = vmatpush1.bf16.msra.mxu0 %v11508_v18 }
 0x8e9   :  { %3483 = vmatprep.subr.bf16.mxu0 %v11402_v13 }
 0x9b6   :  { %v3369_v42 = vpop.f32.mrb[28].mxu0 }
 0x9b7   :  { %v3370_v57 = vadd.f32 %v3369_v42, %v11551_v34  ;;  %v3371_v28 = vpop.f32.mrb[29].mxu0 }
 0x9b8   :  { %v3372_v29 = vadd.f32 %v3371_v28, %v11554_v35  ;;  %v3373_v44 = vpop.f32.mrb[30].mxu0 }
 0x9b9   :  { %v3374_v30 = vpop.f32.mrb[31].mxu0  ;;  %3377 = vrot.lane.b32.xlu1 %v3370_v57, %s10994_s23 }
 0x9ba   :  { %3388 = vrot.lane.b32.xlu0 %v3372_v29, %s10995_s24 }
 0xa2b   :  { %v3378_v45 = vpop.permute.xlu1 %3377 }
 0xa2c   :  { %v3380_v43 = vadd.f32 %v3378_v45, %v3370_v57  ;;  %v3389_v47 = vpop.permute.xlu0 %3388 }
 0xa2e   :  { %v3381_v37 = vsub.f32 0.0, %v3380_v43 }
 0xa30   :  { %v3382_v54 = vmul.f32 1.442695, %v3381_v37 }
 0xa32   :  { %10729 = vpow2.f32 %v3382_v54 }
 0xa3c   :  { %v10730_v56 = vpop.eup %10729 }
 0xa3d   :  { %v3384_v16 = vadd.f32 1.0, %v10730_v56 }
 0xa3f   :  { %10731 = vrcp.f32 %v3384_v16 }
 0xa49   :  { %v10732_v41 = vpop.eup %10731 }
 0xa4a   :  { %v3391_v27 = vmul.f32 %v10732_v41, %v3389_v47  ;;  %v3394_v51 = vsub.f32 1.0, %v10732_v41  ;;  %v3400_v28 = vmul.f32 %v10732_v41, %v3327_v23 }
 0xa4c   :  { %v3392_v58 = vadd.f32 %v3391_v27, %v3372_v29 }
 0xa4e   :  { %10733 = vtanh.f32 %v3392_v58 }
 0xa58   :  { %v10734_v49 = vpop.eup %10733 }
 0xa59   :  { %3396 = vrot.lane.b32.xlu1 %v10734_v49, %s10996_s1 }
 0xacb   :  { %v3397_v42 = vpop.permute.xlu1 %3396 }
 0xacc   :  { %v3399_v44 = vmul.f32 %v3397_v42, %v3394_v51 }
 0xace   :  { %v3401_v30 = vadd.f32 %v3400_v28, %v3399_v44 }
 0xad0   :  { %v3402_v57 = vpack.c.bf16 %v3401_v30, %v3401_v30 }
 0xad2   :  { %3404 = vrot.lane.b32.xlu0 %v3402_v57, %s10995_s24 }
 0xb44   :  { %v3405_v45 = vpop.permute.xlu0 %3404 }
 0xb45   :  { %9221 = vmatmul.mubr.msk.bf16.vlgmr.msra.gmra.mrb[32].mxu0 %vm1655_vm8, %v3405_v45 }
 0xb46   :  { %3484 = vmatpush1.bf16.msra.mxu0 %v11417_v17  ;;  %3515 = vmatprep.mubr.bf16.mxu0 %v10993_v9 }
 0xb47   :  { %3485 = vmatprep.subr.bf16.mxu0 %v11424_v19 }
 0xb4a   :  { %3486 = vmatpush1.bf16.msra.mxu0 %v11436_v25 }
 0xb4b   :  { %3557 = vmatprep.subr.bf16.mxu0 %v11443_v33 }
 0xc18   :  { %v3443_v29 = vpop.f32.mrb[32].mxu0 }
 0xc19   :  { %v3444_v23 = vadd.f32 %v3443_v29, %v11576_v46  ;;  %v3445_v43 = vpop.f32.mrb[33].mxu0 }
 0xc1a   :  { %v3446_v37 = vadd.f32 %v3445_v43, %v11579_v36  ;;  %v3447_v54 = vpop.f32.mrb[34].mxu0 }
 0xc1b   :  { %v3448_v56 = vpop.f32.mrb[35].mxu0  ;;  %3451 = vrot.lane.b32.xlu1 %v3444_v23, %s10994_s23 }
 0xc1c   :  { %3462 = vrot.lane.b32.xlu0 %v3446_v37, %s10995_s24 }
 0xc8d   :  { %v3452_v16 = vpop.permute.xlu1 %3451 }
 0xc8e   :  { %v3454_v41 = vadd.f32 %v3452_v16, %v3444_v23  ;;  %v3463_v42 = vpop.permute.xlu0 %3462 }
 0xc90   :  { %v3455_v47 = vsub.f32 0.0, %v3454_v41 }
 0xc92   :  { %v3456_v27 = vmul.f32 1.442695, %v3455_v47 }
 0xc94   :  { %10735 = vpow2.f32 %v3456_v27 }
 0xc9e   :  { %v10736_v58 = vpop.eup %10735 }
 0xc9f   :  { %v3458_v49 = vadd.f32 1.0, %v10736_v58 }
 0xca1   :  { %10737 = vrcp.f32 %v3458_v49 }
 0xcab   :  { %v10738_v51 = vpop.eup %10737 }
 0xcac   :  { %v3465_v28 = vmul.f32 %v10738_v51, %v3463_v42  ;;  %v3468_v45 = vsub.f32 1.0, %v10738_v51  ;;  %v3474_v43 = vmul.f32 %v10738_v51, %v3401_v30 }
 0xcae   :  { %v3466_v44 = vadd.f32 %v3465_v28, %v3446_v37 }
 0xcb0   :  { %10739 = vtanh.f32 %v3466_v44 }
 0xcba   :  { %v10740_v57 = vpop.eup %10739 }
 0xcbb   :  { %3470 = vrot.lane.b32.xlu1 %v10740_v57, %s10996_s1 }
 0xd2d   :  { %v3471_v29 = vpop.permute.xlu1 %3470 }
 0xd2e   :  { %v3473_v54 = vmul.f32 %v3471_v29, %v3468_v45 }
 0xd30   :  { %v3475_v56 = vadd.f32 %v3474_v43, %v3473_v54 }
 0xd32   :  { %v3476_v23 = vpack.c.bf16 %v3475_v56, %v3475_v56 }
 0xd34   :  { %3478 = vrot.lane.b32.xlu0 %v3476_v23, %s10995_s24 }
 0xda6   :  { %v3479_v16 = vpop.permute.xlu0 %3478 }
 0xda7   :  { %9222 = vmatmul.mubr.msk.bf16.vlgmr.msra.gmra.mrb[36].mxu0 %vm1655_vm8, %v3479_v16 }
 0xda8   :  { %3558 = vmatpush1.bf16.msra.mxu0 %v11493_v61  ;;  %3589 = vmatprep.mubr.bf16.mxu0 %v10993_v9 }
 0xda9   :  { %3559 = vmatprep.subr.bf16.mxu0 %v11498_v11 }
 0xdac   :  { %3560 = vmatpush1.bf16.msra.mxu0 %v11508_v18 }
 0xdad   :  { %3705 = vmatprep.subr.bf16.mxu0 %v11443_v33 }
 0xe7a   :  { %v3517_v37 = vpop.f32.mrb[36].mxu0 }
 0xe7b   :  { %v3518_v30 = vadd.f32 %v3517_v37, %v11551_v34  ;;  %v3519_v41 = vpop.f32.mrb[37].mxu0 }
 0xe7c   :  { %v3520_v47 = vadd.f32 %v3519_v41, %v11554_v35  ;;  %v3521_v27 = vpop.f32.mrb[38].mxu0 }
 0xe7d   :  { %v3522_v58 = vpop.f32.mrb[39].mxu0  ;;  %3525 = vrot.lane.b32.xlu1 %v3518_v30, %s10994_s23 }
 0xe7e   :  { %3536 = vrot.lane.b32.xlu0 %v3520_v47, %s10995_s24 }
 0xeef   :  { %v3526_v49 = vpop.permute.xlu1 %3525 }
 0xef0   :  { %v3528_v51 = vadd.f32 %v3526_v49, %v3518_v30  ;;  %v3537_v29 = vpop.permute.xlu0 %3536 }
 0xef2   :  { %v3529_v42 = vsub.f32 0.0, %v3528_v51 }
 0xef4   :  { %v3530_v28 = vmul.f32 1.442695, %v3529_v42 }
 0xef6   :  { %10741 = vpow2.f32 %v3530_v28 }
 0xf00   :  { %v10742_v44 = vpop.eup %10741 }
 0xf01   :  { %v3532_v57 = vadd.f32 1.0, %v10742_v44 }
 0xf03   :  { %10743 = vrcp.f32 %v3532_v57 }
 0xf0d   :  { %v10744_v45 = vpop.eup %10743 }
 0xf0e   :  { %v3539_v43 = vmul.f32 %v10744_v45, %v3537_v29  ;;  %v3542_v16 = vsub.f32 1.0, %v10744_v45  ;;  %v3548_v41 = vmul.f32 %v10744_v45, %v3475_v56 }
 0xf10   :  { %v3540_v54 = vadd.f32 %v3539_v43, %v3520_v47 }
 0xf12   :  { %10745 = vtanh.f32 %v3540_v54 }
 0xf1c   :  { %v10746_v23 = vpop.eup %10745 }
 0xf1d   :  { %3544 = vrot.lane.b32.xlu1 %v10746_v23, %s10996_s1 }
 0xf8f   :  { %v3545_v37 = vpop.permute.xlu1 %3544 }
 0xf90   :  { %v3547_v27 = vmul.f32 %v3545_v37, %v3542_v16 }
 0xf92   :  { %v3549_v58 = vadd.f32 %v3548_v41, %v3547_v27 }
 0xf94   :  { %v3550_v30 = vpack.c.bf16 %v3549_v58, %v3549_v58 }
 0xf96   :  { %3552 = vrot.lane.b32.xlu0 %v3550_v30, %s10995_s24 }
0x1008   :  { %v3553_v49 = vpop.permute.xlu0 %3552 }
0x1009   :  { %9223 = vmatmul.mubr.msk.bf16.vlgmr.msra.gmra.mrb[40].mxu0 %vm1655_vm8, %v3553_v49 }
0x100a   :  { %3706 = vmatpush1.bf16.msra.mxu0 %v11493_v61  ;;  %3737 = vmatprep.mubr.bf16.mxu0 %v10993_v9 }
0x100b   :  { %3707 = vmatprep.subr.bf16.mxu0 %v11498_v11 }
0x100e   :  { %3708 = vmatpush1.bf16.msra.mxu0 %v11508_v18 }
0x100f   :  { %3853 = vmatprep.subr.bf16.mxu0 %v11443_v33 }
0x10dc   :  { %v3591_v47 = vpop.f32.mrb[40].mxu0 }
0x10dd   :  { %v3592_v56 = vadd.f32 %v3591_v47, %v11576_v46  ;;  %v3593_v51 = vpop.f32.mrb[41].mxu0 }
0x10de   :  { %v3594_v42 = vadd.f32 %v3593_v51, %v11579_v36  ;;  %v3595_v28 = vpop.f32.mrb[42].mxu0 }
0x10df   :  { %v3596_v44 = vpop.f32.mrb[43].mxu0  ;;  %3599 = vrot.lane.b32.xlu1 %v3592_v56, %s10994_s23 }
0x10e0   :  { %3610 = vrot.lane.b32.xlu0 %v3594_v42, %s10995_s24 }
0x1151   :  { %v3600_v57 = vpop.permute.xlu1 %3599 }
0x1152   :  { %v3602_v45 = vadd.f32 %v3600_v57, %v3592_v56  ;;  %v3611_v37 = vpop.permute.xlu0 %3610 }
0x1154   :  { %v3603_v29 = vsub.f32 0.0, %v3602_v45 }
0x1156   :  { %v3604_v43 = vmul.f32 1.442695, %v3603_v29 }
0x1158   :  { %10747 = vpow2.f32 %v3604_v43 }
0x1162   :  { %v10748_v54 = vpop.eup %10747 }
0x1163   :  { %v3606_v23 = vadd.f32 1.0, %v10748_v54 }
0x1165   :  { %10749 = vrcp.f32 %v3606_v23 }
0x116f   :  { %v10750_v16 = vpop.eup %10749 }
0x1170   :  { %v3613_v41 = vmul.f32 %v10750_v16, %v3611_v37  ;;  %v3616_v49 = vsub.f32 1.0, %v10750_v16  ;;  %v3622_v51 = vmul.f32 %v10750_v16, %v3549_v58 }
0x1172   :  { %v3614_v27 = vadd.f32 %v3613_v41, %v3594_v42 }
0x1174   :  { %10751 = vtanh.f32 %v3614_v27 }
0x117e   :  { %v10752_v30 = vpop.eup %10751 }
0x117f   :  { %3618 = vrot.lane.b32.xlu1 %v10752_v30, %s10996_s1 }
0x11f1   :  { %v3619_v47 = vpop.permute.xlu1 %3618 }
0x11f2   :  { %v3621_v28 = vmul.f32 %v3619_v47, %v3616_v49 }
0x11f4   :  { %v3623_v44 = vadd.f32 %v3622_v51, %v3621_v28 }
0x11f6   :  { %v3624_v56 = vpack.c.bf16 %v3623_v44, %v3623_v44 }
0x11f8   :  { %3626 = vrot.lane.b32.xlu0 %v3624_v56, %s10995_s24 }
0x126a   :  { %v3627_v57 = vpop.permute.xlu0 %3626 }
0x126b   :  { %9224 = vmatmul.mubr.msk.bf16.vlgmr.msra.gmra.mrb[20].mxu1 %vm1655_vm8, %v3627_v57 }
0x126c   :  { %3780 = vmatpush1.bf16.msra.mxu1 %v11417_v17  ;;  %3811 = vmatprep.mubr.bf16.mxu1 %v10993_v9 }
0x126d   :  { %3781 = vmatprep.subr.bf16.mxu1 %v11424_v19 }
0x1270   :  { %3782 = vmatpush1.bf16.msra.mxu1 %v11436_v25 }
0x1271   :  { %3927 = vmatprep.subr.bf16.mxu1 %v11402_v13 }
0x133e   :  { %v3665_v42 = vpop.f32.mrb[20].mxu1 }
0x133f   :  { %v3666_v58 = vadd.f32 %v3665_v42, %v11551_v34  ;;  %v3667_v45 = vpop.f32.mrb[21].mxu1 }
0x1340   :  { %v3668_v29 = vadd.f32 %v3667_v45, %v11554_v35  ;;  %v3669_v43 = vpop.f32.mrb[22].mxu1 }
0x1341   :  { %v3670_v54 = vpop.f32.mrb[23].mxu1  ;;  %3673 = vrot.lane.b32.xlu1 %v3666_v58, %s10994_s23 }
0x1342   :  { %3684 = vrot.lane.b32.xlu0 %v3668_v29, %s10995_s24 }
0x13b3   :  { %v3674_v23 = vpop.permute.xlu1 %3673 }
0x13b4   :  { %v3676_v16 = vadd.f32 %v3674_v23, %v3666_v58  ;;  %v3685_v47 = vpop.permute.xlu0 %3684 }
0x13b6   :  { %v3677_v37 = vsub.f32 0.0, %v3676_v16 }
0x13b8   :  { %v3678_v41 = vmul.f32 1.442695, %v3677_v37 }
0x13ba   :  { %10753 = vpow2.f32 %v3678_v41 }
0x13c4   :  { %v10754_v27 = vpop.eup %10753 }
0x13c5   :  { %v3680_v30 = vadd.f32 1.0, %v10754_v27 }
0x13c7   :  { %10755 = vrcp.f32 %v3680_v30 }
0x13d1   :  { %v10756_v49 = vpop.eup %10755 }
0x13d2   :  { %v3687_v51 = vmul.f32 %v10756_v49, %v3685_v47  ;;  %v3690_v57 = vsub.f32 1.0, %v10756_v49  ;;  %v3696_v45 = vmul.f32 %v10756_v49, %v3623_v44 }
0x13d4   :  { %v3688_v28 = vadd.f32 %v3687_v51, %v3668_v29 }
0x13d6   :  { %10757 = vtanh.f32 %v3688_v28 }
0x13e0   :  { %v10758_v56 = vpop.eup %10757 }
0x13e1   :  { %3692 = vrot.lane.b32.xlu1 %v10758_v56, %s10996_s1 }
0x1453   :  { %v3693_v42 = vpop.permute.xlu1 %3692 }
0x1454   :  { %v3695_v43 = vmul.f32 %v3693_v42, %v3690_v57 }
0x1456   :  { %v3697_v54 = vadd.f32 %v3696_v45, %v3695_v43 }
0x1458   :  { %v3698_v58 = vpack.c.bf16 %v3697_v54, %v3697_v54 }
0x145a   :  { %3700 = vrot.lane.b32.xlu0 %v3698_v58, %s10995_s24 }
0x14cc   :  { %v3701_v23 = vpop.permute.xlu0 %3700 }
0x14cd   :  { %9225 = vmatmul.mubr.msk.bf16.vlgmr.msra.gmra.mrb[44].mxu0 %vm1655_vm8, %v3701_v23 }
0x14ce   :  { %3854 = vmatpush1.bf16.msra.mxu0 %v11493_v61  ;;  %3885 = vmatprep.mubr.bf16.mxu0 %v10993_v9 }
0x14cf   :  { %3855 = vmatprep.subr.bf16.mxu0 %v11498_v11 }
0x14d2   :  { %3856 = vmatpush1.bf16.msra.mxu0 %v11508_v18 }
0x14d3   :  { %4001 = vmatprep.subr.bf16.mxu0 %v11443_v33 }
0x15a0   :  { %v3739_v29 = vpop.f32.mrb[44].mxu0 }
0x15a1   :  { %v3740_v44 = vadd.f32 %v3739_v29, %v11576_v46  ;;  %v3741_v16 = vpop.f32.mrb[45].mxu0 }
0x15a2   :  { %v3742_v37 = vadd.f32 %v3741_v16, %v11579_v36  ;;  %v3743_v41 = vpop.f32.mrb[46].mxu0 }
0x15a3   :  { %v3744_v27 = vpop.f32.mrb[47].mxu0  ;;  %3747 = vrot.lane.b32.xlu1 %v3740_v44, %s10994_s23 }
0x15a4   :  { %3758 = vrot.lane.b32.xlu0 %v3742_v37, %s10995_s24 }
0x1615   :  { %v3748_v30 = vpop.permute.xlu1 %3747 }
0x1616   :  { %v3750_v49 = vadd.f32 %v3748_v30, %v3740_v44  ;;  %v3759_v42 = vpop.permute.xlu0 %3758 }
0x1618   :  { %v3751_v47 = vsub.f32 0.0, %v3750_v49 }
0x161a   :  { %v3752_v51 = vmul.f32 1.442695, %v3751_v47 }
0x161c   :  { %10759 = vpow2.f32 %v3752_v51 }
0x1626   :  { %v10760_v28 = vpop.eup %10759 }
0x1627   :  { %v3754_v56 = vadd.f32 1.0, %v10760_v28 }
0x1629   :  { %10761 = vrcp.f32 %v3754_v56 }
0x1633   :  { %v10762_v57 = vpop.eup %10761 }
0x1634   :  { %v3761_v45 = vmul.f32 %v10762_v57, %v3759_v42  ;;  %v3764_v23 = vsub.f32 1.0, %v10762_v57  ;;  %v3770_v16 = vmul.f32 %v10762_v57, %v3697_v54 }
0x1636   :  { %v3762_v43 = vadd.f32 %v3761_v45, %v3742_v37 }
0x1638   :  { %10763 = vtanh.f32 %v3762_v43 }
0x1642   :  { %v10764_v58 = vpop.eup %10763 }
0x1643   :  { %3766 = vrot.lane.b32.xlu1 %v10764_v58, %s10996_s1 }
0x16b5   :  { %v3767_v29 = vpop.permute.xlu1 %3766 }
0x16b6   :  { %v3769_v41 = vmul.f32 %v3767_v29, %v3764_v23 }
0x16b8   :  { %v3771_v27 = vadd.f32 %v3770_v16, %v3769_v41 }
0x16ba   :  { %v3772_v44 = vpack.c.bf16 %v3771_v27, %v3771_v27 }
0x16bc   :  { %3774 = vrot.lane.b32.xlu0 %v3772_v44, %s10995_s24 }
0x172e   :  { %v3775_v30 = vpop.permute.xlu0 %3774 }
0x172f   :  { %9226 = vmatmul.mubr.msk.bf16.vlgmr.msra.gmra.mrb[24].mxu1 %vm1655_vm8, %v3775_v30 }
0x1730   :  { %3928 = vmatpush1.bf16.msra.mxu1 %v11417_v17  ;;  %3959 = vmatprep.mubr.bf16.mxu1 %v10993_v9 }
0x1731   :  { %3929 = vmatprep.subr.bf16.mxu1 %v11424_v19 }
0x1734   :  { %3930 = vmatpush1.bf16.msra.mxu1 %v11436_v25 }
0x1735   :  { %4075 = vmatprep.subr.bf16.mxu1 %v11402_v13 }
0x1802   :  { %v3813_v37 = vpop.f32.mrb[24].mxu1 }
0x1803   :  { %v3814_v54 = vadd.f32 %v3813_v37, %v11551_v34  ;;  %v3815_v49 = vpop.f32.mrb[25].mxu1 }
0x1804   :  { %v3816_v47 = vadd.f32 %v3815_v49, %v11554_v35  ;;  %v3817_v51 = vpop.f32.mrb[26].mxu1 }
0x1805   :  { %v3818_v28 = vpop.f32.mrb[27].mxu1  ;;  %3821 = vrot.lane.b32.xlu1 %v3814_v54, %s10994_s23 }
0x1806   :  { %3832 = vrot.lane.b32.xlu0 %v3816_v47, %s10995_s24 }
0x1877   :  { %v3822_v17 = vpop.permute.xlu1 %3821 }
0x1878   :  { %v3824_v56 = vadd.f32 %v3822_v17, %v3814_v54  ;;  %v3833_v45 = vpop.permute.xlu0 %3832 }
0x187a   :  { %v3825_v57 = vsub.f32 0.0, %v3824_v56 }
0x187c   :  { %v3826_v19 = vmul.f32 1.442695, %v3825_v57 }
0x187e   :  { %10765 = vpow2.f32 %v3826_v19 }
0x1888   :  { %v10766_v25 = vpop.eup %10765 }
0x1889   :  { %v3828_v42 = vadd.f32 1.0, %v10766_v25 }
0x188b   :  { %10767 = vrcp.f32 %v3828_v42 }
0x1895   :  { %v10768_v13 = vpop.eup %10767 }
0x1896   :  { %v3835_v43 = vmul.f32 %v10768_v13, %v3833_v45  ;;  %v3838_v29 = vsub.f32 1.0, %v10768_v13  ;;  %v3844_v41 = vmul.f32 %v10768_v13, %v3771_v27 }
0x1898   :  { %v3836_v58 = vadd.f32 %v3835_v43, %v3816_v47 }
0x189a   :  { %10769 = vtanh.f32 %v3836_v58 }
0x18a4   :  { %v10770_v23 = vpop.eup %10769 }
0x18a5   :  { %3840 = vrot.lane.b32.xlu1 %v10770_v23, %s10996_s1 }
0x1917   :  { %v3841_v16 = vpop.permute.xlu1 %3840 }
0x1918   :  { %v3843_v44 = vmul.f32 %v3841_v16, %v3838_v29 }
0x191a   :  { %v3845_v30 = vadd.f32 %v3844_v41, %v3843_v44 }
0x191c   :  { %v3846_v37 = vpack.c.bf16 %v3845_v30, %v3845_v30 }
0x191e   :  { %3848 = vrot.lane.b32.xlu0 %v3846_v37, %s10995_s24 }
0x1990   :  { %v3849_v54 = vpop.permute.xlu0 %3848 }
0x1991   :  { %9227 = vmatmul.mubr.msk.bf16.vlgmr.msra.gmra.mrb[48].mxu0 %vm1655_vm8, %v3849_v54 }
0x1992   :  { %4002 = vmatpush1.bf16.msra.mxu0 %v11493_v61  ;;  %4033 = vmatprep.mubr.bf16.mxu0 %v10993_v9 }
0x1993   :  { %4003 = vmatprep.subr.bf16.mxu0 %v11498_v11 }
0x1996   :  { %4004 = vmatpush1.bf16.msra.mxu0 %v11508_v18 }
0x1997   :  { %4149 = vmatprep.subr.bf16.mxu0 %v11443_v33 }
0x1a64   :  { %v3887_v49 = vpop.f32.mrb[48].mxu0 }
0x1a65   :  { %v3888_v27 = vadd.f32 %v3887_v49, %v11576_v46  ;;  %v3889_v47 = vpop.f32.mrb[49].mxu0 }
0x1a66   :  { %v3890_v51 = vadd.f32 %v3889_v47, %v11579_v36  ;;  %v3891_v28 = vpop.f32.mrb[50].mxu0  ;;  %v11700_v47 = vld [vmem:[%s12476_s2 + $0x10] ss:$8 sps:$4 sm:$0xff]  }
0x1a67   :  { %v3892_v17 = vpop.f32.mrb[51].mxu0  ;;  %3895 = vrot.lane.b32.xlu1 %v3888_v27, %s10994_s23 }
0x1a68   :  { %3906 = vrot.lane.b32.xlu0 %v3890_v51, %s10995_s24 }
0x1ad9   :  { %v3896_v56 = vpop.permute.xlu1 %3895 }
0x1ada   :  { %v3898_v57 = vadd.f32 %v3896_v56, %v3888_v27  ;;  %v3907_v45 = vpop.permute.xlu0 %3906  ;;  %v11687_v27 = vld [vmem:[%s12476_s2] ss:$8 sps:$4 sm:$0xff]  }
0x1adc   :  { %v3899_v19 = vsub.f32 0.0, %v3898_v57 }
0x1ade   :  { %v3900_v25 = vmul.f32 1.442695, %v3899_v19 }
0x1ae0   :  { %10771 = vpow2.f32 %v3900_v25 }
0x1aea   :  { %v10772_v42 = vpop.eup %10771 }
0x1aeb   :  { %v3902_v13 = vadd.f32 1.0, %v10772_v42 }
0x1aed   :  { %10773 = vrcp.f32 %v3902_v13 }
0x1af7   :  { %v10774_v33 = vpop.eup %10773 }
0x1af8   :  { %v3909_v43 = vmul.f32 %v10774_v33, %v3907_v45  ;;  %v3912_v29 = vsub.f32 1.0, %v10774_v33  ;;  %v3918_v41 = vmul.f32 %v10774_v33, %v3845_v30  ;;  %v11694_v30 = vld [vmem:[%s12476_s2 + $0x14] ss:$8 sps:$4 sm:$0xff]  }
0x1afa   :  { %v3910_v58 = vadd.f32 %v3909_v43, %v3890_v51  ;;  %v11706_v51 = vld [vmem:[%s12476_s2 + $0x4] ss:$8 sps:$4 sm:$0xff]  }
0x1afc   :  { %10775 = vtanh.f32 %v3910_v58 }
0x1b06   :  { %v10776_v23 = vpop.eup %10775 }
0x1b07   :  { %3914 = vrot.lane.b32.xlu1 %v10776_v23, %s10996_s1 }
0x1b79   :  { %v3915_v16 = vpop.permute.xlu1 %3914 }
0x1b7a   :  { %v3917_v44 = vmul.f32 %v3915_v16, %v3912_v29 }
0x1b7c   :  { %v3919_v37 = vadd.f32 %v3918_v41, %v3917_v44 }
0x1b7e   :  { %v3920_v54 = vpack.c.bf16 %v3919_v37, %v3919_v37 }
0x1b80   :  { %3922 = vrot.lane.b32.xlu0 %v3920_v54, %s10995_s24 }
0x1bf2   :  { %v3923_v49 = vpop.permute.xlu0 %3922 }
0x1bf3   :  { %9228 = vmatmul.mubr.msk.bf16.vlgmr.msra.gmra.mrb[28].mxu1 %vm1655_vm8, %v3923_v49 }
0x1bf4   :  { %4076 = vmatpush1.bf16.msra.mxu1 %v11687_v27  ;;  %4107 = vmatprep.mubr.bf16.mxu1 %v10993_v9 }
0x1bf5   :  { %4077 = vmatprep.subr.bf16.mxu1 %v11694_v30 }
0x1bf8   :  { %4078 = vmatpush1.bf16.msra.mxu1 %v11700_v47 }
0x1bf9   :  { %4223 = vmatprep.subr.bf16.mxu1 %v11706_v51 }
0x1cc6   :  { %v3961_v28 = vpop.f32.mrb[28].mxu1 }
0x1cc7   :  { %v3962_v17 = vadd.f32 %v3961_v28, %v11551_v34  ;;  %v3963_v56 = vpop.f32.mrb[29].mxu1 }
0x1cc8   :  { %v3964_v57 = vadd.f32 %v3963_v56, %v11554_v35  ;;  %v3965_v19 = vpop.f32.mrb[30].mxu1 }
0x1cc9   :  { %v3966_v25 = vpop.f32.mrb[31].mxu1  ;;  %3969 = vrot.lane.b32.xlu1 %v3962_v17, %s10994_s23 }
0x1cca   :  { %3980 = vrot.lane.b32.xlu0 %v3964_v57, %s10995_s24 }
0x1d3b   :  { %v3970_v42 = vpop.permute.xlu1 %3969 }
0x1d3c   :  { %v3972_v13 = vadd.f32 %v3970_v42, %v3962_v17  ;;  %v3981_v29 = vpop.permute.xlu0 %3980 }
0x1d3e   :  { %v3973_v33 = vsub.f32 0.0, %v3972_v13 }
0x1d40   :  { %v3974_v45 = vmul.f32 1.442695, %v3973_v33 }
0x1d42   :  { %10777 = vpow2.f32 %v3974_v45 }
0x1d4c   :  { %v10778_v43 = vpop.eup %10777 }
0x1d4d   :  { %v3976_v58 = vadd.f32 1.0, %v10778_v43 }
0x1d4f   :  { %10779 = vrcp.f32 %v3976_v58 }
0x1d59   :  { %v10780_v23 = vpop.eup %10779 }
0x1d5a   :  { %v3983_v16 = vmul.f32 %v10780_v23, %v3981_v29  ;;  %v3986_v54 = vsub.f32 1.0, %v10780_v23  ;;  %v3992_v28 = vmul.f32 %v10780_v23, %v3919_v37  ;;  %v11723_v37 = vld [vmem:[%s12476_s2 + $0x34] ss:$8 sps:$4 sm:$0xff]  }
0x1d5c   :  { %v3984_v41 = vadd.f32 %v3983_v16, %v3964_v57 }
0x1d5e   :  { %10781 = vtanh.f32 %v3984_v41 }
0x1d68   :  { %v10782_v44 = vpop.eup %10781 }
0x1d69   :  { %3988 = vrot.lane.b32.xlu1 %v10782_v44, %s10996_s1 }
0x1ddb   :  { %v3989_v49 = vpop.permute.xlu1 %3988 }
0x1ddc   :  { %v3991_v56 = vmul.f32 %v3989_v49, %v3986_v54 }
0x1dde   :  { %v3993_v19 = vadd.f32 %v3992_v28, %v3991_v56 }
0x1de0   :  { %v3994_v17 = vpack.c.bf16 %v3993_v19, %v3993_v19 }
0x1de2   :  { %3996 = vrot.lane.b32.xlu0 %v3994_v17, %s10995_s24 }
0x1e54   :  { %v3997_v25 = vpop.permute.xlu0 %3996 }
0x1e55   :  { %9229 = vmatmul.mubr.msk.bf16.vlgmr.msra.gmra.mrb[52].mxu0 %vm1655_vm8, %v3997_v25 }
0x1e56   :  { %4150 = vmatpush1.bf16.msra.mxu0 %v11493_v61  ;;  %4181 = vmatprep.mubr.bf16.mxu0 %v10993_v9 }
0x1e57   :  { %4151 = vmatprep.subr.bf16.mxu0 %v11498_v11 }
0x1e5a   :  { %4152 = vmatpush1.bf16.msra.mxu0 %v11508_v18 }
0x1e5b   :  { %4297 = vmatprep.subr.bf16.mxu0 %v11723_v37 }
0x1f28   :  { %v4035_v57 = vpop.f32.mrb[52].mxu0 }
0x1f29   :  { %v4036_v42 = vadd.f32 %v4035_v57, %v11576_v46  ;;  %v4037_v13 = vpop.f32.mrb[53].mxu0 }
0x1f2a   :  { %v4038_v33 = vadd.f32 %v4037_v13, %v11579_v36  ;;  %v4039_v61 = vpop.f32.mrb[54].mxu0 }
0x1f2b   :  { %v4040_v45 = vpop.f32.mrb[55].mxu0  ;;  %4043 = vrot.lane.b32.xlu1 %v4036_v42, %s10994_s23 }
0x1f2c   :  { %4054 = vrot.lane.b32.xlu0 %v4038_v33, %s10995_s24 }
0x1f9d   :  { %v4044_v11 = vpop.permute.xlu1 %4043 }
0x1f9e   :  { %v4046_v18 = vadd.f32 %v4044_v11, %v4036_v42  ;;  %v4055_v41 = vpop.permute.xlu0 %4054 }
0x1fa0   :  { %v4047_v43 = vsub.f32 0.0, %v4046_v18 }
0x1fa2   :  { %v4048_v58 = vmul.f32 1.442695, %v4047_v43 }
0x1fa4   :  { %10783 = vpow2.f32 %v4048_v58 }
0x1fae   :  { %v10784_v23 = vpop.eup %10783 }
0x1faf   :  { %v4050_v29 = vadd.f32 1.0, %v10784_v23 }
0x1fb1   :  { %10785 = vrcp.f32 %v4050_v29 }
0x1fbb   :  { %v10786_v16 = vpop.eup %10785 }
0x1fbc   :  { %v4057_v44 = vmul.f32 %v10786_v16, %v4055_v41  ;;  %v4060_v28 = vsub.f32 1.0, %v10786_v16  ;;  %v4066_v17 = vmul.f32 %v10786_v16, %v3993_v19 }
0x1fbe   :  { %v4058_v54 = vadd.f32 %v4057_v44, %v4038_v33 }
0x1fc0   :  { %10787 = vtanh.f32 %v4058_v54 }
0x1fca   :  { %v10788_v49 = vpop.eup %10787 }
0x1fcb   :  { %4062 = vrot.lane.b32.xlu1 %v10788_v49, %s10996_s1 }
0x203d   :  { %v4063_v56 = vpop.permute.xlu1 %4062 }
0x203e   :  { %v4065_v25 = vmul.f32 %v4063_v56, %v4060_v28 }
0x2040   :  { %v4067_v57 = vadd.f32 %v4066_v17, %v4065_v25 }
0x2042   :  { %v4068_v42 = vpack.c.bf16 %v4067_v57, %v4067_v57 }
0x2044   :  { %4070 = vrot.lane.b32.xlu0 %v4068_v42, %s10995_s24 }
0x20b6   :  { %v4071_v13 = vpop.permute.xlu0 %4070 }
0x20b7   :  { %9230 = vmatmul.mubr.msk.bf16.vlgmr.msra.gmra.mrb[32].mxu1 %vm1655_vm8, %v4071_v13 }
0x20b8   :  { %4224 = vmatpush1.bf16.msra.mxu1 %v11687_v27  ;;  %4255 = vmatprep.mubr.bf16.mxu1 %v10993_v9 }
0x20b9   :  { %4225 = vmatprep.subr.bf16.mxu1 %v11694_v30 }
0x20bc   :  { %4226 = vmatpush1.bf16.msra.mxu1 %v11700_v47 }
0x20bd   :  { %4371 = vmatprep.subr.bf16.mxu1 %v11706_v51 }
0x218a   :  { %v4109_v33 = vpop.f32.mrb[32].mxu1 }
0x218b   :  { %v4110_v19 = vadd.f32 %v4109_v33, %v11551_v34  ;;  %v4111_v61 = vpop.f32.mrb[33].mxu1 }
0x218c   :  { %v4112_v45 = vadd.f32 %v4111_v61, %v11554_v35  ;;  %v4113_v11 = vpop.f32.mrb[34].mxu1 }
0x218d   :  { %v4114_v18 = vpop.f32.mrb[35].mxu1  ;;  %4117 = vrot.lane.b32.xlu1 %v4110_v19, %s10994_s23  ;;  %v11748_v11 = vld [vmem:[%s12476_s2 + $0x30] ss:$8 sps:$4 sm:$0xff]  }
0x218e   :  { %4128 = vrot.lane.b32.xlu0 %v4112_v45, %s10995_s24 }
0x21ff   :  { %v4118_v43 = vpop.permute.xlu1 %4117 }
0x2200   :  { %v4120_v58 = vadd.f32 %v4118_v43, %v4110_v19  ;;  %v4129_v54 = vpop.permute.xlu0 %4128 }
0x2202   :  { %v4121_v23 = vsub.f32 0.0, %v4120_v58 }
0x2204   :  { %v4122_v29 = vmul.f32 1.442695, %v4121_v23 }
0x2206   :  { %10789 = vpow2.f32 %v4122_v29 }
0x2210   :  { %v10790_v16 = vpop.eup %10789 }
0x2211   :  { %v4124_v41 = vadd.f32 1.0, %v10790_v16 }
0x2213   :  { %10791 = vrcp.f32 %v4124_v41 }
0x221d   :  { %v10792_v44 = vpop.eup %10791 }
0x221e   :  { %v4131_v49 = vmul.f32 %v10792_v44, %v4129_v54  ;;  %v4134_v17 = vsub.f32 1.0, %v10792_v44  ;;  %v4140_v42 = vmul.f32 %v10792_v44, %v4067_v57  ;;  %v11755_v57 = vld [vmem:[%s12476_s2 + $0x44] ss:$8 sps:$4 sm:$0xff]  }
0x2220   :  { %v4132_v28 = vadd.f32 %v4131_v49, %v4112_v45  ;;  %v11761_v45 = vld [vmem:[%s12476_s2 + $0x40] ss:$8 sps:$4 sm:$0xff]  }
0x2222   :  { %10793 = vtanh.f32 %v4132_v28 }
0x222c   :  { %v10794_v56 = vpop.eup %10793 }
0x222d   :  { %4136 = vrot.lane.b32.xlu1 %v10794_v56, %s10996_s1 }
0x229f   :  { %v4137_v25 = vpop.permute.xlu1 %4136 }
0x22a0   :  { %v4139_v13 = vmul.f32 %v4137_v25, %v4134_v17 }
0x22a2   :  { %v4141_v33 = vadd.f32 %v4140_v42, %v4139_v13 }
0x22a4   :  { %v4142_v19 = vpack.c.bf16 %v4141_v33, %v4141_v33 }
0x22a6   :  { %4144 = vrot.lane.b32.xlu0 %v4142_v19, %s10995_s24 }
0x2318   :  { %v4145_v61 = vpop.permute.xlu0 %4144 }
0x2319   :  { %9231 = vmatmul.mubr.msk.bf16.vlgmr.msra.gmra.mrb[56].mxu0 %vm1655_vm8, %v4145_v61 }
0x231a   :  { %4298 = vmatpush1.bf16.msra.mxu0 %v11748_v11  ;;  %4329 = vmatprep.mubr.bf16.mxu0 %v10993_v9 }
0x231b   :  { %4299 = vmatprep.subr.bf16.mxu0 %v11755_v57 }
0x231e   :  { %4300 = vmatpush1.bf16.msra.mxu0 %v11761_v45 }
0x231f   :  { %4445 = vmatprep.subr.bf16.mxu0 %v11723_v37 }
0x23ec   :  { %v4183_v18 = vpop.f32.mrb[56].mxu0 }
0x23ed   :  { %v4184_v43 = vadd.f32 %v4183_v18, %v11576_v46  ;;  %v4185_v58 = vpop.f32.mrb[57].mxu0 }
0x23ee   :  { %v4186_v23 = vadd.f32 %v4185_v58, %v11579_v36  ;;  %v4187_v29 = vpop.f32.mrb[58].mxu0 }
0x23ef   :  { %v4188_v16 = vpop.f32.mrb[59].mxu0  ;;  %4191 = vrot.lane.b32.xlu1 %v4184_v43, %s10994_s23 }
0x23f0   :  { %4202 = vrot.lane.b32.xlu0 %v4186_v23, %s10995_s24 }
0x2461   :  { %v4192_v41 = vpop.permute.xlu1 %4191 }
0x2462   :  { %v4194_v44 = vadd.f32 %v4192_v41, %v4184_v43  ;;  %v4203_v25 = vpop.permute.xlu0 %4202 }
0x2464   :  { %v4195_v54 = vsub.f32 0.0, %v4194_v44 }
0x2466   :  { %v4196_v49 = vmul.f32 1.442695, %v4195_v54 }
0x2468   :  { %10795 = vpow2.f32 %v4196_v49 }
0x2472   :  { %v10796_v28 = vpop.eup %10795 }
0x2473   :  { %v4198_v56 = vadd.f32 1.0, %v10796_v28 }
0x2475   :  { %10797 = vrcp.f32 %v4198_v56 }
0x247f   :  { %v10798_v17 = vpop.eup %10797 }
0x2480   :  { %v4205_v42 = vmul.f32 %v10798_v17, %v4203_v25  ;;  %v4208_v61 = vsub.f32 1.0, %v10798_v17  ;;  %v4214_v58 = vmul.f32 %v10798_v17, %v4141_v33 }
0x2482   :  { %v4206_v13 = vadd.f32 %v4205_v42, %v4186_v23 }
0x2484   :  { %10799 = vtanh.f32 %v4206_v13 }
0x248e   :  { %v10800_v19 = vpop.eup %10799 }
0x248f   :  { %4210 = vrot.lane.b32.xlu1 %v10800_v19, %s10996_s1 }
0x2501   :  { %v4211_v18 = vpop.permute.xlu1 %4210 }
0x2502   :  { %v4213_v29 = vmul.f32 %v4211_v18, %v4208_v61 }
0x2504   :  { %v4215_v16 = vadd.f32 %v4214_v58, %v4213_v29 }
0x2506   :  { %v4216_v43 = vpack.c.bf16 %v4215_v16, %v4215_v16 }
0x2508   :  { %4218 = vrot.lane.b32.xlu0 %v4216_v43, %s10995_s24 }
0x257a   :  { %v4219_v41 = vpop.permute.xlu0 %4218 }
0x257b   :  { %9232 = vmatmul.mubr.msk.bf16.vlgmr.msra.gmra.mrb[36].mxu1 %vm1655_vm8, %v4219_v41 }
0x257c   :  { %4372 = vmatpush1.bf16.msra.mxu1 %v11687_v27  ;;  %4403 = vmatprep.mubr.bf16.mxu1 %v10993_v9 }
0x257d   :  { %4373 = vmatprep.subr.bf16.mxu1 %v11694_v30 }
0x2580   :  { %4374 = vmatpush1.bf16.msra.mxu1 %v11700_v47 }
0x2581   :  { %4519 = vmatprep.subr.bf16.mxu1 %v11706_v51 }
0x264e   :  { %v4257_v23 = vpop.f32.mrb[36].mxu1 }
0x264f   :  { %v4258_v33 = vadd.f32 %v4257_v23, %v11551_v34  ;;  %v4259_v44 = vpop.f32.mrb[37].mxu1 }
0x2650   :  { %v4260_v54 = vadd.f32 %v4259_v44, %v11554_v35  ;;  %v4261_v49 = vpop.f32.mrb[38].mxu1 }
0x2651   :  { %v4262_v28 = vpop.f32.mrb[39].mxu1  ;;  %4265 = vrot.lane.b32.xlu1 %v4258_v33, %s10994_s23 }
0x2652   :  { %4276 = vrot.lane.b32.xlu0 %v4260_v54, %s10995_s24 }
0x26c3   :  { %v4266_v56 = vpop.permute.xlu1 %4265 }
0x26c4   :  { %v4268_v17 = vadd.f32 %v4266_v56, %v4258_v33  ;;  %v4277_v61 = vpop.permute.xlu0 %4276 }
0x26c6   :  { %v4269_v25 = vsub.f32 0.0, %v4268_v17 }
0x26c8   :  { %v4270_v42 = vmul.f32 1.442695, %v4269_v25 }
0x26ca   :  { %10801 = vpow2.f32 %v4270_v42 }
0x26d4   :  { %v10802_v13 = vpop.eup %10801 }
0x26d5   :  { %v4272_v19 = vadd.f32 1.0, %v10802_v13 }
0x26d7   :  { %10803 = vrcp.f32 %v4272_v19 }
0x26e1   :  { %v10804_v51 = vpop.eup %10803 }
0x26e2   :  { %v4279_v18 = vmul.f32 %v10804_v51, %v4277_v61  ;;  %v4282_v43 = vsub.f32 1.0, %v10804_v51  ;;  %v4288_v23 = vmul.f32 %v10804_v51, %v4215_v16 }
0x26e4   :  { %v4280_v58 = vadd.f32 %v4279_v18, %v4260_v54 }
0x26e6   :  { %10805 = vtanh.f32 %v4280_v58 }
0x26f0   :  { %v10806_v29 = vpop.eup %10805 }
0x26f1   :  { %4284 = vrot.lane.b32.xlu1 %v10806_v29, %s10996_s1 }
0x2763   :  { %v4285_v41 = vpop.permute.xlu1 %4284 }
0x2764   :  { %v4287_v44 = vmul.f32 %v4285_v41, %v4282_v43 }
0x2766   :  { %v4289_v49 = vadd.f32 %v4288_v23, %v4287_v44 }
0x2768   :  { %v4290_v33 = vpack.c.bf16 %v4289_v49, %v4289_v49 }
0x276a   :  { %4292 = vrot.lane.b32.xlu0 %v4290_v33, %s10995_s24 }
0x27dc   :  { %v4293_v28 = vpop.permute.xlu0 %4292 }
0x27dd   :  { %9233 = vmatmul.mubr.msk.bf16.vlgmr.msra.gmra.mrb[60].mxu0 %vm1655_vm8, %v4293_v28 }
0x27de   :  { %4446 = vmatpush1.bf16.msra.mxu0 %v11748_v11  ;;  %4477 = vmatprep.mubr.bf16.mxu0 %v10993_v9 }
0x27df   :  { %4447 = vmatprep.subr.bf16.mxu0 %v11755_v57 }
0x27e2   :  { %4448 = vmatpush1.bf16.msra.mxu0 %v11761_v45 }
0x27e3   :  { %4593 = vmatprep.subr.bf16.mxu0 %v11723_v37 }
0x28b0   :  { %v4331_v54 = vpop.f32.mrb[60].mxu0 }
0x28b1   :  { %v4332_v16 = vadd.f32 %v4331_v54, %v11576_v46  ;;  %v4333_v56 = vpop.f32.mrb[61].mxu0 }
0x28b2   :  { %v4334_v17 = vadd.f32 %v4333_v56, %v11579_v36  ;;  %v4335_v25 = vpop.f32.mrb[62].mxu0 }
0x28b3   :  { %v4336_v42 = vpop.f32.mrb[63].mxu0  ;;  %4339 = vrot.lane.b32.xlu1 %v4332_v16, %s10994_s23 }
0x28b4   :  { %4350 = vrot.lane.b32.xlu0 %v4334_v17, %s10995_s24 }
0x2925   :  { %v4340_v13 = vpop.permute.xlu1 %4339 }
0x2926   :  { %v4342_v19 = vadd.f32 %v4340_v13, %v4332_v16  ;;  %v4351_v29 = vpop.permute.xlu0 %4350 }
0x2928   :  { %v4343_v51 = vsub.f32 0.0, %v4342_v19 }
0x292a   :  { %v4344_v61 = vmul.f32 1.442695, %v4343_v51 }
0x292c   :  { %10807 = vpow2.f32 %v4344_v61 }
0x2936   :  { %v10808_v18 = vpop.eup %10807 }
0x2937   :  { %v4346_v58 = vadd.f32 1.0, %v10808_v18 }
0x2939   :  { %10809 = vrcp.f32 %v4346_v58 }
0x2943   :  { %v10810_v37 = vpop.eup %10809 }
0x2944   :  { %v4353_v43 = vmul.f32 %v10810_v37, %v4351_v29  ;;  %v4356_v44 = vsub.f32 1.0, %v10810_v37  ;;  %v4362_v28 = vmul.f32 %v10810_v37, %v4289_v49 }
0x2946   :  { %v4354_v41 = vadd.f32 %v4353_v43, %v4334_v17 }
0x2948   :  { %10811 = vtanh.f32 %v4354_v41 }
0x2952   :  { %v10812_v23 = vpop.eup %10811 }
0x2953   :  { %4358 = vrot.lane.b32.xlu1 %v10812_v23, %s10996_s1 }
0x29c5   :  { %v4359_v33 = vpop.permute.xlu1 %4358 }
0x29c6   :  { %v4361_v54 = vmul.f32 %v4359_v33, %v4356_v44 }
0x29c8   :  { %v4363_v56 = vadd.f32 %v4362_v28, %v4361_v54 }
0x29ca   :  { %v4364_v16 = vpack.c.bf16 %v4363_v56, %v4363_v56 }
0x29cc   :  { %4366 = vrot.lane.b32.xlu0 %v4364_v16, %s10995_s24 }
0x2a3e   :  { %v4367_v25 = vpop.permute.xlu0 %4366 }
0x2a3f   :  { %9234 = vmatmul.mubr.msk.bf16.vlgmr.msra.gmra.mrb[40].mxu1 %vm1655_vm8, %v4367_v25 }
0x2a40   :  { %4520 = vmatpush1.bf16.msra.mxu1 %v11687_v27  ;;  %4551 = vmatprep.mubr.bf16.mxu1 %v10993_v9 }
0x2a41   :  { %4521 = vmatprep.subr.bf16.mxu1 %v11694_v30 }
0x2a44   :  { %4522 = vmatpush1.bf16.msra.mxu1 %v11700_v47 }
0x2b12   :  { %v4405_v17 = vpop.f32.mrb[40].mxu1 }
0x2b13   :  { %v4406_v42 = vadd.f32 %v4405_v17, %v11551_v34  ;;  %v4407_v49 = vpop.f32.mrb[41].mxu1 }
0x2b14   :  { %v4408_v13 = vadd.f32 %v4407_v49, %v11554_v35  ;;  %v4409_v19 = vpop.f32.mrb[42].mxu1 }
0x2b15   :  { %v4410_v51 = vpop.f32.mrb[43].mxu1  ;;  %4413 = vrot.lane.b32.xlu1 %v4406_v42, %s10994_s23 }
0x2b16   :  { %4424 = vrot.lane.b32.xlu0 %v4408_v13, %s10995_s24 }
0x2b87   :  { %v4414_v61 = vpop.permute.xlu1 %4413 }
0x2b88   :  { %v4416_v27 = vadd.f32 %v4414_v61, %v4406_v42  ;;  %v4425_v29 = vpop.permute.xlu0 %4424 }
0x2b8a   :  { %v4417_v18 = vsub.f32 0.0, %v4416_v27 }
0x2b8c   :  { %v4418_v58 = vmul.f32 1.442695, %v4417_v18 }
0x2b8e   :  { %10813 = vpow2.f32 %v4418_v58 }
0x2b98   :  { %v10814_v30 = vpop.eup %10813 }
0x2b99   :  { %v4420_v37 = vadd.f32 1.0, %v10814_v30 }
0x2b9b   :  { %10815 = vrcp.f32 %v4420_v37 }
0x2ba5   :  { %v10816_v47 = vpop.eup %10815 }
0x2ba6   :  { %v4427_v43 = vmul.f32 %v10816_v47, %v4425_v29  ;;  %v4430_v44 = vsub.f32 1.0, %v10816_v47  ;;  %v4436_v28 = vmul.f32 %v10816_v47, %v4363_v56 }
0x2ba8   :  { %v4428_v41 = vadd.f32 %v4427_v43, %v4408_v13 }
0x2baa   :  { %10817 = vtanh.f32 %v4428_v41 }
0x2bb4   :  { %v10818_v23 = vpop.eup %10817 }
0x2bb5   :  { %4432 = vrot.lane.b32.xlu1 %v10818_v23, %s10996_s1 }
0x2c27   :  { %v4433_v33 = vpop.permute.xlu1 %4432 }
0x2c28   :  { %v4435_v54 = vmul.f32 %v4433_v33, %v4430_v44 }
0x2c2a   :  { %v4437_v16 = vadd.f32 %v4436_v28, %v4435_v54 }
0x2c2c   :  { %v4438_v25 = vpack.c.bf16 %v4437_v16, %v4437_v16 }
0x2c2e   :  { %4440 = vrot.lane.b32.xlu0 %v4438_v25, %s10995_s24 }
0x2ca0   :  { %v4441_v17 = vpop.permute.xlu0 %4440 }
0x2ca1   :  { %9235 = vmatmul.mubr.msk.bf16.vlgmr.msra.gmra.mrb[64].mxu0 %vm1655_vm8, %v4441_v17 }
0x2ca2   :  { %4594 = vmatpush1.bf16.msra.mxu0 %v11748_v11  ;;  %4625 = vmatprep.mubr.bf16.mxu0 %v10993_v9 }
0x2ca3   :  { %4595 = vmatprep.subr.bf16.mxu0 %v11755_v57 }
0x2ca6   :  { %4596 = vmatpush1.bf16.msra.mxu0 %v11761_v45 }
0x2ca7   :  { %10427 = vmatprep.subr.bf16.mxu0 %v10990_v0 }
0x2d74   :  { %v4479_v42 = vpop.f32.mrb[64].mxu0 }
0x2d75   :  { %v4480_v56 = vadd.f32 %v4479_v42, %v11576_v46  ;;  %v4481_v49 = vpop.f32.mrb[65].mxu0 }
0x2d76   :  { %v4482_v13 = vadd.f32 %v4481_v49, %v11579_v36  ;;  %v4483_v19 = vpop.f32.mrb[66].mxu0 }
0x2d77   :  { %v4484_v51 = vpop.f32.mrb[67].mxu0  ;;  %4487 = vrot.lane.b32.xlu1 %v4480_v56, %s10994_s23 }
0x2d78   :  { %4498 = vrot.lane.b32.xlu0 %v4482_v13, %s10995_s24 }
0x2de9   :  { %v4488_v11 = vpop.permute.xlu1 %4487 }
0x2dea   :  { %v4490_v61 = vadd.f32 %v4488_v11, %v4480_v56  ;;  %v4499_v30 = vpop.permute.xlu0 %4498 }
0x2dec   :  { %v4491_v27 = vsub.f32 0.0, %v4490_v61 }
0x2dee   :  { %v4492_v57 = vmul.f32 1.442695, %v4491_v27 }
0x2df0   :  { %10819 = vpow2.f32 %v4492_v57 }
0x2dfa   :  { %v10820_v45 = vpop.eup %10819 }
0x2dfb   :  { %v4494_v18 = vadd.f32 1.0, %v10820_v45 }
0x2dfd   :  { %10821 = vrcp.f32 %v4494_v18 }
0x2e07   :  { %v10822_v58 = vpop.eup %10821 }
0x2e08   :  { %v4501_v37 = vmul.f32 %v10822_v58, %v4499_v30  ;;  %v4504_v43 = vsub.f32 1.0, %v10822_v58  ;;  %v4510_v23 = vmul.f32 %v10822_v58, %v4437_v16 }
0x2e0a   :  { %v4502_v47 = vadd.f32 %v4501_v37, %v4482_v13 }
0x2e0c   :  { %10823 = vtanh.f32 %v4502_v47 }
0x2e16   :  { %v10824_v29 = vpop.eup %10823 }
0x2e17   :  { %4506 = vrot.lane.b32.xlu1 %v10824_v29, %s10996_s1 }
0x2e89   :  { %v4507_v41 = vpop.permute.xlu1 %4506 }
0x2e8a   :  { %v4509_v44 = vmul.f32 %v4507_v41, %v4504_v43 }
0x2e8c   :  { %v4511_v33 = vadd.f32 %v4510_v23, %v4509_v44  ;;  %v9209_v44 = vld [vmem:[%s12473_s3 + $0xc8] ss:$0 sm:$0xff] }
0x2e8e   :  { %v4512_v28 = vpack.c.bf16 %v4511_v33, %v4511_v33 }
0x2e90   :  { %4514 = vrot.lane.b32.xlu0 %v4512_v28, %s10995_s24  ;;  %v10594_v28 = vadd.f32 %v9209_v44, %v11562_v40 }
0x2f02   :  { %v4515_v54 = vpop.permute.xlu0 %4514 }
0x2f03   :  { %9236 = vmatmul.mubr.msk.bf16.vlgmr.msra.gmra.mrb[44].mxu1 %vm1655_vm8, %v4515_v54  ;;  %v3131_v54 = vand.u32 2147483647, %v10594_v28 }
0x2f04   :  { %9931 = vmatprep.mubr.f32.mxu1 %v11109_v55 }
0x2fd6   :  { %v4553_v25 = vpop.f32.mrb[44].mxu1 }
0x2fd7   :  { %v4554_v17 = vadd.f32 %v4553_v25, %v11551_v34  ;;  %v4555_v42 = vpop.f32.mrb[45].mxu1  ;;  %v3132_v25 = vsub.f32 0.0, %v3131_v54 }
0x2fd8   :  { %v4556_v56 = vadd.f32 %v4555_v42, %v11554_v35  ;;  %v4557_v49 = vpop.f32.mrb[46].mxu1 }
0x2fd9   :  { %v4558_v13 = vpop.f32.mrb[47].mxu1  ;;  %4561 = vrot.lane.b32.xlu1 %v4554_v17, %s10994_s23 }
0x2fda   :  { %4572 = vrot.lane.b32.xlu0 %v4556_v56, %s10995_s24  ;;  %v3130_v13 = vmax.f32 %v10594_v28, 0.0 }
0x304b   :  { %v4562_v16 = vpop.permute.xlu1 %4561 }
0x304c   :  { %v4564_v19 = vadd.f32 %v4562_v16, %v4554_v17  ;;  %v4573_v57 = vpop.permute.xlu0 %4572 }
0x304e   :  { %v4565_v51 = vsub.f32 0.0, %v4564_v19 }
0x3050   :  { %v4566_v11 = vmul.f32 1.442695, %v4565_v51 }
0x3052   :  { %10825 = vpow2.f32 %v4566_v11 }
0x305c   :  { %v10826_v61 = vpop.eup %10825 }
0x305d   :  { %v4568_v27 = vadd.f32 1.0, %v10826_v61 }
0x305f   :  { %10827 = vrcp.f32 %v4568_v27 }
0x3069   :  { %v10828_v55 = vpop.eup %10827 }
0x306a   :  { %v4575_v45 = vmul.f32 %v10828_v55, %v4573_v57  ;;  %v4578_v30 = vsub.f32 1.0, %v10828_v55  ;;  %v4584_v47 = vmul.f32 %v10828_v55, %v4511_v33  ;;  %v3133_v33 = vmul.f32 1.442695, %v3132_v25 }
0x306c   :  { %v4576_v18 = vadd.f32 %v4575_v45, %v4556_v56 }
0x306e   :  { %10829 = vtanh.f32 %v4576_v18 }
0x306f   :  { %10831 = vpow2.f32 %v3133_v33 }
0x3078   :  { %v10830_v58 = vpop.eup %10829 }
0x3079   :  { %4580 = vrot.lane.b32.xlu1 %v10830_v58, %s10996_s1  ;;  %v10832_v17 = vpop.eup %10831 }
0x307a   :  { %v3135_v42 = vadd.f32 1.0, %v10832_v17 }
0x307c   :  { %10833 = vlog2.f32 %v3135_v42 }
0x3086   :  { %v10834_v56 = vpop.eup %10833 }
0x3087   :  { %v3137_v49 = vmul.f32 0.6931472, %v10834_v56 }
0x3089   :  { %v3138_v16 = vadd.f32 %v3137_v49, %v3130_v13 }
0x308b   :  { %vm3139_vm9 = vcmp.lt.f32.partialorder %v3138_v16, 0.005 }
0x308c   :  { %v4660_v40 = vsel %vm3139_vm9, 1, %v10993_v9 }
0x30eb   :  { %v4581_v37 = vpop.permute.xlu1 %4580 }
0x30ec   :  { %v4583_v29 = vmul.f32 %v4581_v37, %v4578_v30 }
0x30ee   :  { %v4585_v43 = vadd.f32 %v4584_v47, %v4583_v29 }
0x30f0   :  { %v4586_v41 = vpack.c.bf16 %v4585_v43, %v4585_v43 }
0x30f2   :  { %4588 = vrot.lane.b32.xlu0 %v4586_v41, %s10995_s24 }
0x3164   :  { %v4589_v23 = vpop.permute.xlu0 %4588 }
0x3165   :  { %9237 = vmatmul.mubr.msk.bf16.vlgmr.msra.gmra.mrb[68].mxu0 %vm1655_vm8, %v4589_v23 }
0x3166   :  { %9981 = vmatprep.mubr.msk.f32.mxu0 %vm10991_vm1, %v10992_v3 }
0x3238   :  { %v4627_v19 = vpop.f32.mrb[68].mxu0 }
0x3239   :  { %v4628_v51 = vadd.f32 %v4627_v19, %v11576_v46  ;;  %v4629_v11 = vpop.f32.mrb[69].mxu0 }
0x323a   :  { %v4630_v61 = vadd.f32 %v4629_v11, %v11579_v36  ;;  %v4631_v27 = vpop.f32.mrb[70].mxu0 }
0x323b   :  { %v4632_v55 = vpop.f32.mrb[71].mxu0  ;;  %4635 = vrot.lane.b32.xlu1 %v4628_v51, %s10994_s23 }
0x323c   :  { %4646 = vrot.lane.b32.xlu0 %v4630_v61, %s10995_s24 }
0x323f   :  { %4662 = vperm.xlu1 %10700, %v4660_v40  }
0x32ad   :  { %v4636_v57 = vpop.permute.xlu1 %4635 }
0x32ae   :  { %v4638_v45 = vadd.f32 %v4636_v57, %v4628_v51  ;;  %v4647_v29 = vpop.permute.xlu0 %4646 }
0x32b0   :  { %v4639_v18 = vsub.f32 0.0, %v4638_v45 }
0x32b2   :  { %v4640_v58 = vmul.f32 1.442695, %v4639_v18 }
0x32b4   :  { %10835 = vpow2.f32 %v4640_v58 }
0x32be   :  { %v10836_v30 = vpop.eup %10835  ;;  %v4663_v25 = vpop.permute.xlu1 %4662 }
0x32bf   :  { %v4642_v37 = vadd.f32 1.0, %v10836_v30  ;;  %vm4664_vm10 = vcmp.eq.s32.totalorder %v4663_v25, 1 }
0x32c1   :  { %10837 = vrcp.f32 %v4642_v37 }
0x32cb   :  { %v10838_v47 = vpop.eup %10837 }
0x32cc   :  { %v4649_v41 = vmul.f32 %v10838_v47, %v4647_v29  ;;  %v4652_v28 = vsub.f32 1.0, %v10838_v47  ;;  %v4658_v33 = vmul.f32 %v10838_v47, %v4585_v43 }
0x32ce   :  { %v4650_v23 = vadd.f32 %v4649_v41, %v4630_v61 }
0x32d0   :  { %10839 = vtanh.f32 %v4650_v23 }
0x32da   :  { %v10840_v44 = vpop.eup %10839 }
0x32db   :  { %4654 = vrot.lane.b32.xlu0 %v10840_v44, %s10996_s1 }
0x334d   :  { %v4655_v54 = vpop.permute.xlu0 %4654 }
0x334e   :  { %v4657_v17 = vmul.f32 %v4655_v54, %v4652_v28 }
0x3350   :  { %v4659_v42 = vadd.f32 %v4658_v33, %v4657_v17 }
0x3352   :  { %v4665_v56 = vsel %vm4664_vm10, %v4659_v42, %v11565_v31 }
0x3353   :  { %4667 = vrot.lane.b32.xlu1 %v4665_v56, %s10995_s24 }
0x33c5   :  { %v11841_v49 = vpop.permute.xlu1 %4667 }
0x33c6   :  { %v4671_v13 = vand.u32 4294901760, %v11841_v49 }
0x33c8   :  { %v4778_v16 = vsub.f32 %v11841_v49, %v4671_v13  ;;  %9929 = vmatprep.subr.mxu1 %v4671_v13 }
0x33c9   :  { %9930 = vmatpush3.msra.mxu1 %v4671_v13 }
0x33ca   :  { %9932 = vmatmul.mubr.f32.vlgmr.msra.gmra.mrb[18].mxu1 %v11152_v20  ;;  %v4779_v19 = vand.u32 4294901760, %v4778_v16 }
0x33cb   :  { %9934 = vmatprep.mubr.f32.mxu1 %v11156_v22 }
0x33cc   :  { %v4780_v43 = vsub.f32 %v4778_v16, %v4779_v19 }
0x33ce   :  { %9935 = vmatmul.mubr.f32.gmra.mrb[48].mxu1 %v11160_v24  ;;  %v4781_v51 = vand.u32 4294901760, %v4780_v43 }
0x33cf   :  { %9939 = vmatprep.mubr.msk.f32.mxu1 %vm592_vm4, %v11097_v50 }
0x33d0   :  { %9937 = vmatprep.subr.mxu1 %v4781_v51 }
0x33d1   :  { %9938 = vmatpush3.msra.mxu1 %v4781_v51 }
0x33d2   :  { %9940 = vmatmul.mubr.msk.f32.vlgmr.msra.gmra.mrb[18].mxu1 %vm592_vm4, %v11113_v59  ;;  %9945 = vmatprep.subr.mxu1 %v4778_v16 }
0x33d3   :  { %9942 = vmatprep.mubr.msk.f32.mxu1 %vm592_vm4, %v11116_v60  ;;  %9946 = vmatpush3.msra.mxu1 %v4778_v16 }
0x33d4   :  { %9953 = vmatprep.subr.mxu1 %v4671_v13 }
0x33d6   :  { %9943 = vmatmul.mubr.msk.f32.gmra.mrb[48].mxu1 %vm592_vm4, %v11121_v62 }
0x33d7   :  { %9947 = vmatprep.mubr.f32.mxu1 %v11101_v52  ;;  %v11886_v52 = vld [vmem:[%s12473_s3 + $0x80] sm:$0xff] }
0x33da   :  { %9948 = vmatmul.mubr.f32.vlgmr.msra.gmra.mrb[18].mxu1 %v11125_v1 }
0x33db   :  { %9954 = vmatpush3.msra.mxu1 %v4671_v13  ;;  %9950 = vmatprep.mubr.f32.mxu1 %v11127_v2 }
0x33dc   :  { %9961 = vmatprep.subr.mxu1 %v4779_v19 }
0x33de   :  { %9951 = vmatmul.mubr.f32.gmra.mrb[48].mxu1 %v11134_v6 }
0x33df   :  { %9955 = vmatprep.mubr.f32.mxu1 %v11105_v53  ;;  %v5721_v53 = vand.u32 4294901760, %v11886_v52 }
0x33e2   :  { %9956 = vmatmul.mubr.f32.vlgmr.msra.gmra.mrb[18].mxu1 %v11132_v5 }
0x33e3   :  { %9962 = vmatpush3.msra.mxu1 %v4779_v19  ;;  %9958 = vmatprep.mubr.f32.mxu1 %v11140_v8 }
0x33e4   :  { %9969 = vmatprep.subr.mxu1 %v4671_v13 }
0x33e6   :  { %9959 = vmatmul.mubr.f32.gmra.mrb[48].mxu1 %v11145_v15 }
0x33e7   :  { %9963 = vmatprep.mubr.msk.f32.mxu1 %vm592_vm4, %v11097_v50 }
0x33ea   :  { %9964 = vmatmul.mubr.msk.f32.vlgmr.msra.gmra.mrb[18].mxu1 %vm592_vm4, %v11113_v59 }
0x33eb   :  { %9970 = vmatpush3.msra.mxu1 %v4671_v13  ;;  %9966 = vmatprep.mubr.msk.f32.mxu1 %vm592_vm4, %v11116_v60 }
0x33ec   :  { %10457 = vmatprep.subr.bf16.mxu1 %v10990_v0 }
0x33ee   :  { %9967 = vmatmul.mubr.msk.f32.gmra.mrb[48].mxu1 %vm592_vm4, %v11121_v62 }
0x33ef   :  { %9971 = vmatprep.mubr.msk.f32.mxu1 %vm592_vm4, %v11097_v50  ;;  %v11891_v50 = vld [vmem:[%s12473_s3 + $0x88] sm:$0xff] }
0x33f2   :  { %9972 = vmatmul.mubr.msk.f32.vlgmr.msra.gmra.mrb[18].mxu1 %vm592_vm4, %v11113_v59  ;;  %v5724_v59 = vand.u32 4294901760, %v11891_v50 }
0x33f3   :  { %9974 = vmatprep.mubr.msk.f32.mxu1 %vm592_vm4, %v11116_v60  ;;  %v11896_v60 = vsub.f32 %v11886_v52, %v5721_v53 }
0x33f4   :  { %v11937_v54 = vpack.c.bf16 %v5724_v59, %v5721_v53 }
0x33f5   :  { %v5802_v43 = vand.u32 4294901760, %v11896_v60 }
0x33f6   :  { %9975 = vmatmul.mubr.msk.f32.gmra.mrb[48].mxu1 %vm592_vm4, %v11121_v62  ;;  %v11899_v62 = vsub.f32 %v11891_v50, %v5724_v59  ;;  %v6205_v50 = vsel %vm1655_vm8, %v11841_v49, 0  ;;  %v5709_v49 = vld [vmem:[%s12473_s3 + $0x68] sm:$0xff] }
0x33f7   :  { %10049 = vmatprep.mubr.msk.f32.mxu1 %vm10991_vm1, %v10992_v3 }
0x33f8   :  { %v10458_v1 = vpack.c.bf16 %v11899_v62, %v11896_v60  ;;  %v5809_v51 = vand.u32 4294901760, %v11899_v62 }
0x33fa   :  { %10459 = vmatpush3.bf16.msra.mxu1 %v10458_v1  ;;  %v5803_v1 = vsub.f32 %v11896_v60, %v5802_v43 }
0x33fb   :  { %10460 = vmatprep.subr.bf16.mxu1 %v10990_v0 }
0x34c5   :  { %v9973_v2 = vpop.f32.mrb[18].mxu1 }
0x34c6   :  { %v5223_v5 = vpop.f32.mrb[19].mxu1 }
0x34c9   :  { %v9976_v6 = vpop.f32.mrb[48].mxu1 }
0x34ca   :  { %v5246_v8 = vsub.f32 %v9973_v2, %v9976_v6  ;;  %v5235_v15 = vpop.f32.mrb[49].mxu1  ;;  %v5810_v2 = vsub.f32 %v11899_v62, %v5809_v51  ;;  %v10470_v6 = vpack.c.bf16 %v5809_v51, %v5802_v43 }
0x34cb   :  { %v5245_v20 = vsub.f32 %v5223_v5, %v5235_v15 }
0x34cc   :  { %v5248_v22 = vand.u32 2147483647, %v5246_v8  ;;  %v11955_v8 = vand.u32 4294901760, %v6205_v50  ;;  %v5811_v60 = vand.u32 4294901760, %v5810_v2  ;;  %v12066_v2 = vld [vmem:[%s12476_s2 + $0x14] ss:$8 sps:$4 sm:$0xff]  }
0x34cd   :  { %v5247_v24 = vand.u32 2147483647, %v5245_v20  ;;  %v5708_v20 = vld [vmem:[%s12473_s3 + $0x60] sm:$0xff] }
0x34ce   :  { %v5253_v31 = vand.u32 4294901760, %v5248_v22 }
0x34cf   :  { %v5250_v11 = vand.u32 4294901760, %v5247_v24 }
0x34d0   :  { %v5335_v61 = vsub.f32 %v5248_v22, %v5253_v31  ;;  %v5804_v22 = vand.u32 4294901760, %v5803_v1  ;;  %v12059_v1 = vld [vmem:[%s12476_s2] ss:$8 sps:$4 sm:$0xff]  }
0x34d1   :  { %v10428_v27 = vpack.c.bf16 %v5253_v31, %v5250_v11  ;;  %v5328_v55 = vsub.f32 %v5247_v24, %v5250_v11  ;;  %v6208_v24 = vand.u32 4294901760, %v5708_v20  ;;  %v6211_v31 = vand.u32 4294901760, %v5709_v49 }
0x34d2   :  { %v5336_v40 = vand.u32 4294901760, %v5335_v61  ;;  %v11971_v11 = vsub.f32 %v6205_v50, %v11955_v8 }
0x34d3   :  { %v5329_v57 = vand.u32 4294901760, %v5328_v55  ;;  %10429 = vmatpush3.bf16.msra.mxu0 %v10428_v27  ;;  %v10434_v45 = vpack.c.bf16 %v5335_v61, %v5328_v55 }
0x34d4   :  { %v5337_v18 = vsub.f32 %v5335_v61, %v5336_v40  ;;  %10430 = vmatprep.subr.bf16.mxu0 %v10990_v0 }
0x34d5   :  { %v5330_v58 = vsub.f32 %v5328_v55, %v5329_v57  ;;  %v10440_v30 = vpack.c.bf16 %v5336_v40, %v5329_v57  ;;  %v5711_v55 = vld [vmem:[%s12473_s3 + $0x78] sm:$0xff]  ;;  %v10452_v40 = vpack.c.bf16 %v5811_v60, %v5804_v22 }
0x34d6   :  { %v5338_v37 = vand.u32 4294901760, %v5337_v18  ;;  %9982 = vmatmul.mubr.f32.vlgmr.msra.gmra.mrb[72].mxu0 %v11216_v4 }
0x34d7   :  { %v5331_v47 = vand.u32 4294901760, %v5330_v58  ;;  %9988 = vmatprep.mubr.msk.f32.mxu0 %vm10991_vm1, %v10992_v3  ;;  %v6217_v58 = vand.u32 4294901760, %v5711_v55 }
0x34d9   :  { %v10431_v29 = vpack.c.bf16 %v5338_v37, %v5331_v47  ;;  %v6288_v37 = vsub.f32 %v5708_v20, %v6208_v24  ;;  %v6295_v47 = vsub.f32 %v5709_v49, %v6211_v31 }
0x34db   :  { %10432 = vmatpush3.bf16.msra.mxu0 %v10431_v29 }
0x34dc   :  { %10433 = vmatprep.subr.bf16.mxu0 %v10990_v0 }
0x34de   :  { %9989 = vmatmul.mubr.msk.f32.vlgmr.msra.gmra.mrb[72].mxu0 %vm128_vm0, %v11205_v32 }
0x34df   :  { %10435 = vmatpush3.bf16.msra.mxu0 %v10434_v45  ;;  %9995 = vmatprep.mubr.msk.f32.mxu0 %vm10991_vm1, %v10992_v3  ;;  %v11981_v45 = vpack.c.bf16 %v6211_v31, %v6208_v24 }
0x34e0   :  { %10436 = vmatprep.subr.bf16.mxu0 %v10990_v0 }
0x34e6   :  { %9996 = vmatmul.mubr.f32.vlgmr.msra.gmra.mrb[72].mxu0 %v11209_v38  ;;  %v5714_v38 = vld [vmem:[%s12473_s3 + $0x90] sm:$0xff] }
0x34e7   :  { %10438 = vmatpush3.bf16.msra.mxu0 %v10428_v27  ;;  %10002 = vmatprep.mubr.msk.f32.mxu0 %vm10991_vm1, %v10992_v3  ;;  %v5727_v4 = vand.u32 4294901760, %v5714_v38 }
0x34e8   :  { %10439 = vmatprep.subr.bf16.mxu0 %v10990_v0 }
0x34e9   :  { %v5815_v23 = vsub.f32 %v5714_v38, %v5727_v4 }
0x34eb   :  { %v5816_v25 = vand.u32 4294901760, %v5815_v23 }
0x34ed   :  { %v5817_v42 = vsub.f32 %v5815_v23, %v5816_v25 }
0x34ee   :  { %10003 = vmatmul.mubr.f32.vlgmr.msra.gmra.mrb[72].mxu0 %v11212_v48  ;;  %v5715_v48 = vld [vmem:[%s12473_s3 + $0x98] sm:$0xff] }
0x34ef   :  { %10441 = vmatpush3.bf16.msra.mxu0 %v10440_v30  ;;  %10009 = vmatprep.mubr.msk.f32.mxu0 %vm10991_vm1, %v10992_v3  ;;  %v5730_v41 = vand.u32 4294901760, %v5715_v48  ;;  %v5818_v13 = vand.u32 4294901760, %v5817_v42  ;;  %v6278_v30 = vand.u32 4294901760, %v11971_v11 }
0x34f0   :  { %10442 = vmatprep.subr.bf16.mxu0 %v10990_v0 }
0x34f1   :  { %v5822_v44 = vsub.f32 %v5715_v48, %v5730_v41  ;;  %v6279_v38 = vsub.f32 %v11971_v11, %v6278_v30 }
0x34f3   :  { %v10461_v28 = vpack.c.bf16 %v5822_v44, %v5815_v23  ;;  %v5823_v33 = vand.u32 4294901760, %v5822_v44  ;;  %v6280_v23 = vand.u32 4294901760, %v6279_v38 }
0x34f5   :  { %10462 = vmatpush3.bf16.msra.mxu1 %v10461_v28  ;;  %v10473_v17 = vpack.c.bf16 %v5823_v33, %v5816_v25  ;;  %v5824_v56 = vsub.f32 %v5822_v44, %v5823_v33  ;;  %v6289_v28 = vand.u32 4294901760, %v6288_v37  ;;  %v6296_v25 = vand.u32 4294901760, %v6295_v47 }
0x34f6   :  { %10010 = vmatmul.mubr.msk.f32.vlgmr.msra.gmra.mrb[72].mxu0 %vm128_vm0, %v11205_v32  ;;  %10469 = vmatprep.subr.bf16.mxu1 %v10990_v0 }
0x34f7   :  { %10444 = vmatpush3.bf16.msra.mxu0 %v10428_v27  ;;  %10016 = vmatprep.mubr.msk.f32.mxu0 %vm10991_vm1, %v10992_v3  ;;  %v5825_v16 = vand.u32 4294901760, %v5824_v56  ;;  %v5710_v27 = vld [vmem:[%s12473_s3 + $0x70] sm:$0xff]  ;;  %v6290_v33 = vsub.f32 %v6288_v37, %v6289_v28  ;;  %v10506_v42 = vpack.c.bf16 %v6296_v25, %v6289_v28 }
0x34f8   :  { %10445 = vmatprep.subr.bf16.mxu0 %v10990_v0  ;;  %v6214_v18 = vand.u32 4294901760, %v5710_v27 }
0x34f9   :  { %v10455_v19 = vpack.c.bf16 %v5825_v16, %v5818_v13  ;;  %v6291_v16 = vand.u32 4294901760, %v6290_v33 }
0x34fa   :  { %v11990_v29 = vpack.c.bf16 %v6217_v58, %v6214_v18  ;;  %v6302_v48 = vsub.f32 %v5710_v27, %v6214_v18 }
0x34fc   :  { %v6303_v56 = vand.u32 4294901760, %v6302_v48 }
0x34fe   :  { %10017 = vmatmul.mubr.msk.f32.vlgmr.msra.gmra.mrb[72].mxu0 %vm128_vm0, %v11205_v32  ;;  %v11942_v32 = vpack.c.bf16 %v5730_v41, %v5727_v4  ;;  %v6309_v4 = vsub.f32 %v5711_v55, %v6217_v58  ;;  %v10494_v41 = vpack.c.bf16 %v6295_v47, %v6288_v37  ;;  %v6304_v43 = vsub.f32 %v6302_v48, %v6303_v56 }
0x34ff   :  { %10027 = vmatprep.mubr.msk.f32.mxu0 %vm10991_vm1, %v10992_v3  ;;  %10447 = vmatpush3.bf16.msra.mxu0 %v11937_v54 }
0x3500   :  { %10448 = vmatprep.subr.bf16.mxu0 %v10990_v0  ;;  %v10497_v44 = vpack.c.bf16 %v6309_v4, %v6302_v48  ;;  %v6310_v13 = vand.u32 4294901760, %v6309_v4  ;;  %v6305_v50 = vand.u32 4294901760, %v6304_v43 }
0x3502   :  { %v6311_v51 = vsub.f32 %v6309_v4, %v6310_v13 }
0x3503   :  { %10450 = vmatpush3.bf16.msra.mxu0 %v11942_v32 }
0x3504   :  { %10451 = vmatprep.subr.bf16.mxu0 %v10990_v0 }
0x35d1   :  { %v5704_v52 = vpop.f32.mrb[72].mxu0 }
0x35d2   :  { %v5718_v53 = vsel %vm1655_vm8, %v5704_v52, 0  ;;  %v10018_v59 = vpop.f32.mrb[73].mxu0  ;;  %v10509_v52 = vpack.c.bf16 %v6310_v13, %v6303_v56 }
0x35d3   :  { %v11953_v5 = vand.u32 4294901760, %v5718_v53 }
0x35d5   :  { %v11958_v15 = vsub.f32 %v5718_v53, %v11953_v5  ;;  %v6312_v53 = vand.u32 4294901760, %v6311_v51 }
0x35d7   :  { %v5791_v62 = vand.u32 4294901760, %v11958_v15  ;;  %10050 = vmatmul.mubr.f32.vlgmr.msra.gmra.mrb[50].mxu1 %v11958_v15  ;;  %v10491_v59 = vpack.c.bf16 %v6312_v53, %v6305_v50  ;;  %v12089_v53 = vld [vmem:[%s12476_s2 + $0x30] ss:$8 sps:$4 sm:$0xff]  }
0x35d8   :  { %10471 = vmatpush3.bf16.msra.mxu1 %v10470_v6  ;;  %10071 = vmatprep.mubr.msk.f32.mxu1 %vm10991_vm1, %v10992_v3  ;;  %v12078_v6 = vld [vmem:[%s12476_s2 + $0x34] ss:$8 sps:$4 sm:$0xff]  }
0x35d9   :  { %v5792_v61 = vsub.f32 %v11958_v15, %v5791_v62  ;;  %10472 = vmatprep.subr.bf16.mxu1 %v10990_v0 }
0x35db   :  { %v5793_v57 = vand.u32 4294901760, %v5792_v61 }
0x35dc   :  { %10474 = vmatpush3.bf16.msra.mxu1 %v10473_v17  ;;  %v6297_v17 = vsub.f32 %v6295_v47, %v6296_v25 }
0x35dd   :  { %10028 = vmatmul.mubr.f32.vlgmr.msra.gmra.mrb[74].mxu0 %v5793_v57  ;;  %10481 = vmatprep.subr.bf16.mxu1 %v10990_v0 }
0x35de   :  { %10453 = vmatpush3.bf16.msra.mxu0 %v10452_v40  ;;  %10038 = vmatprep.mubr.msk.f32.mxu0 %vm10991_vm1, %v10992_v3 }
0x35df   :  { %10072 = vmatmul.mubr.f32.vlgmr.msra.gmra.mrb[52].mxu1 %v11953_v5  ;;  %10454 = vmatprep.subr.bf16.mxu0 %v10990_v0 }
0x35e0   :  { %10483 = vmatpush3.bf16.msra.mxu1 %v11981_v45  ;;  %10093 = vmatprep.mubr.msk.f32.mxu1 %vm10991_vm1, %v10992_v3 }
0x35e1   :  { %10484 = vmatprep.subr.bf16.mxu1 %v10990_v0 }
0x35e2   :  { %10456 = vmatpush3.bf16.msra.mxu0 %v10455_v19  ;;  %v6298_v19 = vand.u32 4294901760, %v6297_v17 }
0x35e3   :  { %10463 = vmatprep.subr.bf16.mxu0 %v10990_v0 }
0x35e4   :  { %10486 = vmatpush3.bf16.msra.mxu1 %v11990_v29 }
0x35e5   :  { %10039 = vmatmul.mubr.f32.vlgmr.msra.gmra.mrb[76].mxu0 %v11953_v5  ;;  %10493 = vmatprep.subr.bf16.mxu1 %v10990_v0 }
0x35e6   :  { %10465 = vmatpush3.bf16.msra.mxu0 %v11937_v54  ;;  %10060 = vmatprep.mubr.msk.f32.mxu0 %vm10991_vm1, %v10992_v3 }
0x35e7   :  { %10094 = vmatmul.mubr.f32.vlgmr.msra.gmra.mrb[54].mxu1 %v6280_v23  ;;  %10466 = vmatprep.subr.bf16.mxu0 %v10990_v0 }
0x35e8   :  { %10495 = vmatpush3.bf16.msra.mxu1 %v10494_v41  ;;  %10115 = vmatprep.mubr.msk.f32.mxu1 %vm10991_vm1, %v10992_v3 }
0x35e9   :  { %10496 = vmatprep.subr.bf16.mxu1 %v10990_v0 }
0x35ea   :  { %10468 = vmatpush3.bf16.msra.mxu0 %v11942_v32 }
0x35eb   :  { %10475 = vmatprep.subr.bf16.mxu0 %v10990_v0 }
0x35ec   :  { %10498 = vmatpush3.bf16.msra.mxu1 %v10497_v44 }
0x35ed   :  { %10061 = vmatmul.mubr.f32.vlgmr.msra.gmra.mrb[78].mxu0 %v5791_v62  ;;  %10505 = vmatprep.subr.bf16.mxu1 %v10990_v0 }
0x35ee   :  { %10477 = vmatpush3.bf16.msra.mxu0 %v11937_v54  ;;  %10082 = vmatprep.mubr.msk.f32.mxu0 %vm10991_vm1, %v10992_v3  ;;  %v10488_v54 = vpack.c.bf16 %v6298_v19, %v6291_v16 }
0x35ef   :  { %10116 = vmatmul.mubr.f32.vlgmr.msra.gmra.mrb[56].mxu1 %v11971_v11  ;;  %10478 = vmatprep.subr.bf16.mxu0 %v10990_v0 }
0x35f0   :  { %10507 = vmatpush3.bf16.msra.mxu1 %v10506_v42  ;;  %10137 = vmatprep.mubr.msk.f32.mxu1 %vm10991_vm1, %v10992_v3  ;;  %v9253_v42 = vld [vmem:[%s12473_s3 + $0xa0] ss:$0 sm:$0xff] }
0x35f1   :  { %10508 = vmatprep.subr.bf16.mxu1 %v10990_v0 }
0x35f2   :  { %10480 = vmatpush3.bf16.msra.mxu0 %v11942_v32  ;;  %v12052_v32 = vld [vmem:[%s12476_s2 + $0x4] ss:$8 sps:$4 sm:$0xff]  }
0x35f3   :  { %10487 = vmatprep.subr.bf16.mxu0 %v10990_v0 }
0x35f4   :  { %10510 = vmatpush3.bf16.msra.mxu1 %v10509_v52 }
0x35f5   :  { %10083 = vmatmul.mubr.f32.vlgmr.msra.gmra.mrb[80].mxu0 %v11953_v5  ;;  %10517 = vmatprep.subr.bf16.mxu1 %v10990_v0  ;;  %v12072_v5 = vld [vmem:[%s12476_s2 + $0x10] ss:$8 sps:$4 sm:$0xff]  }
0x35f6   :  { %10489 = vmatpush3.bf16.msra.mxu0 %v10488_v54  ;;  %10104 = vmatprep.mubr.msk.f32.mxu0 %vm10991_vm1, %v10992_v3 }
0x35f7   :  { %10138 = vmatmul.mubr.f32.vlgmr.msra.gmra.mrb[58].mxu1 %v11955_v8  ;;  %10490 = vmatprep.subr.bf16.mxu0 %v10990_v0 }
0x35f8   :  { %10519 = vmatpush3.bf16.msra.mxu1 %v11459_v39  ;;  %10159 = vmatprep.mubr.msk.f32.mxu1 %vm10991_vm1, %v10992_v3 }
0x35f9   :  { %10520 = vmatprep.subr.bf16.mxu1 %v10990_v0 }
0x35fa   :  { %10492 = vmatpush3.bf16.msra.mxu0 %v10491_v59  ;;  %v12096_v59 = vld [vmem:[%s12476_s2 + $0x44] ss:$8 sps:$4 sm:$0xff]  }
0x35fb   :  { %10499 = vmatprep.subr.bf16.mxu0 %v10990_v0 }
0x35fc   :  { %10522 = vmatpush3.bf16.msra.mxu1 %v11469_v26 }
0x35fd   :  { %10105 = vmatmul.mubr.f32.vlgmr.msra.gmra.mrb[82].mxu0 %v11955_v8  ;;  %10523 = vmatprep.subr.bf16.mxu1 %v10990_v0 }
0x35fe   :  { %10501 = vmatpush3.bf16.msra.mxu0 %v11981_v45  ;;  %10126 = vmatprep.mubr.msk.f32.mxu0 %vm10991_vm1, %v10992_v3 }
0x35ff   :  { %10502 = vmatprep.subr.bf16.mxu0 %v10990_v0 }
0x3602   :  { %10504 = vmatpush3.bf16.msra.mxu0 %v11990_v29 }
0x3603   :  { %10511 = vmatprep.subr.bf16.mxu0 %v10990_v0 }
0x3605   :  { %10127 = vmatmul.mubr.f32.vlgmr.msra.gmra.mrb[84].mxu0 %v6278_v30 }
0x3606   :  { %10513 = vmatpush3.bf16.msra.mxu0 %v11981_v45  ;;  %10148 = vmatprep.mubr.msk.f32.mxu0 %vm10991_vm1, %v10992_v3 }
0x3607   :  { %10514 = vmatprep.subr.bf16.mxu0 %v10990_v0 }
0x360a   :  { %10516 = vmatpush3.bf16.msra.mxu0 %v11990_v29 }
0x360b   :  { %7200 = vmatprep.subr.bf16.mxu0 %v12052_v32 }
0x360d   :  { %10149 = vmatmul.mubr.f32.vlgmr.msra.gmra.mrb[86].mxu0 %v11955_v8 }
0x360e   :  { %7201 = vmatpush1.bf16.msra.mxu0 %v12059_v1  ;;  %7232 = vmatprep.mubr.bf16.mxu0 %v10993_v9 }
0x360f   :  { %7202 = vmatprep.subr.bf16.mxu0 %v12066_v2 }
0x3612   :  { %7203 = vmatpush1.bf16.msra.mxu0 %v12072_v5 }
0x3613   :  { %7277 = vmatprep.subr.bf16.mxu0 %v12078_v6 }
0x36aa   :  { %v5966_v8 = vpop.f32.mrb[50].mxu1 }
0x36ab   :  { %v10051_v15 = vpop.f32.mrb[51].mxu1 }
0x36b0   :  { %v5795_v20 = vpop.f32.mrb[74].mxu0 }
0x36b1   :  { %v10029_v49 = vpop.f32.mrb[75].mxu0 }
0x36b2   :  { %v6126_v22 = vpop.f32.mrb[52].mxu1 }
0x36b3   :  { %v10073_v60 = vpop.f32.mrb[53].mxu1 }
0x36b8   :  { %v5886_v62 = vpop.f32.mrb[76].mxu0 }
0x36b9   :  { %v5887_v24 = vadd.f32 %v5886_v62, %v5795_v20  ;;  %v10040_v31 = vpop.f32.mrb[77].mxu0  ;;  %v12102_v20 = vld [vmem:[%s12476_s2 + $0x40] ss:$8 sps:$4 sm:$0xff]  }
0x36ba   :  { %v6282_v11 = vpop.f32.mrb[54].mxu1 }
0x36bb   :  { %v10095_v61 = vpop.f32.mrb[55].mxu1  ;;  %v5967_v27 = vadd.f32 %v5966_v8, %v5887_v24 }
0x36c0   :  { %v6043_v55 = vpop.f32.mrb[78].mxu0 }
0x36c1   :  { %v6044_v40 = vadd.f32 %v6043_v55, %v5967_v27  ;;  %v10062_v57 = vpop.f32.mrb[79].mxu0 }
0x36c2   :  { %v6453_v45 = vpop.f32.mrb[56].mxu1 }
0x36c3   :  { %v10117_v18 = vpop.f32.mrb[57].mxu1  ;;  %v6127_v58 = vadd.f32 %v6126_v22, %v6044_v40 }
0x36c8   :  { %v6201_v30 = vpop.f32.mrb[80].mxu0 }
0x36c9   :  { %v6202_v37 = vadd.f32 %v6201_v30, %v6127_v58  ;;  %v10084_v47 = vpop.f32.mrb[81].mxu0 }
0x36ca   :  { %v6613_v29 = vpop.f32.mrb[58].mxu1 }
0x36cb   :  { %v10139_v38 = vpop.f32.mrb[59].mxu1  ;;  %v6283_v48 = vadd.f32 %v6282_v11, %v6202_v37 }
0x36d0   :  { %v6373_v4 = vpop.f32.mrb[82].mxu0 }
0x36d1   :  { %v6374_v41 = vadd.f32 %v6373_v4, %v6283_v48  ;;  %v10106_v23 = vpop.f32.mrb[83].mxu0 }
0x36d3   :  { %v6454_v44 = vadd.f32 %v6453_v45, %v6374_v41 }
0x36d8   :  { %v6530_v28 = vpop.f32.mrb[84].mxu0 }
0x36d9   :  { %v6531_v25 = vadd.f32 %v6530_v28, %v6454_v44  ;;  %v10128_v33 = vpop.f32.mrb[85].mxu0 }
0x36db   :  { %v6614_v17 = vadd.f32 %v6613_v29, %v6531_v25 }
0x36e0   :  { %v6688_v56 = vpop.f32.mrb[86].mxu0 }
0x36e1   :  { %v6689_v13 = vadd.f32 %v6688_v56, %v6614_v17  ;;  %v10150_v16 = vpop.f32.mrb[87].mxu0 }
0x36e3   :  { %v6696_v19 = vadd.f32 %v9253_v42, %v6689_v13 }
0x36e5   :  { %v6697_v43 = vmax.f32 %v6696_v19, 0.0 }
0x36e7   :  { %v6699_v51 = vsel %vm1655_vm8, %v6697_v43, 0  ;;  %v7196_v52 = vpack.c.bf16 %v6697_v43, %v6697_v43 }
0x36e8   :  { %v6770_v54 = vand.u32 4294901760, %v6699_v51 }
0x36e9   :  { %9254 = vmatmul.mubr.msk.bf16.vlgmr.msra.gmra.mrb[88].mxu0 %vm1655_vm8, %v7196_v52 }
0x36ea   :  { %v6771_v50 = vsub.f32 %v6699_v51, %v6770_v54  ;;  %7278 = vmatpush1.bf16.msra.mxu0 %v12089_v53  ;;  %7309 = vmatprep.mubr.bf16.mxu0 %v10993_v9 }
0x36eb   :  { %7279 = vmatprep.subr.bf16.mxu0 %v12096_v59 }
0x36ec   :  { %v6772_v8 = vand.u32 4294901760, %v6771_v50 }
0x36ee   :  { %v6773_v15 = vsub.f32 %v6771_v50, %v6772_v8  ;;  %7280 = vmatpush1.bf16.msra.mxu0 %v12102_v20 }
0x36ef   :  { %7351 = vmatprep.subr.bf16.mxu0 %v12052_v32 }
0x36f0   :  { %v6774_v49 = vand.u32 4294901760, %v6773_v15 }
0x36f2   :  { %10160 = vmatmul.mubr.f32.vlgmr.msra.gmra.mrb[60].mxu1 %v6774_v49 }
0x36f3   :  { %10525 = vmatpush3.bf16.msra.mxu1 %v11473_v63  ;;  %10170 = vmatprep.mubr.msk.f32.mxu1 %vm10991_vm1, %v10992_v3 }
0x36f4   :  { %10526 = vmatprep.subr.bf16.mxu1 %v10990_v0 }
0x36f7   :  { %10528 = vmatpush3.bf16.msra.mxu1 %v11475_v7 }
0x36f8   :  { %10529 = vmatprep.subr.bf16.mxu1 %v10990_v0 }
0x36fa   :  { %10171 = vmatmul.mubr.f32.vlgmr.msra.gmra.mrb[60].mxu1 %v6770_v54 }
0x36fb   :  { %10531 = vmatpush3.bf16.msra.mxu1 %v11477_v10  ;;  %10181 = vmatprep.mubr.msk.f32.mxu1 %vm10991_vm1, %v10992_v3 }
0x36fc   :  { %10532 = vmatprep.subr.bf16.mxu1 %v10990_v0 }
0x36ff   :  { %10534 = vmatpush3.bf16.msra.mxu1 %v11479_v12 }
0x3700   :  { %10535 = vmatprep.subr.bf16.mxu1 %v10990_v0 }
0x3702   :  { %10182 = vmatmul.mubr.f32.vlgmr.msra.gmra.mrb[60].mxu1 %v6771_v50 }
0x3703   :  { %10537 = vmatpush3.bf16.msra.mxu1 %v11459_v39  ;;  %10192 = vmatprep.mubr.msk.f32.mxu1 %vm10991_vm1, %v10992_v3 }
0x3704   :  { %10538 = vmatprep.subr.bf16.mxu1 %v10990_v0 }
0x3707   :  { %10540 = vmatpush3.bf16.msra.mxu1 %v11469_v26 }
0x3708   :  { %10541 = vmatprep.subr.bf16.mxu1 %v10990_v0 }
0x370a   :  { %10193 = vmatmul.mubr.f32.vlgmr.msra.gmra.mrb[60].mxu1 %v6772_v8 }
0x370b   :  { %10543 = vmatpush3.bf16.msra.mxu1 %v11481_v14  ;;  %10203 = vmatprep.mubr.msk.f32.mxu1 %vm10991_vm1, %v10992_v3 }
0x370c   :  { %10544 = vmatprep.subr.bf16.mxu1 %v10990_v0 }
0x370f   :  { %10546 = vmatpush3.bf16.msra.mxu1 %v11483_v21 }
0x3710   :  { %10547 = vmatprep.subr.bf16.mxu1 %v10990_v0 }
0x3712   :  { %10204 = vmatmul.mubr.f32.vlgmr.msra.gmra.mrb[60].mxu1 %v6770_v54 }
0x3713   :  { %10549 = vmatpush3.bf16.msra.mxu1 %v11459_v39  ;;  %10214 = vmatprep.mubr.msk.f32.mxu1 %vm10991_vm1, %v10992_v3 }
0x3714   :  { %10550 = vmatprep.subr.bf16.mxu1 %v10990_v0 }
0x3717   :  { %10552 = vmatpush3.bf16.msra.mxu1 %v11469_v26 }
0x3718   :  { %7647 = vmatprep.subr.bf16.mxu1 %v12052_v32 }
0x371a   :  { %10215 = vmatmul.mubr.f32.vlgmr.msra.gmra.mrb[60].mxu1 %v6770_v54 }
0x371b   :  { %7648 = vmatpush1.bf16.msra.mxu1 %v12059_v1  ;;  %7679 = vmatprep.mubr.bf16.mxu1 %v10993_v9 }
0x371c   :  { %7649 = vmatprep.subr.bf16.mxu1 %v12066_v2 }
0x371f   :  { %7650 = vmatpush1.bf16.msra.mxu1 %v12072_v5 }
0x3720   :  { %7795 = vmatprep.subr.bf16.mxu1 %v12052_v32 }
0x37bc   :  { %v7234_v39 = vpop.f32.mrb[88].mxu0 }
0x37bd   :  { %v7235_v63 = vadd.f32 %v7234_v39, %v11551_v34  ;;  %v7236_v7 = vpop.f32.mrb[89].mxu0 }
0x37be   :  { %v7237_v10 = vadd.f32 %v7236_v7, %v11554_v35  ;;  %v7238_v26 = vpop.f32.mrb[90].mxu0 }
0x37bf   :  { %v7239_v12 = vpop.f32.mrb[91].mxu0  ;;  %7242 = vrot.lane.b32.xlu0 %v7235_v63, %s10994_s23 }
0x37c0   :  { %7253 = vrot.lane.b32.xlu1 %v7237_v10, %s10995_s24 }
0x37c4   :  { %7265 = vrot.lane.b32.xlu1 %v6697_v43, %s10996_s1 }
0x37ed   :  { %v12146_v14 = vpop.f32.mrb[60].mxu1 }
0x37ee   :  { %v10216_v21 = vpop.f32.mrb[61].mxu1 }
0x3831   :  { %v7243_v22 = vpop.permute.xlu0 %7242 }
0x3832   :  { %v7245_v60 = vadd.f32 %v7243_v22, %v7235_v63  ;;  %v7254_v27 = vpop.permute.xlu1 %7253 }
0x3834   :  { %v7246_v62 = vsub.f32 0.0, %v7245_v60 }
0x3836   :  { %v7247_v24 = vmul.f32 1.442695, %v7246_v62  ;;  %v12149_v18 = vpop.permute.xlu1 %7265 }
0x3838   :  { %10841 = vpow2.f32 %v7247_v24 }
0x3842   :  { %v10842_v31 = vpop.eup %10841 }
0x3843   :  { %v7249_v11 = vadd.f32 1.0, %v10842_v31 }
0x3845   :  { %10843 = vrcp.f32 %v7249_v11 }
0x384f   :  { %v10844_v61 = vpop.eup %10843 }
0x3850   :  { %v7256_v55 = vmul.f32 %v10844_v61, %v7254_v27  ;;  %v7259_v45 = vsub.f32 1.0, %v10844_v61  ;;  %v7268_v30 = vmul.f32 %v10844_v61, %v12149_v18 }
0x3852   :  { %v7257_v40 = vadd.f32 %v7256_v55, %v7237_v10 }
0x3854   :  { %10845 = vtanh.f32 %v7257_v40 }
0x385e   :  { %v10846_v57 = vpop.eup %10845 }
0x385f   :  { %7261 = vrot.lane.b32.xlu0 %v10846_v57, %s10996_s1 }
0x38d1   :  { %v7262_v58 = vpop.permute.xlu0 %7261 }
0x38d2   :  { %v7264_v37 = vmul.f32 %v7262_v58, %v7259_v45 }
0x38d4   :  { %v7269_v47 = vadd.f32 %v7268_v30, %v7264_v37 }
0x38d6   :  { %v7270_v29 = vpack.c.bf16 %v7269_v47, %v7269_v47 }
0x38d8   :  { %7272 = vrot.lane.b32.xlu0 %v7270_v29, %s10995_s24 }
0x394a   :  { %v7273_v38 = vpop.permute.xlu0 %7272 }
0x394b   :  { %9255 = vmatmul.mubr.msk.bf16.vlgmr.msra.gmra.mrb[92].mxu0 %vm1655_vm8, %v7273_v38 }
0x394c   :  { %7352 = vmatpush1.bf16.msra.mxu0 %v12059_v1  ;;  %7383 = vmatprep.mubr.bf16.mxu0 %v10993_v9 }
0x394d   :  { %7353 = vmatprep.subr.bf16.mxu0 %v12066_v2 }
0x3950   :  { %7354 = vmatpush1.bf16.msra.mxu0 %v12072_v5 }
0x3951   :  { %7425 = vmatprep.subr.bf16.mxu0 %v12078_v6 }
0x3a1e   :  { %v7311_v48 = vpop.f32.mrb[92].mxu0 }
0x3a1f   :  { %v7312_v4 = vadd.f32 %v7311_v48, %v11576_v46  ;;  %v7313_v41 = vpop.f32.mrb[93].mxu0 }
0x3a20   :  { %v7314_v23 = vadd.f32 %v7313_v41, %v11579_v36  ;;  %v7315_v44 = vpop.f32.mrb[94].mxu0 }
0x3a21   :  { %v7316_v28 = vpop.f32.mrb[95].mxu0  ;;  %7319 = vrot.lane.b32.xlu1 %v7312_v4, %s10994_s23 }
0x3a22   :  { %7330 = vrot.lane.b32.xlu0 %v7314_v23, %s10995_s24 }
0x3a93   :  { %v7320_v25 = vpop.permute.xlu1 %7319 }
0x3a94   :  { %v7322_v33 = vadd.f32 %v7320_v25, %v7312_v4  ;;  %v7331_v19 = vpop.permute.xlu0 %7330 }
0x3a96   :  { %v7323_v17 = vsub.f32 0.0, %v7322_v33 }
0x3a98   :  { %v7324_v42 = vmul.f32 1.442695, %v7323_v17 }
0x3a9a   :  { %10847 = vpow2.f32 %v7324_v42 }
0x3aa4   :  { %v10848_v56 = vpop.eup %10847 }
0x3aa5   :  { %v7326_v13 = vadd.f32 1.0, %v10848_v56 }
0x3aa7   :  { %10849 = vrcp.f32 %v7326_v13 }
0x3ab1   :  { %v10850_v16 = vpop.eup %10849 }
0x3ab2   :  { %v7333_v43 = vmul.f32 %v10850_v16, %v7331_v19  ;;  %v7336_v54 = vsub.f32 1.0, %v10850_v16  ;;  %v7342_v8 = vmul.f32 %v10850_v16, %v7269_v47 }
0x3ab4   :  { %v7334_v51 = vadd.f32 %v7333_v43, %v7314_v23 }
0x3ab6   :  { %10851 = vtanh.f32 %v7334_v51 }
0x3ac0   :  { %v10852_v52 = vpop.eup %10851 }
0x3ac1   :  { %7338 = vrot.lane.b32.xlu1 %v10852_v52, %s10996_s1 }
0x3b33   :  { %v7339_v50 = vpop.permute.xlu1 %7338 }
0x3b34   :  { %v7341_v15 = vmul.f32 %v7339_v50, %v7336_v54 }
0x3b36   :  { %v7343_v49 = vadd.f32 %v7342_v8, %v7341_v15 }
0x3b38   :  { %v7344_v39 = vpack.c.bf16 %v7343_v49, %v7343_v49 }
0x3b3a   :  { %7346 = vrot.lane.b32.xlu0 %v7344_v39, %s10995_s24 }
0x3bac   :  { %v7347_v63 = vpop.permute.xlu0 %7346 }
0x3bad   :  { %9256 = vmatmul.mubr.msk.bf16.vlgmr.msra.gmra.mrb[96].mxu0 %vm1655_vm8, %v7347_v63 }
0x3bae   :  { %7426 = vmatpush1.bf16.msra.mxu0 %v12089_v53  ;;  %7457 = vmatprep.mubr.bf16.mxu0 %v10993_v9 }
0x3baf   :  { %7427 = vmatprep.subr.bf16.mxu0 %v12096_v59 }
0x3bb2   :  { %7428 = vmatpush1.bf16.msra.mxu0 %v12102_v20 }
0x3bb3   :  { %7499 = vmatprep.subr.bf16.mxu0 %v12052_v32 }
0x3c80   :  { %v7385_v7 = vpop.f32.mrb[96].mxu0 }
0x3c81   :  { %v7386_v10 = vadd.f32 %v7385_v7, %v11551_v34  ;;  %v7387_v26 = vpop.f32.mrb[97].mxu0 }
0x3c82   :  { %v7388_v12 = vadd.f32 %v7387_v26, %v11554_v35  ;;  %v7389_v21 = vpop.f32.mrb[98].mxu0 }
0x3c83   :  { %v7390_v22 = vpop.f32.mrb[99].mxu0  ;;  %7393 = vrot.lane.b32.xlu1 %v7386_v10, %s10994_s23 }
0x3c84   :  { %7404 = vrot.lane.b32.xlu0 %v7388_v12, %s10995_s24 }
0x3cf5   :  { %v7394_v60 = vpop.permute.xlu1 %7393 }
0x3cf6   :  { %v7396_v62 = vadd.f32 %v7394_v60, %v7386_v10  ;;  %v7405_v55 = vpop.permute.xlu0 %7404 }
0x3cf8   :  { %v7397_v24 = vsub.f32 0.0, %v7396_v62 }
0x3cfa   :  { %v7398_v31 = vmul.f32 1.442695, %v7397_v24 }
0x3cfc   :  { %10853 = vpow2.f32 %v7398_v31 }
0x3d06   :  { %v10854_v11 = vpop.eup %10853 }
0x3d07   :  { %v7400_v61 = vadd.f32 1.0, %v10854_v11 }
0x3d09   :  { %10855 = vrcp.f32 %v7400_v61 }
0x3d13   :  { %v10856_v27 = vpop.eup %10855 }
0x3d14   :  { %v7407_v40 = vmul.f32 %v10856_v27, %v7405_v55  ;;  %v7410_v58 = vsub.f32 1.0, %v10856_v27  ;;  %v7416_v37 = vmul.f32 %v10856_v27, %v7343_v49 }
0x3d16   :  { %v7408_v57 = vadd.f32 %v7407_v40, %v7388_v12 }
0x3d18   :  { %10857 = vtanh.f32 %v7408_v57 }
0x3d22   :  { %v10858_v45 = vpop.eup %10857 }
0x3d23   :  { %7412 = vrot.lane.b32.xlu1 %v10858_v45, %s10996_s1 }
0x3d95   :  { %v7413_v30 = vpop.permute.xlu1 %7412 }
0x3d96   :  { %v7415_v47 = vmul.f32 %v7413_v30, %v7410_v58 }
0x3d98   :  { %v7417_v29 = vadd.f32 %v7416_v37, %v7415_v47 }
0x3d9a   :  { %v7418_v38 = vpack.c.bf16 %v7417_v29, %v7417_v29 }
0x3d9c   :  { %7420 = vrot.lane.b32.xlu0 %v7418_v38, %s10995_s24 }
0x3e0e   :  { %v7421_v48 = vpop.permute.xlu0 %7420 }
0x3e0f   :  { %9257 = vmatmul.mubr.msk.bf16.vlgmr.msra.gmra.mrb[100].mxu0 %vm1655_vm8, %v7421_v48 }
0x3e10   :  { %7500 = vmatpush1.bf16.msra.mxu0 %v12059_v1  ;;  %7531 = vmatprep.mubr.bf16.mxu0 %v10993_v9 }
0x3e11   :  { %7501 = vmatprep.subr.bf16.mxu0 %v12066_v2 }
0x3e14   :  { %7502 = vmatpush1.bf16.msra.mxu0 %v12072_v5 }
0x3e15   :  { %7573 = vmatprep.subr.bf16.mxu0 %v12078_v6 }
0x3ee2   :  { %v7459_v4 = vpop.f32.mrb[100].mxu0 }
0x3ee3   :  { %v7460_v41 = vadd.f32 %v7459_v4, %v11576_v46  ;;  %v7461_v23 = vpop.f32.mrb[101].mxu0 }
0x3ee4   :  { %v7462_v44 = vadd.f32 %v7461_v23, %v11579_v36  ;;  %v7463_v28 = vpop.f32.mrb[102].mxu0 }
0x3ee5   :  { %v7464_v25 = vpop.f32.mrb[103].mxu0  ;;  %7467 = vrot.lane.b32.xlu1 %v7460_v41, %s10994_s23 }
0x3ee6   :  { %7478 = vrot.lane.b32.xlu0 %v7462_v44, %s10995_s24 }
0x3f57   :  { %v7468_v33 = vpop.permute.xlu1 %7467 }
0x3f58   :  { %v7470_v17 = vadd.f32 %v7468_v33, %v7460_v41  ;;  %v7479_v43 = vpop.permute.xlu0 %7478 }
0x3f5a   :  { %v7471_v42 = vsub.f32 0.0, %v7470_v17 }
0x3f5c   :  { %v7472_v56 = vmul.f32 1.442695, %v7471_v42 }
0x3f5e   :  { %10859 = vpow2.f32 %v7472_v56 }
0x3f68   :  { %v10860_v13 = vpop.eup %10859 }
0x3f69   :  { %v7474_v16 = vadd.f32 1.0, %v10860_v13 }
0x3f6b   :  { %10861 = vrcp.f32 %v7474_v16 }
0x3f75   :  { %v10862_v19 = vpop.eup %10861 }
0x3f76   :  { %v7481_v51 = vmul.f32 %v10862_v19, %v7479_v43  ;;  %v7484_v50 = vsub.f32 1.0, %v10862_v19  ;;  %v7490_v15 = vmul.f32 %v10862_v19, %v7417_v29 }
0x3f78   :  { %v7482_v52 = vadd.f32 %v7481_v51, %v7462_v44 }
0x3f7a   :  { %10863 = vtanh.f32 %v7482_v52 }
0x3f84   :  { %v10864_v54 = vpop.eup %10863 }
0x3f85   :  { %7486 = vrot.lane.b32.xlu1 %v10864_v54, %s10996_s1 }
0x3ff7   :  { %v7487_v8 = vpop.permute.xlu1 %7486 }
0x3ff8   :  { %v7489_v49 = vmul.f32 %v7487_v8, %v7484_v50 }
0x3ffa   :  { %v7491_v39 = vadd.f32 %v7490_v15, %v7489_v49 }
0x3ffc   :  { %v7492_v63 = vpack.c.bf16 %v7491_v39, %v7491_v39 }
0x3ffe   :  { %7494 = vrot.lane.b32.xlu0 %v7492_v63, %s10995_s24 }
0x4070   :  { %v7495_v7 = vpop.permute.xlu0 %7494 }
0x4071   :  { %9258 = vmatmul.mubr.msk.bf16.vlgmr.msra.gmra.mrb[104].mxu0 %vm1655_vm8, %v7495_v7 }
0x4072   :  { %7574 = vmatpush1.bf16.msra.mxu0 %v12089_v53  ;;  %7605 = vmatprep.mubr.bf16.mxu0 %v10993_v9 }
0x4073   :  { %7575 = vmatprep.subr.bf16.mxu0 %v12096_v59 }
0x4076   :  { %7576 = vmatpush1.bf16.msra.mxu0 %v12102_v20 }
0x4077   :  { %7721 = vmatprep.subr.bf16.mxu0 %v12078_v6 }
0x4144   :  { %v7533_v10 = vpop.f32.mrb[104].mxu0 }
0x4145   :  { %v7534_v26 = vadd.f32 %v7533_v10, %v11551_v34  ;;  %v7535_v12 = vpop.f32.mrb[105].mxu0 }
0x4146   :  { %v7536_v21 = vadd.f32 %v7535_v12, %v11554_v35  ;;  %v7537_v22 = vpop.f32.mrb[106].mxu0 }
0x4147   :  { %v7538_v60 = vpop.f32.mrb[107].mxu0  ;;  %7541 = vrot.lane.b32.xlu1 %v7534_v26, %s10994_s23 }
0x4148   :  { %7552 = vrot.lane.b32.xlu0 %v7536_v21, %s10995_s24 }
0x41b9   :  { %v7542_v62 = vpop.permute.xlu1 %7541 }
0x41ba   :  { %v7544_v24 = vadd.f32 %v7542_v62, %v7534_v26  ;;  %v7553_v40 = vpop.permute.xlu0 %7552 }
0x41bc   :  { %v7545_v31 = vsub.f32 0.0, %v7544_v24 }
0x41be   :  { %v7546_v11 = vmul.f32 1.442695, %v7545_v31 }
0x41c0   :  { %10865 = vpow2.f32 %v7546_v11 }
0x41ca   :  { %v10866_v61 = vpop.eup %10865 }
0x41cb   :  { %v7548_v27 = vadd.f32 1.0, %v10866_v61 }
0x41cd   :  { %10867 = vrcp.f32 %v7548_v27 }
0x41d7   :  { %v10868_v55 = vpop.eup %10867 }
0x41d8   :  { %v7555_v57 = vmul.f32 %v10868_v55, %v7553_v40  ;;  %v7558_v30 = vsub.f32 1.0, %v10868_v55  ;;  %v7564_v47 = vmul.f32 %v10868_v55, %v7491_v39 }
0x41da   :  { %v7556_v45 = vadd.f32 %v7555_v57, %v7536_v21 }
0x41dc   :  { %10869 = vtanh.f32 %v7556_v45 }
0x41e6   :  { %v10870_v58 = vpop.eup %10869 }
0x41e7   :  { %7560 = vrot.lane.b32.xlu1 %v10870_v58, %s10996_s1 }
0x4259   :  { %v7561_v37 = vpop.permute.xlu1 %7560 }
0x425a   :  { %v7563_v29 = vmul.f32 %v7561_v37, %v7558_v30 }
0x425c   :  { %v7565_v38 = vadd.f32 %v7564_v47, %v7563_v29 }
0x425e   :  { %v7566_v48 = vpack.c.bf16 %v7565_v38, %v7565_v38 }
0x4260   :  { %7568 = vrot.lane.b32.xlu0 %v7566_v48, %s10995_s24 }
0x42d2   :  { %v7569_v4 = vpop.permute.xlu0 %7568 }
0x42d3   :  { %9259 = vmatmul.mubr.msk.bf16.vlgmr.msra.gmra.mrb[108].mxu0 %vm1655_vm8, %v7569_v4 }
0x42d4   :  { %7722 = vmatpush1.bf16.msra.mxu0 %v12089_v53  ;;  %7753 = vmatprep.mubr.bf16.mxu0 %v10993_v9 }
0x42d5   :  { %7723 = vmatprep.subr.bf16.mxu0 %v12096_v59 }
0x42d8   :  { %7724 = vmatpush1.bf16.msra.mxu0 %v12102_v20 }
0x42d9   :  { %7869 = vmatprep.subr.bf16.mxu0 %v12078_v6 }
0x43a6   :  { %v7607_v41 = vpop.f32.mrb[108].mxu0 }
0x43a7   :  { %v7608_v23 = vadd.f32 %v7607_v41, %v11576_v46  ;;  %v7609_v44 = vpop.f32.mrb[109].mxu0 }
0x43a8   :  { %v7610_v28 = vadd.f32 %v7609_v44, %v11579_v36  ;;  %v7611_v25 = vpop.f32.mrb[110].mxu0 }
0x43a9   :  { %v7612_v33 = vpop.f32.mrb[111].mxu0  ;;  %7615 = vrot.lane.b32.xlu1 %v7608_v23, %s10994_s23 }
0x43aa   :  { %7626 = vrot.lane.b32.xlu0 %v7610_v28, %s10995_s24 }
0x441b   :  { %v7616_v17 = vpop.permute.xlu1 %7615 }
0x441c   :  { %v7618_v42 = vadd.f32 %v7616_v17, %v7608_v23  ;;  %v7627_v51 = vpop.permute.xlu0 %7626 }
0x441e   :  { %v7619_v56 = vsub.f32 0.0, %v7618_v42 }
0x4420   :  { %v7620_v13 = vmul.f32 1.442695, %v7619_v56 }
0x4422   :  { %10871 = vpow2.f32 %v7620_v13 }
0x442c   :  { %v10872_v16 = vpop.eup %10871 }
0x442d   :  { %v7622_v19 = vadd.f32 1.0, %v10872_v16 }
0x442f   :  { %10873 = vrcp.f32 %v7622_v19 }
0x4439   :  { %v10874_v43 = vpop.eup %10873 }
0x443a   :  { %v7629_v52 = vmul.f32 %v10874_v43, %v7627_v51  ;;  %v7632_v8 = vsub.f32 1.0, %v10874_v43  ;;  %v7638_v49 = vmul.f32 %v10874_v43, %v7565_v38 }
0x443c   :  { %v7630_v54 = vadd.f32 %v7629_v52, %v7610_v28 }
0x443e   :  { %10875 = vtanh.f32 %v7630_v54 }
0x4448   :  { %v10876_v50 = vpop.eup %10875 }
0x4449   :  { %7634 = vrot.lane.b32.xlu1 %v10876_v50, %s10996_s1 }
0x44bb   :  { %v7635_v15 = vpop.permute.xlu1 %7634 }
0x44bc   :  { %v7637_v39 = vmul.f32 %v7635_v15, %v7632_v8 }
0x44be   :  { %v7639_v63 = vadd.f32 %v7638_v49, %v7637_v39 }
0x44c0   :  { %v7640_v7 = vpack.c.bf16 %v7639_v63, %v7639_v63 }
0x44c2   :  { %7642 = vrot.lane.b32.xlu0 %v7640_v7, %s10995_s24 }
0x4534   :  { %v7643_v10 = vpop.permute.xlu0 %7642 }
0x4535   :  { %9260 = vmatmul.mubr.msk.bf16.vlgmr.msra.gmra.mrb[64].mxu1 %vm1655_vm8, %v7643_v10 }
0x4536   :  { %7796 = vmatpush1.bf16.msra.mxu1 %v12059_v1  ;;  %7827 = vmatprep.mubr.bf16.mxu1 %v10993_v9 }
0x4537   :  { %7797 = vmatprep.subr.bf16.mxu1 %v12066_v2 }
0x453a   :  { %7798 = vmatpush1.bf16.msra.mxu1 %v12072_v5 }
0x453b   :  { %7943 = vmatprep.subr.bf16.mxu1 %v12052_v32 }
0x4608   :  { %v7681_v26 = vpop.f32.mrb[64].mxu1 }
0x4609   :  { %v7682_v12 = vadd.f32 %v7681_v26, %v11551_v34  ;;  %v7683_v21 = vpop.f32.mrb[65].mxu1 }
0x460a   :  { %v7684_v22 = vadd.f32 %v7683_v21, %v11554_v35  ;;  %v7685_v60 = vpop.f32.mrb[66].mxu1 }
0x460b   :  { %v7686_v62 = vpop.f32.mrb[67].mxu1  ;;  %7689 = vrot.lane.b32.xlu1 %v7682_v12, %s10994_s23 }
0x460c   :  { %7700 = vrot.lane.b32.xlu0 %v7684_v22, %s10995_s24 }
0x467d   :  { %v7690_v24 = vpop.permute.xlu1 %7689 }
0x467e   :  { %v7692_v31 = vadd.f32 %v7690_v24, %v7682_v12  ;;  %v7701_v57 = vpop.permute.xlu0 %7700 }
0x4680   :  { %v7693_v11 = vsub.f32 0.0, %v7692_v31 }
0x4682   :  { %v7694_v61 = vmul.f32 1.442695, %v7693_v11 }
0x4684   :  { %10877 = vpow2.f32 %v7694_v61 }
0x468e   :  { %v10878_v27 = vpop.eup %10877 }
0x468f   :  { %v7696_v55 = vadd.f32 1.0, %v10878_v27 }
0x4691   :  { %10879 = vrcp.f32 %v7696_v55 }
0x469b   :  { %v10880_v40 = vpop.eup %10879 }
0x469c   :  { %v7703_v45 = vmul.f32 %v10880_v40, %v7701_v57  ;;  %v7706_v37 = vsub.f32 1.0, %v10880_v40  ;;  %v7712_v29 = vmul.f32 %v10880_v40, %v7639_v63 }
0x469e   :  { %v7704_v58 = vadd.f32 %v7703_v45, %v7684_v22 }
0x46a0   :  { %10881 = vtanh.f32 %v7704_v58 }
0x46aa   :  { %v10882_v30 = vpop.eup %10881 }
0x46ab   :  { %7708 = vrot.lane.b32.xlu1 %v10882_v30, %s10996_s1 }
0x471d   :  { %v7709_v47 = vpop.permute.xlu1 %7708 }
0x471e   :  { %v7711_v38 = vmul.f32 %v7709_v47, %v7706_v37 }
0x4720   :  { %v7713_v48 = vadd.f32 %v7712_v29, %v7711_v38 }
0x4722   :  { %v7714_v4 = vpack.c.bf16 %v7713_v48, %v7713_v48 }
0x4724   :  { %7716 = vrot.lane.b32.xlu0 %v7714_v4, %s10995_s24 }
0x4796   :  { %v7717_v41 = vpop.permute.xlu0 %7716 }
0x4797   :  { %9261 = vmatmul.mubr.msk.bf16.vlgmr.msra.gmra.mrb[112].mxu0 %vm1655_vm8, %v7717_v41 }
0x4798   :  { %7870 = vmatpush1.bf16.msra.mxu0 %v12089_v53  ;;  %7901 = vmatprep.mubr.bf16.mxu0 %v10993_v9 }
0x4799   :  { %7871 = vmatprep.subr.bf16.mxu0 %v12096_v59 }
0x479c   :  { %7872 = vmatpush1.bf16.msra.mxu0 %v12102_v20 }
0x479d   :  { %8017 = vmatprep.subr.bf16.mxu0 %v12078_v6 }
0x486a   :  { %v7755_v23 = vpop.f32.mrb[112].mxu0 }
0x486b   :  { %v7756_v44 = vadd.f32 %v7755_v23, %v11576_v46  ;;  %v7757_v28 = vpop.f32.mrb[113].mxu0 }
0x486c   :  { %v7758_v25 = vadd.f32 %v7757_v28, %v11579_v36  ;;  %v7759_v33 = vpop.f32.mrb[114].mxu0 }
0x486d   :  { %v7760_v17 = vpop.f32.mrb[115].mxu0  ;;  %7763 = vrot.lane.b32.xlu1 %v7756_v44, %s10994_s23 }
0x486e   :  { %7774 = vrot.lane.b32.xlu0 %v7758_v25, %s10995_s24 }
0x48df   :  { %v7764_v42 = vpop.permute.xlu1 %7763 }
0x48e0   :  { %v7766_v56 = vadd.f32 %v7764_v42, %v7756_v44  ;;  %v7775_v52 = vpop.permute.xlu0 %7774 }
0x48e2   :  { %v7767_v13 = vsub.f32 0.0, %v7766_v56 }
0x48e4   :  { %v7768_v16 = vmul.f32 1.442695, %v7767_v13 }
0x48e6   :  { %10883 = vpow2.f32 %v7768_v16 }
0x48f0   :  { %v10884_v19 = vpop.eup %10883 }
0x48f1   :  { %v7770_v43 = vadd.f32 1.0, %v10884_v19 }
0x48f3   :  { %10885 = vrcp.f32 %v7770_v43 }
0x48fd   :  { %v10886_v51 = vpop.eup %10885 }
0x48fe   :  { %v7777_v54 = vmul.f32 %v10886_v51, %v7775_v52  ;;  %v7780_v15 = vsub.f32 1.0, %v10886_v51  ;;  %v7786_v39 = vmul.f32 %v10886_v51, %v7713_v48 }
0x4900   :  { %v7778_v50 = vadd.f32 %v7777_v54, %v7758_v25 }
0x4902   :  { %10887 = vtanh.f32 %v7778_v50 }
0x490c   :  { %v10888_v8 = vpop.eup %10887 }
0x490d   :  { %7782 = vrot.lane.b32.xlu1 %v10888_v8, %s10996_s1 }
0x497f   :  { %v7783_v49 = vpop.permute.xlu1 %7782 }
0x4980   :  { %v7785_v63 = vmul.f32 %v7783_v49, %v7780_v15 }
0x4982   :  { %v7787_v7 = vadd.f32 %v7786_v39, %v7785_v63 }
0x4984   :  { %v7788_v10 = vpack.c.bf16 %v7787_v7, %v7787_v7 }
0x4986   :  { %7790 = vrot.lane.b32.xlu0 %v7788_v10, %s10995_s24 }
0x49f8   :  { %v7791_v26 = vpop.permute.xlu0 %7790 }
0x49f9   :  { %9262 = vmatmul.mubr.msk.bf16.vlgmr.msra.gmra.mrb[68].mxu1 %vm1655_vm8, %v7791_v26 }
0x49fa   :  { %7944 = vmatpush1.bf16.msra.mxu1 %v12059_v1  ;;  %7975 = vmatprep.mubr.bf16.mxu1 %v10993_v9 }
0x49fb   :  { %7945 = vmatprep.subr.bf16.mxu1 %v12066_v2 }
0x49fe   :  { %7946 = vmatpush1.bf16.msra.mxu1 %v12072_v5 }
0x49ff   :  { %8091 = vmatprep.subr.bf16.mxu1 %v12052_v32 }
0x4acc   :  { %v7829_v12 = vpop.f32.mrb[68].mxu1 }
0x4acd   :  { %v7830_v21 = vadd.f32 %v7829_v12, %v11551_v34  ;;  %v7831_v22 = vpop.f32.mrb[69].mxu1 }
0x4ace   :  { %v7832_v60 = vadd.f32 %v7831_v22, %v11554_v35  ;;  %v7833_v62 = vpop.f32.mrb[70].mxu1 }
0x4acf   :  { %v7834_v24 = vpop.f32.mrb[71].mxu1  ;;  %7837 = vrot.lane.b32.xlu1 %v7830_v21, %s10994_s23 }
0x4ad0   :  { %7848 = vrot.lane.b32.xlu0 %v7832_v60, %s10995_s24 }
0x4b41   :  { %v7838_v31 = vpop.permute.xlu1 %7837 }
0x4b42   :  { %v7840_v11 = vadd.f32 %v7838_v31, %v7830_v21  ;;  %v7849_v45 = vpop.permute.xlu0 %7848 }
0x4b44   :  { %v7841_v61 = vsub.f32 0.0, %v7840_v11 }
0x4b46   :  { %v7842_v27 = vmul.f32 1.442695, %v7841_v61 }
0x4b48   :  { %10889 = vpow2.f32 %v7842_v27 }
0x4b52   :  { %v10890_v55 = vpop.eup %10889 }
0x4b53   :  { %v7844_v40 = vadd.f32 1.0, %v10890_v55 }
0x4b55   :  { %10891 = vrcp.f32 %v7844_v40 }
0x4b5f   :  { %v10892_v57 = vpop.eup %10891 }
0x4b60   :  { %v7851_v58 = vmul.f32 %v10892_v57, %v7849_v45  ;;  %v7854_v47 = vsub.f32 1.0, %v10892_v57  ;;  %v7860_v38 = vmul.f32 %v10892_v57, %v7787_v7 }
0x4b62   :  { %v7852_v30 = vadd.f32 %v7851_v58, %v7832_v60 }
0x4b64   :  { %10893 = vtanh.f32 %v7852_v30 }
0x4b6e   :  { %v10894_v37 = vpop.eup %10893 }
0x4b6f   :  { %7856 = vrot.lane.b32.xlu1 %v10894_v37, %s10996_s1 }
0x4be1   :  { %v7857_v29 = vpop.permute.xlu1 %7856 }
0x4be2   :  { %v7859_v48 = vmul.f32 %v7857_v29, %v7854_v47 }
0x4be4   :  { %v7861_v4 = vadd.f32 %v7860_v38, %v7859_v48 }
0x4be6   :  { %v7862_v41 = vpack.c.bf16 %v7861_v4, %v7861_v4 }
0x4be8   :  { %7864 = vrot.lane.b32.xlu0 %v7862_v41, %s10995_s24 }
0x4c5a   :  { %v7865_v23 = vpop.permute.xlu0 %7864 }
0x4c5b   :  { %9263 = vmatmul.mubr.msk.bf16.vlgmr.msra.gmra.mrb[116].mxu0 %vm1655_vm8, %v7865_v23 }
0x4c5c   :  { %8018 = vmatpush1.bf16.msra.mxu0 %v12089_v53  ;;  %8049 = vmatprep.mubr.bf16.mxu0 %v10993_v9 }
0x4c5d   :  { %8019 = vmatprep.subr.bf16.mxu0 %v12096_v59 }
0x4c60   :  { %8020 = vmatpush1.bf16.msra.mxu0 %v12102_v20 }
0x4c61   :  { %8165 = vmatprep.subr.bf16.mxu0 %v12078_v6 }
0x4d2e   :  { %v7903_v44 = vpop.f32.mrb[116].mxu0 }
0x4d2f   :  { %v7904_v28 = vadd.f32 %v7903_v44, %v11576_v46  ;;  %v7905_v25 = vpop.f32.mrb[117].mxu0 }
0x4d30   :  { %v7906_v33 = vadd.f32 %v7905_v25, %v11579_v36  ;;  %v7907_v17 = vpop.f32.mrb[118].mxu0 }
0x4d31   :  { %v7908_v42 = vpop.f32.mrb[119].mxu0  ;;  %7911 = vrot.lane.b32.xlu1 %v7904_v28, %s10994_s23 }
0x4d32   :  { %7922 = vrot.lane.b32.xlu0 %v7906_v33, %s10995_s24 }
0x4da3   :  { %v7912_v56 = vpop.permute.xlu1 %7911 }
0x4da4   :  { %v7914_v13 = vadd.f32 %v7912_v56, %v7904_v28  ;;  %v7923_v54 = vpop.permute.xlu0 %7922 }
0x4da6   :  { %v7915_v16 = vsub.f32 0.0, %v7914_v13 }
0x4da8   :  { %v7916_v19 = vmul.f32 1.442695, %v7915_v16 }
0x4daa   :  { %10895 = vpow2.f32 %v7916_v19 }
0x4db4   :  { %v10896_v43 = vpop.eup %10895 }
0x4db5   :  { %v7918_v51 = vadd.f32 1.0, %v10896_v43 }
0x4db7   :  { %10897 = vrcp.f32 %v7918_v51 }
0x4dc1   :  { %v10898_v52 = vpop.eup %10897 }
0x4dc2   :  { %v7925_v50 = vmul.f32 %v10898_v52, %v7923_v54  ;;  %v7928_v49 = vsub.f32 1.0, %v10898_v52  ;;  %v7934_v63 = vmul.f32 %v10898_v52, %v7861_v4 }
0x4dc4   :  { %v7926_v8 = vadd.f32 %v7925_v50, %v7906_v33 }
0x4dc6   :  { %10899 = vtanh.f32 %v7926_v8 }
0x4dd0   :  { %v10900_v15 = vpop.eup %10899 }
0x4dd1   :  { %7930 = vrot.lane.b32.xlu1 %v10900_v15, %s10996_s1 }
0x4e43   :  { %v7931_v39 = vpop.permute.xlu1 %7930 }
0x4e44   :  { %v7933_v7 = vmul.f32 %v7931_v39, %v7928_v49  ;;  %v12289_v49 = vld [vmem:[%s12476_s2] ss:$8 sps:$4 sm:$0xff]   ;;  %v12296_v39 = vld [vmem:[%s12476_s2 + $0x14] ss:$8 sps:$4 sm:$0xff]  }
0x4e46   :  { %v7935_v10 = vadd.f32 %v7934_v63, %v7933_v7  ;;  %v12302_v63 = vld [vmem:[%s12476_s2 + $0x10] ss:$8 sps:$4 sm:$0xff]   ;;  %v12308_v7 = vld [vmem:[%s12476_s2 + $0x4] ss:$8 sps:$4 sm:$0xff]  }
0x4e48   :  { %v7936_v26 = vpack.c.bf16 %v7935_v10, %v7935_v10 }
0x4e4a   :  { %7938 = vrot.lane.b32.xlu0 %v7936_v26, %s10995_s24 }
0x4ebc   :  { %v7939_v12 = vpop.permute.xlu0 %7938 }
0x4ebd   :  { %9264 = vmatmul.mubr.msk.bf16.vlgmr.msra.gmra.mrb[72].mxu1 %vm1655_vm8, %v7939_v12 }
0x4ebe   :  { %8092 = vmatpush1.bf16.msra.mxu1 %v12059_v1  ;;  %8123 = vmatprep.mubr.bf16.mxu1 %v10993_v9 }
0x4ebf   :  { %8093 = vmatprep.subr.bf16.mxu1 %v12066_v2 }
0x4ec2   :  { %8094 = vmatpush1.bf16.msra.mxu1 %v12072_v5 }
0x4ec3   :  { %8239 = vmatprep.subr.bf16.mxu1 %v12052_v32 }
0x4f90   :  { %v7977_v21 = vpop.f32.mrb[72].mxu1 }
0x4f91   :  { %v7978_v22 = vadd.f32 %v7977_v21, %v11551_v34  ;;  %v7979_v60 = vpop.f32.mrb[73].mxu1 }
0x4f92   :  { %v7980_v62 = vadd.f32 %v7979_v60, %v11554_v35  ;;  %v7981_v24 = vpop.f32.mrb[74].mxu1 }
0x4f93   :  { %v7982_v31 = vpop.f32.mrb[75].mxu1  ;;  %7985 = vrot.lane.b32.xlu1 %v7978_v22, %s10994_s23 }
0x4f94   :  { %7996 = vrot.lane.b32.xlu0 %v7980_v62, %s10995_s24 }
0x5005   :  { %v7986_v1 = vpop.permute.xlu1 %7985 }
0x5006   :  { %v7988_v11 = vadd.f32 %v7986_v1, %v7978_v22  ;;  %v7997_v55 = vpop.permute.xlu0 %7996 }
0x5008   :  { %v7989_v61 = vsub.f32 0.0, %v7988_v11 }
0x500a   :  { %v7990_v2 = vmul.f32 1.442695, %v7989_v61 }
0x500c   :  { %10901 = vpow2.f32 %v7990_v2 }
0x5016   :  { %v10902_v5 = vpop.eup %10901 }
0x5017   :  { %v7992_v27 = vadd.f32 1.0, %v10902_v5 }
0x5019   :  { %10903 = vrcp.f32 %v7992_v27 }
0x5023   :  { %v10904_v32 = vpop.eup %10903 }
0x5024   :  { %v7999_v40 = vmul.f32 %v10904_v32, %v7997_v55  ;;  %v8002_v58 = vsub.f32 1.0, %v10904_v32  ;;  %v8008_v37 = vmul.f32 %v10904_v32, %v7935_v10 }
0x5026   :  { %v8000_v57 = vadd.f32 %v7999_v40, %v7980_v62 }
0x5028   :  { %10905 = vtanh.f32 %v8000_v57 }
0x5032   :  { %v10906_v45 = vpop.eup %10905 }
0x5033   :  { %8004 = vrot.lane.b32.xlu1 %v10906_v45, %s10996_s1 }
0x50a5   :  { %v8005_v30 = vpop.permute.xlu1 %8004 }
0x50a6   :  { %v8007_v47 = vmul.f32 %v8005_v30, %v8002_v58 }
0x50a8   :  { %v8009_v29 = vadd.f32 %v8008_v37, %v8007_v47 }
0x50aa   :  { %v8010_v38 = vpack.c.bf16 %v8009_v29, %v8009_v29 }
0x50ac   :  { %8012 = vrot.lane.b32.xlu0 %v8010_v38, %s10995_s24  ;;  %v12328_v38 = vld [vmem:[%s12476_s2 + $0x44] ss:$8 sps:$4 sm:$0xff]  }
0x511e   :  { %v8013_v48 = vpop.permute.xlu0 %8012 }
0x511f   :  { %9265 = vmatmul.mubr.msk.bf16.vlgmr.msra.gmra.mrb[120].mxu0 %vm1655_vm8, %v8013_v48  ;;  %v12334_v48 = vld [vmem:[%s12476_s2 + $0x40] ss:$8 sps:$4 sm:$0xff]  }
0x5120   :  { %8166 = vmatpush1.bf16.msra.mxu0 %v12089_v53  ;;  %8197 = vmatprep.mubr.bf16.mxu0 %v10993_v9 }
0x5121   :  { %8167 = vmatprep.subr.bf16.mxu0 %v12096_v59 }
0x5124   :  { %8168 = vmatpush1.bf16.msra.mxu0 %v12102_v20 }
0x5125   :  { %8313 = vmatprep.subr.bf16.mxu0 %v12078_v6 }
0x51f2   :  { %v8051_v4 = vpop.f32.mrb[120].mxu0 }
0x51f3   :  { %v8052_v41 = vadd.f32 %v8051_v4, %v11576_v46  ;;  %v8053_v23 = vpop.f32.mrb[121].mxu0  ;;  %v12340_v4 = vld [vmem:[%s12476_s2 + $0x34] ss:$8 sps:$4 sm:$0xff]  }
0x51f4   :  { %v8054_v44 = vadd.f32 %v8053_v23, %v11579_v36  ;;  %v8055_v28 = vpop.f32.mrb[122].mxu0 }
0x51f5   :  { %v8056_v25 = vpop.f32.mrb[123].mxu0  ;;  %8059 = vrot.lane.b32.xlu1 %v8052_v41, %s10994_s23 }
0x51f6   :  { %8070 = vrot.lane.b32.xlu0 %v8054_v44, %s10995_s24 }
0x5267   :  { %v8060_v53 = vpop.permute.xlu1 %8059 }
0x5268   :  { %v8062_v33 = vadd.f32 %v8060_v53, %v8052_v41  ;;  %v8071_v56 = vpop.permute.xlu0 %8070 }
0x526a   :  { %v8063_v17 = vsub.f32 0.0, %v8062_v33 }
0x526c   :  { %v8064_v59 = vmul.f32 1.442695, %v8063_v17 }
0x526e   :  { %10907 = vpow2.f32 %v8064_v59 }
0x5278   :  { %v10908_v20 = vpop.eup %10907 }
0x5279   :  { %v8066_v42 = vadd.f32 1.0, %v10908_v20 }
0x527b   :  { %10909 = vrcp.f32 %v8066_v42 }
0x5285   :  { %v10910_v6 = vpop.eup %10909 }
0x5286   :  { %v8073_v13 = vmul.f32 %v10910_v6, %v8071_v56  ;;  %v8076_v43 = vsub.f32 1.0, %v10910_v6  ;;  %v8082_v52 = vmul.f32 %v10910_v6, %v8009_v29  ;;  %v12321_v29 = vld [vmem:[%s12476_s2 + $0x30] ss:$8 sps:$4 sm:$0xff]  }
0x5288   :  { %v8074_v16 = vadd.f32 %v8073_v13, %v8054_v44 }
0x528a   :  { %10911 = vtanh.f32 %v8074_v16 }
0x5294   :  { %v10912_v19 = vpop.eup %10911 }
0x5295   :  { %8078 = vrot.lane.b32.xlu1 %v10912_v19, %s10996_s1 }
0x5307   :  { %v8079_v51 = vpop.permute.xlu1 %8078 }
0x5308   :  { %v8081_v54 = vmul.f32 %v8079_v51, %v8076_v43 }
0x530a   :  { %v8083_v50 = vadd.f32 %v8082_v52, %v8081_v54 }
0x530c   :  { %v8084_v8 = vpack.c.bf16 %v8083_v50, %v8083_v50 }
0x530e   :  { %8086 = vrot.lane.b32.xlu0 %v8084_v8, %s10995_s24 }
0x5380   :  { %v8087_v15 = vpop.permute.xlu0 %8086 }
0x5381   :  { %9266 = vmatmul.mubr.msk.bf16.vlgmr.msra.gmra.mrb[76].mxu1 %vm1655_vm8, %v8087_v15 }
0x5382   :  { %8240 = vmatpush1.bf16.msra.mxu1 %v12289_v49  ;;  %8271 = vmatprep.mubr.bf16.mxu1 %v10993_v9 }
0x5383   :  { %8241 = vmatprep.subr.bf16.mxu1 %v12296_v39 }
0x5386   :  { %8242 = vmatpush1.bf16.msra.mxu1 %v12302_v63 }
0x5387   :  { %8387 = vmatprep.subr.bf16.mxu1 %v12308_v7 }
0x5454   :  { %v8125_v10 = vpop.f32.mrb[76].mxu1 }
0x5455   :  { %v8126_v26 = vadd.f32 %v8125_v10, %v11551_v34  ;;  %v8127_v12 = vpop.f32.mrb[77].mxu1 }
0x5456   :  { %v8128_v21 = vadd.f32 %v8127_v12, %v11554_v35  ;;  %v8129_v22 = vpop.f32.mrb[78].mxu1 }
0x5457   :  { %v8130_v60 = vpop.f32.mrb[79].mxu1  ;;  %8133 = vrot.lane.b32.xlu1 %v8126_v26, %s10994_s23 }
0x5458   :  { %8144 = vrot.lane.b32.xlu0 %v8128_v21, %s10995_s24 }
0x54c9   :  { %v8134_v62 = vpop.permute.xlu1 %8133 }
0x54ca   :  { %v8136_v24 = vadd.f32 %v8134_v62, %v8126_v26  ;;  %v8145_v5 = vpop.permute.xlu0 %8144 }
0x54cc   :  { %v8137_v31 = vsub.f32 0.0, %v8136_v24 }
0x54ce   :  { %v8138_v1 = vmul.f32 1.442695, %v8137_v31 }
0x54d0   :  { %10913 = vpow2.f32 %v8138_v1 }
0x54da   :  { %v10914_v11 = vpop.eup %10913 }
0x54db   :  { %v8140_v61 = vadd.f32 1.0, %v10914_v11 }
0x54dd   :  { %10915 = vrcp.f32 %v8140_v61 }
0x54e7   :  { %v10916_v2 = vpop.eup %10915 }
0x54e8   :  { %v8147_v27 = vmul.f32 %v10916_v2, %v8145_v5  ;;  %v8150_v40 = vsub.f32 1.0, %v10916_v2  ;;  %v8156_v45 = vmul.f32 %v10916_v2, %v8083_v50 }
0x54ea   :  { %v8148_v32 = vadd.f32 %v8147_v27, %v8128_v21 }
0x54ec   :  { %10917 = vtanh.f32 %v8148_v32 }
0x54f6   :  { %v10918_v55 = vpop.eup %10917 }
0x54f7   :  { %8152 = vrot.lane.b32.xlu1 %v10918_v55, %s10996_s1 }
0x5569   :  { %v8153_v57 = vpop.permute.xlu1 %8152 }
0x556a   :  { %v8155_v58 = vmul.f32 %v8153_v57, %v8150_v40 }
0x556c   :  { %v8157_v30 = vadd.f32 %v8156_v45, %v8155_v58 }
0x556e   :  { %v8158_v37 = vpack.c.bf16 %v8157_v30, %v8157_v30 }
0x5570   :  { %8160 = vrot.lane.b32.xlu0 %v8158_v37, %s10995_s24 }
0x55e2   :  { %v8161_v47 = vpop.permute.xlu0 %8160 }
0x55e3   :  { %9267 = vmatmul.mubr.msk.bf16.vlgmr.msra.gmra.mrb[124].mxu0 %vm1655_vm8, %v8161_v47 }
0x55e4   :  { %8314 = vmatpush1.bf16.msra.mxu0 %v12321_v29  ;;  %8345 = vmatprep.mubr.bf16.mxu0 %v10993_v9 }
0x55e5   :  { %8315 = vmatprep.subr.bf16.mxu0 %v12328_v38 }
0x55e8   :  { %8316 = vmatpush1.bf16.msra.mxu0 %v12334_v48 }
0x55e9   :  { %8461 = vmatprep.subr.bf16.mxu0 %v12340_v4 }
0x56b6   :  { %v8199_v41 = vpop.f32.mrb[124].mxu0 }
0x56b7   :  { %v8200_v23 = vadd.f32 %v8199_v41, %v11576_v46  ;;  %v8201_v44 = vpop.f32.mrb[125].mxu0 }
0x56b8   :  { %v8202_v28 = vadd.f32 %v8201_v44, %v11579_v36  ;;  %v8203_v25 = vpop.f32.mrb[126].mxu0 }
0x56b9   :  { %v8204_v53 = vpop.f32.mrb[127].mxu0  ;;  %8207 = vrot.lane.b32.xlu1 %v8200_v23, %s10994_s23 }
0x56ba   :  { %8218 = vrot.lane.b32.xlu0 %v8202_v28, %s10995_s24 }
0x572b   :  { %v8208_v33 = vpop.permute.xlu1 %8207 }
0x572c   :  { %v8210_v17 = vadd.f32 %v8208_v33, %v8200_v23  ;;  %v8219_v13 = vpop.permute.xlu0 %8218 }
0x572e   :  { %v8211_v59 = vsub.f32 0.0, %v8210_v17 }
0x5730   :  { %v8212_v20 = vmul.f32 1.442695, %v8211_v59 }
0x5732   :  { %10919 = vpow2.f32 %v8212_v20 }
0x573c   :  { %v10920_v42 = vpop.eup %10919 }
0x573d   :  { %v8214_v6 = vadd.f32 1.0, %v10920_v42 }
0x573f   :  { %10921 = vrcp.f32 %v8214_v6 }
0x5749   :  { %v10922_v56 = vpop.eup %10921 }
0x574a   :  { %v8221_v16 = vmul.f32 %v10922_v56, %v8219_v13  ;;  %v8224_v51 = vsub.f32 1.0, %v10922_v56  ;;  %v8230_v54 = vmul.f32 %v10922_v56, %v8157_v30 }
0x574c   :  { %v8222_v19 = vadd.f32 %v8221_v16, %v8202_v28 }
0x574e   :  { %10923 = vtanh.f32 %v8222_v19 }
0x5758   :  { %v10924_v43 = vpop.eup %10923 }
0x5759   :  { %8226 = vrot.lane.b32.xlu1 %v10924_v43, %s10996_s1 }
0x57cb   :  { %v8227_v52 = vpop.permute.xlu1 %8226 }
0x57cc   :  { %v8229_v50 = vmul.f32 %v8227_v52, %v8224_v51 }
0x57ce   :  { %v8231_v8 = vadd.f32 %v8230_v54, %v8229_v50 }
0x57d0   :  { %v8232_v15 = vpack.c.bf16 %v8231_v8, %v8231_v8 }
0x57d2   :  { %8234 = vrot.lane.b32.xlu0 %v8232_v15, %s10995_s24 }
0x5844   :  { %v8235_v10 = vpop.permute.xlu0 %8234 }
0x5845   :  { %9268 = vmatmul.mubr.msk.bf16.vlgmr.msra.gmra.mrb[80].mxu1 %vm1655_vm8, %v8235_v10 }
0x5846   :  { %8388 = vmatpush1.bf16.msra.mxu1 %v12289_v49  ;;  %8419 = vmatprep.mubr.bf16.mxu1 %v10993_v9 }
0x5847   :  { %8389 = vmatprep.subr.bf16.mxu1 %v12296_v39 }
0x584a   :  { %8390 = vmatpush1.bf16.msra.mxu1 %v12302_v63 }
0x584b   :  { %8535 = vmatprep.subr.bf16.mxu1 %v12308_v7 }
0x5918   :  { %v8273_v26 = vpop.f32.mrb[80].mxu1 }
0x5919   :  { %v8274_v12 = vadd.f32 %v8273_v26, %v11551_v34  ;;  %v8275_v21 = vpop.f32.mrb[81].mxu1 }
0x591a   :  { %v8276_v22 = vadd.f32 %v8275_v21, %v11554_v35  ;;  %v8277_v60 = vpop.f32.mrb[82].mxu1 }
0x591b   :  { %v8278_v62 = vpop.f32.mrb[83].mxu1  ;;  %8281 = vrot.lane.b32.xlu1 %v8274_v12, %s10994_s23 }
0x591c   :  { %8292 = vrot.lane.b32.xlu0 %v8276_v22, %s10995_s24 }
0x598d   :  { %v8282_v24 = vpop.permute.xlu1 %8281 }
0x598e   :  { %v8284_v31 = vadd.f32 %v8282_v24, %v8274_v12  ;;  %v8293_v5 = vpop.permute.xlu0 %8292 }
0x5990   :  { %v8285_v1 = vsub.f32 0.0, %v8284_v31 }
0x5992   :  { %v8286_v11 = vmul.f32 1.442695, %v8285_v1 }
0x5994   :  { %10925 = vpow2.f32 %v8286_v11 }
0x599e   :  { %v10926_v61 = vpop.eup %10925 }
0x599f   :  { %v8288_v2 = vadd.f32 1.0, %v10926_v61 }
0x59a1   :  { %10927 = vrcp.f32 %v8288_v2 }
0x59ab   :  { %v10928_v7 = vpop.eup %10927 }
0x59ac   :  { %v8295_v27 = vmul.f32 %v10928_v7, %v8293_v5  ;;  %v8298_v40 = vsub.f32 1.0, %v10928_v7  ;;  %v8304_v45 = vmul.f32 %v10928_v7, %v8231_v8 }
0x59ae   :  { %v8296_v32 = vadd.f32 %v8295_v27, %v8276_v22 }
0x59b0   :  { %10929 = vtanh.f32 %v8296_v32 }
0x59ba   :  { %v10930_v55 = vpop.eup %10929 }
0x59bb   :  { %8300 = vrot.lane.b32.xlu1 %v10930_v55, %s10996_s1 }
0x5a2d   :  { %v8301_v57 = vpop.permute.xlu1 %8300 }
0x5a2e   :  { %v8303_v58 = vmul.f32 %v8301_v57, %v8298_v40 }
0x5a30   :  { %v8305_v30 = vadd.f32 %v8304_v45, %v8303_v58 }
0x5a32   :  { %v8306_v37 = vpack.c.bf16 %v8305_v30, %v8305_v30 }
0x5a34   :  { %8308 = vrot.lane.b32.xlu0 %v8306_v37, %s10995_s24 }
0x5aa6   :  { %v8309_v47 = vpop.permute.xlu0 %8308 }
0x5aa7   :  { %9269 = vmatmul.mubr.msk.bf16.vlgmr.msra.gmra.mrb[128].mxu0 %vm1655_vm8, %v8309_v47 }
0x5aa8   :  { %8462 = vmatpush1.bf16.msra.mxu0 %v12321_v29  ;;  %8493 = vmatprep.mubr.bf16.mxu0 %v10993_v9 }
0x5aa9   :  { %8463 = vmatprep.subr.bf16.mxu0 %v12328_v38 }
0x5aac   :  { %8464 = vmatpush1.bf16.msra.mxu0 %v12334_v48 }
0x5aad   :  { %8609 = vmatprep.subr.bf16.mxu0 %v12340_v4 }
0x5b7a   :  { %v8347_v41 = vpop.f32.mrb[128].mxu0 }
0x5b7b   :  { %v8348_v23 = vadd.f32 %v8347_v41, %v11576_v46  ;;  %v8349_v44 = vpop.f32.mrb[129].mxu0 }
0x5b7c   :  { %v8350_v28 = vadd.f32 %v8349_v44, %v11579_v36  ;;  %v8351_v25 = vpop.f32.mrb[130].mxu0 }
0x5b7d   :  { %v8352_v53 = vpop.f32.mrb[131].mxu0  ;;  %8355 = vrot.lane.b32.xlu1 %v8348_v23, %s10994_s23 }
0x5b7e   :  { %8366 = vrot.lane.b32.xlu0 %v8350_v28, %s10995_s24 }
0x5bef   :  { %v8356_v33 = vpop.permute.xlu1 %8355 }
0x5bf0   :  { %v8358_v17 = vadd.f32 %v8356_v33, %v8348_v23  ;;  %v8367_v56 = vpop.permute.xlu0 %8366 }
0x5bf2   :  { %v8359_v59 = vsub.f32 0.0, %v8358_v17 }
0x5bf4   :  { %v8360_v20 = vmul.f32 1.442695, %v8359_v59 }
0x5bf6   :  { %10931 = vpow2.f32 %v8360_v20 }
0x5c00   :  { %v10932_v42 = vpop.eup %10931 }
0x5c01   :  { %v8362_v6 = vadd.f32 1.0, %v10932_v42 }
0x5c03   :  { %10933 = vrcp.f32 %v8362_v6 }
0x5c0d   :  { %v10934_v4 = vpop.eup %10933 }
0x5c0e   :  { %v8369_v13 = vmul.f32 %v10934_v4, %v8367_v56  ;;  %v8372_v43 = vsub.f32 1.0, %v10934_v4  ;;  %v8378_v52 = vmul.f32 %v10934_v4, %v8305_v30 }
0x5c10   :  { %v8370_v16 = vadd.f32 %v8369_v13, %v8350_v28 }
0x5c12   :  { %10935 = vtanh.f32 %v8370_v16 }
0x5c1c   :  { %v10936_v19 = vpop.eup %10935 }
0x5c1d   :  { %8374 = vrot.lane.b32.xlu1 %v10936_v19, %s10996_s1 }
0x5c8f   :  { %v8375_v51 = vpop.permute.xlu1 %8374 }
0x5c90   :  { %v8377_v54 = vmul.f32 %v8375_v51, %v8372_v43 }
0x5c92   :  { %v8379_v50 = vadd.f32 %v8378_v52, %v8377_v54 }
0x5c94   :  { %v8380_v8 = vpack.c.bf16 %v8379_v50, %v8379_v50 }
0x5c96   :  { %8382 = vrot.lane.b32.xlu0 %v8380_v8, %s10995_s24 }
0x5d08   :  { %v8383_v15 = vpop.permute.xlu0 %8382 }
0x5d09   :  { %9270 = vmatmul.mubr.msk.bf16.vlgmr.msra.gmra.mrb[84].mxu1 %vm1655_vm8, %v8383_v15 }
0x5d0a   :  { %8536 = vmatpush1.bf16.msra.mxu1 %v12289_v49  ;;  %8567 = vmatprep.mubr.bf16.mxu1 %v10993_v9 }
0x5d0b   :  { %8537 = vmatprep.subr.bf16.mxu1 %v12296_v39 }
0x5d0e   :  { %8538 = vmatpush1.bf16.msra.mxu1 %v12302_v63 }
0x5d0f   :  { %10559 = vmatprep.subr.bf16.mxu1 %v10990_v0 }
0x5ddc   :  { %v8421_v10 = vpop.f32.mrb[84].mxu1 }
0x5ddd   :  { %v8422_v26 = vadd.f32 %v8421_v10, %v11551_v34  ;;  %v8423_v12 = vpop.f32.mrb[85].mxu1 }
0x5dde   :  { %v8424_v21 = vadd.f32 %v8423_v12, %v11554_v35  ;;  %v8425_v22 = vpop.f32.mrb[86].mxu1 }
0x5ddf   :  { %v8426_v60 = vpop.f32.mrb[87].mxu1  ;;  %8429 = vrot.lane.b32.xlu1 %v8422_v26, %s10994_s23 }
0x5de0   :  { %8440 = vrot.lane.b32.xlu0 %v8424_v21, %s10995_s24 }
0x5e51   :  { %v8430_v49 = vpop.permute.xlu1 %8429 }
0x5e52   :  { %v8432_v62 = vadd.f32 %v8430_v49, %v8422_v26  ;;  %v8441_v11 = vpop.permute.xlu0 %8440 }
0x5e54   :  { %v8433_v24 = vsub.f32 0.0, %v8432_v62 }
0x5e56   :  { %v8434_v39 = vmul.f32 1.442695, %v8433_v24 }
0x5e58   :  { %10937 = vpow2.f32 %v8434_v39 }
0x5e62   :  { %v10938_v63 = vpop.eup %10937 }
0x5e63   :  { %v8436_v31 = vadd.f32 1.0, %v10938_v63 }
0x5e65   :  { %10939 = vrcp.f32 %v8436_v31 }
0x5e6f   :  { %v10940_v1 = vpop.eup %10939 }
0x5e70   :  { %v8443_v61 = vmul.f32 %v10940_v1, %v8441_v11  ;;  %v8446_v5 = vsub.f32 1.0, %v10940_v1  ;;  %v8452_v32 = vmul.f32 %v10940_v1, %v8379_v50 }
0x5e72   :  { %v8444_v2 = vadd.f32 %v8443_v61, %v8424_v21 }
0x5e74   :  { %10941 = vtanh.f32 %v8444_v2  ;;  %v10989_v2 = vld [vmem:[%s12473_s3 + $0xc8] ss:$0 sm:$0xff] }
0x5e7e   :  { %v10942_v7 = vpop.eup %10941 }
0x5e7f   :  { %8448 = vrot.lane.b32.xlu1 %v10942_v7, %s10996_s1  ;;  %v10595_v7 = vadd.f32 %v10989_v2, %v12146_v14 }
0x5ef1   :  { %v8449_v27 = vpop.permute.xlu1 %8448 }
0x5ef2   :  { %v8451_v55 = vmul.f32 %v8449_v27, %v8446_v5  ;;  %v7187_v5 = vand.u32 2147483647, %v10595_v7 }
0x5ef4   :  { %v8453_v40 = vadd.f32 %v8452_v32, %v8451_v55  ;;  %v7188_v27 = vsub.f32 0.0, %v7187_v5 }
0x5ef6   :  { %v8454_v57 = vpack.c.bf16 %v8453_v40, %v8453_v40  ;;  %v7189_v32 = vmul.f32 1.442695, %v7188_v27 }
0x5ef8   :  { %8456 = vrot.lane.b32.xlu0 %v8454_v57, %s10995_s24 }
0x5f6a   :  { %v8457_v45 = vpop.permute.xlu0 %8456 }
0x5f6b   :  { %9271 = vmatmul.mubr.msk.bf16.vlgmr.msra.gmra.mrb[132].mxu0 %vm1655_vm8, %v8457_v45 }
0x5f6c   :  { %8610 = vmatpush1.bf16.msra.mxu0 %v12321_v29  ;;  %8641 = vmatprep.mubr.bf16.mxu0 %v10993_v9 }
0x5f6d   :  { %8611 = vmatprep.subr.bf16.mxu0 %v12328_v38 }
0x5f70   :  { %8612 = vmatpush1.bf16.msra.mxu0 %v12334_v48 }
0x5f71   :  { %10553 = vmatprep.subr.bf16.mxu0 %v10990_v0 }
0x603e   :  { %v8495_v58 = vpop.f32.mrb[132].mxu0 }
0x603f   :  { %v8496_v30 = vadd.f32 %v8495_v58, %v11576_v46  ;;  %v8497_v37 = vpop.f32.mrb[133].mxu0  ;;  %v7186_v58 = vmax.f32 %v10595_v7, 0.0 }
0x6040   :  { %v8498_v47 = vadd.f32 %v8497_v37, %v11579_v36  ;;  %v8499_v41 = vpop.f32.mrb[134].mxu0 }
0x6041   :  { %v8500_v23 = vpop.f32.mrb[135].mxu0  ;;  %8503 = vrot.lane.b32.xlu1 %v8496_v30, %s10994_s23 }
0x6042   :  { %8514 = vrot.lane.b32.xlu0 %v8498_v47, %s10995_s24 }
0x60b3   :  { %v8504_v29 = vpop.permute.xlu1 %8503 }
0x60b4   :  { %v8506_v44 = vadd.f32 %v8504_v29, %v8496_v30  ;;  %v8515_v33 = vpop.permute.xlu0 %8514 }
0x60b6   :  { %v8507_v28 = vsub.f32 0.0, %v8506_v44 }
0x60b8   :  { %v8508_v38 = vmul.f32 1.442695, %v8507_v28 }
0x60ba   :  { %10943 = vpow2.f32 %v8508_v38 }
0x60c4   :  { %v10944_v48 = vpop.eup %10943 }
0x60c5   :  { %v8510_v25 = vadd.f32 1.0, %v10944_v48 }
0x60c7   :  { %10945 = vrcp.f32 %v8510_v25 }
0x60d1   :  { %v10946_v53 = vpop.eup %10945 }
0x60d2   :  { %v8517_v17 = vmul.f32 %v10946_v53, %v8515_v33  ;;  %v8520_v42 = vsub.f32 1.0, %v10946_v53  ;;  %v8526_v4 = vmul.f32 %v10946_v53, %v8453_v40 }
0x60d4   :  { %v8518_v59 = vadd.f32 %v8517_v17, %v8498_v47 }
0x60d6   :  { %10947 = vtanh.f32 %v8518_v59 }
0x60e0   :  { %v10948_v20 = vpop.eup %10947 }
0x60e1   :  { %8522 = vrot.lane.b32.xlu1 %v10948_v20, %s10996_s1  ;;  %v26_v20 = vld [vmem:[%s12473_s3 + $0xd0] sm:$0xff] }
0x6153   :  { %v8523_v6 = vpop.permute.xlu1 %8522 }
0x6154   :  { %v8525_v56 = vmul.f32 %v8523_v6, %v8520_v42  ;;  %v8692_v42 = vand.u32 4294901760, %v26_v20 }
0x6156   :  { %v8527_v13 = vadd.f32 %v8526_v4, %v8525_v56  ;;  %v12428_v4 = vsub.f32 %v26_v20, %v8692_v42 }
0x6158   :  { %v8528_v16 = vpack.c.bf16 %v8527_v13, %v8527_v13 }
0x615a   :  { %8530 = vrot.lane.b32.xlu0 %v8528_v16, %s10995_s24 }
0x61cc   :  { %v8531_v19 = vpop.permute.xlu0 %8530 }
0x61cd   :  { %9272 = vmatmul.mubr.msk.bf16.vlgmr.msra.gmra.mrb[88].mxu1 %vm1655_vm8, %v8531_v19 }
0x61ce   :  { %10236 = vmatprep.mubr.msk.f32.mxu1 %vm10991_vm1, %v10992_v3 }
0x62a0   :  { %v8569_v43 = vpop.f32.mrb[88].mxu1 }
0x62a1   :  { %v8570_v51 = vadd.f32 %v8569_v43, %v11551_v34  ;;  %v8571_v52 = vpop.f32.mrb[89].mxu1 }
0x62a2   :  { %v8572_v54 = vadd.f32 %v8571_v52, %v11554_v35  ;;  %v8573_v50 = vpop.f32.mrb[90].mxu1 }
0x62a3   :  { %v8574_v8 = vpop.f32.mrb[91].mxu1  ;;  %8577 = vrot.lane.b32.xlu1 %v8570_v51, %s10994_s23 }
0x62a4   :  { %8588 = vrot.lane.b32.xlu0 %v8572_v54, %s10995_s24  ;;  %v28_v8 = vld [vmem:[%s12473_s3 + $0xe0] sm:$0xff] }
0x6315   :  { %v8578_v15 = vpop.permute.xlu1 %8577 }
0x6316   :  { %v8580_v10 = vadd.f32 %v8578_v15, %v8570_v51  ;;  %v8589_v49 = vpop.permute.xlu0 %8588  ;;  %v29_v15 = vld [vmem:[%s12473_s3 + $0xe8] sm:$0xff] }
0x6318   :  { %v8581_v26 = vsub.f32 0.0, %v8580_v10  ;;  %v8698_v10 = vand.u32 4294901760, %v28_v8 }
0x631a   :  { %v8582_v12 = vmul.f32 1.442695, %v8581_v26  ;;  %v8701_v26 = vand.u32 4294901760, %v29_v15 }
0x631c   :  { %10949 = vpow2.f32 %v8582_v12  ;;  %v8786_v12 = vsub.f32 %v28_v8, %v8698_v10 }
0x6326   :  { %v10950_v21 = vpop.eup %10949 }
0x6327   :  { %v8584_v22 = vadd.f32 1.0, %v10950_v21  ;;  %v8793_v21 = vsub.f32 %v29_v15, %v8701_v26 }
0x6329   :  { %10951 = vrcp.f32 %v8584_v22  ;;  %v8787_v22 = vand.u32 4294901760, %v8786_v12 }
0x6333   :  { %v10952_v60 = vpop.eup %10951 }
0x6334   :  { %v8591_v34 = vmul.f32 %v10952_v60, %v8589_v49  ;;  %v8594_v24 = vsub.f32 1.0, %v10952_v60  ;;  %v8600_v63 = vmul.f32 %v10952_v60, %v8527_v13  ;;  %v8773_v13 = vand.u32 4294901760, %v12428_v4 }
0x6335   :  { %v8794_v60 = vand.u32 4294901760, %v8793_v21  ;;  %v8788_v49 = vsub.f32 %v8786_v12, %v8787_v22 }
0x6336   :  { %v8592_v62 = vadd.f32 %v8591_v34, %v8572_v54  ;;  %v8774_v43 = vsub.f32 %v12428_v4, %v8773_v13 }
0x6337   :  { %v8795_v34 = vsub.f32 %v8793_v21, %v8794_v60 }
0x6338   :  { %10953 = vtanh.f32 %v8592_v62  ;;  %v8775_v52 = vand.u32 4294901760, %v8774_v43  ;;  %v8789_v62 = vand.u32 4294901760, %v8788_v49 }
0x6339   :  { %10955 = vpow2.f32 %v7189_v32 }
0x6342   :  { %v10954_v35 = vpop.eup %10953 }
0x6343   :  { %8596 = vrot.lane.b32.xlu1 %v10954_v35, %s10996_s1  ;;  %v10956_v55 = vpop.eup %10955  ;;  %v8796_v35 = vand.u32 4294901760, %v8795_v34 }
0x6344   :  { %v7191_v40 = vadd.f32 1.0, %v10956_v55  ;;  %v10581_v55 = vpack.c.bf16 %v8794_v60, %v8787_v22 }
0x6346   :  { %10957 = vlog2.f32 %v7191_v40 }
0x6350   :  { %v10958_v57 = vpop.eup %10957 }
0x6351   :  { %v7193_v45 = vmul.f32 0.6931472, %v10958_v57 }
0x6353   :  { %v7194_v30 = vadd.f32 %v7193_v45, %v7186_v58 }
0x6355   :  { %vm7195_vm11 = vcmp.lt.f32.partialorder %v7194_v30, 0.005 }
0x6356   :  { %v8676_v14 = vsel %vm7195_vm11, 1, %v10993_v9  ;;  %v27_v9 = vld [vmem:[%s12473_s3 + $0xd8] sm:$0xff] }
0x6357   :  { %v8695_v6 = vand.u32 4294901760, %v27_v9 }
0x6359   :  { %v12430_v56 = vsub.f32 %v27_v9, %v8695_v6 }
0x635b   :  { %v8780_v16 = vand.u32 4294901760, %v12430_v56  ;;  %v10566_v45 = vpack.c.bf16 %v12430_v56, %v12428_v4 }
0x635d   :  { %v8781_v51 = vsub.f32 %v12430_v56, %v8780_v16 }
0x635f   :  { %v8782_v54 = vand.u32 4294901760, %v8781_v51 }
0x6361   :  { %v10560_v50 = vpack.c.bf16 %v8782_v54, %v8775_v52 }
0x6363   :  { %10561 = vmatpush3.bf16.msra.mxu1 %v10560_v50 }
0x6364   :  { %10562 = vmatprep.subr.bf16.mxu1 %v10990_v0 }
0x63b5   :  { %v8597_v39 = vpop.permute.xlu1 %8596 }
0x63b6   :  { %v8599_v31 = vmul.f32 %v8597_v39, %v8594_v24  ;;  %v10563_v24 = vpack.c.bf16 %v8796_v35, %v8789_v62  ;;  %v10554_v39 = vpack.c.bf16 %v8695_v6, %v8692_v42 }
0x63b8   :  { %v12405_v1 = vadd.f32 %v8600_v63, %v8599_v31  ;;  %10564 = vmatpush3.bf16.msra.mxu1 %v10563_v24  ;;  %v10557_v31 = vpack.c.bf16 %v8701_v26, %v8698_v10 }
0x63b9   :  { %10565 = vmatprep.subr.bf16.mxu1 %v10990_v0 }
0x63ba   :  { %v8602_v11 = vpack.c.bf16 %v12405_v1, %v12405_v1 }
0x63bc   :  { %8604 = vrot.lane.b32.xlu0 %v8602_v11, %s10995_s24  ;;  %v10569_v11 = vpack.c.bf16 %v8793_v21, %v8786_v12 }
0x642e   :  { %v8605_v61 = vpop.permute.xlu0 %8604 }
0x642f   :  { %9273 = vmatmul.mubr.msk.bf16.vlgmr.msra.gmra.mrb[136].mxu0 %vm1655_vm8, %v8605_v61 }
0x6430   :  { %10225 = vmatprep.mubr.msk.f32.mxu0 %vm10991_vm1, %v10992_v3  ;;  %10555 = vmatpush3.bf16.msra.mxu0 %v10554_v39 }
0x6431   :  { %10556 = vmatprep.subr.bf16.mxu0 %v10990_v0 }
0x6434   :  { %10558 = vmatpush3.bf16.msra.mxu0 %v10557_v31 }
0x6502   :  { %v8643_v37 = vpop.f32.mrb[136].mxu0 }
0x6503   :  { %v8644_v47 = vadd.f32 %v8643_v37, %v11576_v46  ;;  %v8645_v41 = vpop.f32.mrb[137].mxu0 }
0x6504   :  { %v8646_v23 = vadd.f32 %v8645_v41, %v11579_v36  ;;  %v8647_v29 = vpop.f32.mrb[138].mxu0 }
0x6505   :  { %v8648_v44 = vpop.f32.mrb[139].mxu0  ;;  %8651 = vrot.lane.b32.xlu1 %v8644_v47, %s10994_s23  ;;  %v9274_v29 = vld [vmem:[%s12473_s3 + $0xf0] ss:$0 sm:$0xff] }
0x6506   :  { %8662 = vrot.lane.b32.xlu0 %v8646_v23, %s10995_s24 }
0x6509   :  { %8678 = vperm.xlu1 %10700, %v8676_v14  }
0x6577   :  { %v8652_v28 = vpop.permute.xlu1 %8651 }
0x6578   :  { %v8654_v38 = vadd.f32 %v8652_v28, %v8644_v47  ;;  %v8663_v36 = vpop.permute.xlu0 %8662  ;;  %v10578_v47 = vpack.c.bf16 %v8780_v16, %v8773_v13 }
0x657a   :  { %v8655_v48 = vsub.f32 0.0, %v8654_v38 }
0x657c   :  { %v8656_v25 = vmul.f32 1.442695, %v8655_v48 }
0x657e   :  { %10959 = vpow2.f32 %v8656_v25 }
0x6588   :  { %v10960_v53 = vpop.eup %10959  ;;  %v8679_v2 = vpop.permute.xlu1 %8678 }
0x6589   :  { %v8658_v46 = vadd.f32 1.0, %v10960_v53  ;;  %vm8680_vm12 = vcmp.eq.s32.totalorder %v8679_v2, 1 }
0x658b   :  { %10961 = vrcp.f32 %v8658_v46 }
0x6595   :  { %v10962_v33 = vpop.eup %10961 }
0x6596   :  { %v8665_v17 = vmul.f32 %v10962_v33, %v8663_v36  ;;  %v8668_v63 = vsub.f32 1.0, %v10962_v33  ;;  %v8674_v7 = vmul.f32 %v10962_v33, %v12405_v1 }
0x6598   :  { %v8666_v59 = vadd.f32 %v8665_v17, %v8646_v23 }
0x659a   :  { %10963 = vtanh.f32 %v8666_v59 }
0x65a4   :  { %v10964_v19 = vpop.eup %10963 }
0x65a5   :  { %8670 = vrot.lane.b32.xlu0 %v10964_v19, %s10996_s1 }
0x6617   :  { %v8671_v61 = vpop.permute.xlu0 %8670 }
0x6618   :  { %v8673_v5 = vmul.f32 %v8671_v61, %v8668_v63 }
0x661a   :  { %v8675_v27 = vadd.f32 %v8674_v7, %v8673_v5 }
0x661c   :  { %v8681_v32 = vsel %vm8680_vm12, %v8675_v27, %v12149_v18 }
0x661d   :  { %8687 = vrot.lane.b32.xlu1 %v8681_v32, %s10995_s24 }
0x668f   :  { %v8688_v40 = vpop.permute.xlu1 %8687 }
0x6690   :  { %v8689_v57 = vsel %vm1655_vm8, %v8688_v40, 0 }
0x6691   :  { %v8760_v58 = vand.u32 4294901760, %v8689_v57 }
0x6693   :  { %v8761_v30 = vsub.f32 %v8689_v57, %v8760_v58  ;;  %10237 = vmatmul.mubr.f32.vlgmr.msra.gmra.mrb[62].mxu1 %v8760_v58 }
0x6694   :  { %10567 = vmatpush3.bf16.msra.mxu1 %v10566_v45  ;;  %10247 = vmatprep.mubr.msk.f32.mxu1 %vm10991_vm1, %v10992_v3 }
0x6695   :  { %v8762_v1 = vand.u32 4294901760, %v8761_v30  ;;  %10568 = vmatprep.subr.bf16.mxu1 %v10990_v0 }
0x6697   :  { %v8763_v18 = vsub.f32 %v8761_v30, %v8762_v1 }
0x6698   :  { %10570 = vmatpush3.bf16.msra.mxu1 %v10569_v11 }
0x6699   :  { %v8764_v37 = vand.u32 4294901760, %v8763_v18  ;;  %10571 = vmatprep.subr.bf16.mxu1 %v10990_v0 }
0x669b   :  { %10226 = vmatmul.mubr.f32.vlgmr.msra.gmra.mrb[140].mxu0 %v8764_v37  ;;  %10248 = vmatmul.mubr.f32.vlgmr.msra.gmra.mrb[62].mxu1 %v8761_v30 }
0x669c   :  { %10573 = vmatpush3.bf16.msra.mxu1 %v10554_v39  ;;  %10258 = vmatprep.mubr.msk.f32.mxu1 %vm10991_vm1, %v10992_v3 }
0x669d   :  { %10574 = vmatprep.subr.bf16.mxu1 %v10990_v0 }
0x66a0   :  { %10576 = vmatpush3.bf16.msra.mxu1 %v10557_v31 }
0x66a1   :  { %10577 = vmatprep.subr.bf16.mxu1 %v10990_v0 }
0x66a3   :  { %10259 = vmatmul.mubr.f32.vlgmr.msra.gmra.mrb[62].mxu1 %v8762_v1 }
0x66a4   :  { %10579 = vmatpush3.bf16.msra.mxu1 %v10578_v47  ;;  %10269 = vmatprep.mubr.msk.f32.mxu1 %vm10991_vm1, %v10992_v3 }
0x66a5   :  { %10580 = vmatprep.subr.bf16.mxu1 %v10990_v0 }
0x66a8   :  { %10582 = vmatpush3.bf16.msra.mxu1 %v10581_v55 }
0x66a9   :  { %10583 = vmatprep.subr.bf16.mxu1 %v10990_v0 }
0x66ab   :  { %10270 = vmatmul.mubr.f32.vlgmr.msra.gmra.mrb[62].mxu1 %v8760_v58 }
0x66ac   :  { %10585 = vmatpush3.bf16.msra.mxu1 %v10554_v39  ;;  %10280 = vmatprep.mubr.msk.f32.mxu1 %vm10991_vm1, %v10992_v3 }
0x66ad   :  { %10586 = vmatprep.subr.bf16.mxu1 %v10990_v0 }
0x66b0   :  { %10588 = vmatpush3.bf16.msra.mxu1 %v10557_v31 }
0x66b3   :  { %10281 = vmatmul.mubr.f32.vlgmr.msra.gmra.mrb[62].mxu1 %v8760_v58 }
0x676e   :  { %v8766_v41 = vpop.f32.mrb[140].mxu0 }
0x676f   :  { %v10227_v23 = vpop.f32.mrb[141].mxu0  ;;  %v8767_v44 = vadd.f32 %v9274_v29, %v8766_v41 }
0x6786   :  { %v9172_v14 = vpop.f32.mrb[62].mxu1 }
0x6787   :  { %v10597_v28 = vadd.f32 %v9172_v14, %v8767_v44  ;;  %v10282_v38 = vpop.f32.mrb[63].mxu1 }
0x6789   :  { %9177 = vst.msk [vmem:[%s12477_s4] sm:$0xff] %vm9176_vm13, %v10597_v28 }

</bundles_post_ra>
